<compile_context>
chip_gen: v5e
topology: v5e:2x2
jax: 0.10.0
libtpu: 0.0.40
codegen_flags: <defaults>
</compile_context>

<pallas_src>
import math

import jax
import jax.numpy as jnp
from jax.experimental import pallas as pl
from jax.experimental.pallas import tpu as pltpu


def _round_up(x, m):
    return ((x + m - 1) // m) * m


# ----------------------------- Pallas kernel -----------------------------
def _make_conv_kernel(TILE_OH, OW_pad, C, OC_pad, KH, KW, SH, SW, DH, DW, fold):
    """Same-conv kernel for one (image, OH-band) grid step.

    x_ref : (1, Hp_pad, Wp_pad, C)        padded NHWC image (resident per image)
    w_ref : (KH*KW*C, OC_pad)             tap-folded weights (resident)
    b_ref : (1, OC_pad)                   zero-padded bias (resident)
    o_ref : (1, TILE_OH, OW_pad, OC_pad)  output band (lane-dense)
    """
    M_tile = TILE_OH * OW_pad
    K_fold = KH * KW * C

    def _rows(r0):
        return pl.ds(r0, TILE_OH) if SH == 1 else pl.ds(r0, TILE_OH, stride=SH)

    def _cols(c0):
        return pl.ds(c0, OW_pad) if SW == 1 else pl.ds(c0, OW_pad, stride=SW)

    def kernel(x_ref, w_ref, b_ref, o_ref):
        band = pl.program_id(1)
        row0 = band * (TILE_OH * SH)
        # Static tap loop (KH*KW is small): slice sizes/strides are
        # compile-time constants, only the band row offset is dynamic.
        taps = []
        for kh in range(KH):
            for kw in range(KW):
                taps.append(x_ref[0, _rows(row0 + kh * DH), _cols(kw * DW), :])

        if fold:
            # Fold KH*KW*C onto the MXU contraction dim: one deep matmul per
            # band (cuts vmatmul pushes + pop/accumulate traffic ~KH*KW-fold
            # for small C).  OW_pad % 8 == 0 makes the reshape a layout no-op.
            lhs = jnp.concatenate(taps, axis=-1).reshape(M_tile, K_fold)
            acc = jnp.dot(lhs, w_ref[...], preferred_element_type=jnp.float32)
        else:
            # Per-tap path (C already MXU-deep, or lowering fallback).
            # Contiguous dot chain so v7x can accumulate in the MRB.
            acc = jnp.zeros((M_tile, OC_pad), jnp.float32)
            for t, tap in enumerate(taps):
                acc += jnp.dot(tap.reshape(M_tile, C),
                               w_ref[pl.ds(t * C, C), :],
                               preferred_element_type=jnp.float32)

        out = (acc + b_ref[...]).astype(o_ref.dtype)
        o_ref[0] = out.reshape(TILE_OH, OW_pad, OC_pad)

    return kernel


# ------------------------------ Conv2dSame -------------------------------
class Conv2dSame:
    """Pallas-TPU port of the PyTorch Conv2dSame module (NCHW in / NCHW out)."""

    _M_TILE_TARGET = 256  # target LHS rows per band matmul ("a few hundred")

    def __init__(self, in_channels, out_channels, kernel_size, stride=(1, 1),
                 dilation=(1, 1), key=None, compute_dtype=jnp.float32):
        self.F = kernel_size
        self.S = stride
        self.D = dilation
        self.Cin = in_channels
        self.Cout = out_channels
        self.compute_dtype = compute_dtype
        self._fold_ok = None  # resolved on first call (lowering safety net)
        # deterministic init mimicking nn.Conv2d default (uniform +-1/sqrt(fan_in))
        if key is None:
            key = jax.random.PRNGKey(0)
        kw_key, kb_key = jax.random.split(key)
        fan_in = in_channels * kernel_size[0] * kernel_size[1]
        bound = 1.0 / math.sqrt(fan_in)
        self.weight = jax.random.uniform(
            kw_key, (out_channels, in_channels, kernel_size[0], kernel_size[1]),
            dtype=jnp.float32, minval=-bound, maxval=bound)
        self.bias = jax.random.uniform(
            kb_key, (out_channels,), dtype=jnp.float32,
            minval=-bound, maxval=bound)

    def _same_pads(self, h, w):
        h2 = math.ceil(h / self.S[0])
        w2 = math.ceil(w / self.S[1])
        pr = max(0, (h2 - 1) * self.S[0] + (self.F[0] - 1) * self.D[0] + 1 - h)
        pc = max(0, (w2 - 1) * self.S[1] + (self.F[1] - 1) * self.D[1] + 1 - w)
        # (left, right, top, bottom) like nn.ZeroPad2d
        return (pc // 2, pc - pc // 2, pr // 2, pr - pr // 2)

    def __call__(self, x_in):
        # x_in: [N, C, H, W] float32
        n, c, h, w = x_in.shape
        KH, KW = self.F
        SH, SW = self.S
        DH, DW = self.D
        pad_l, pad_r, pad_t, pad_b = self._same_pads(h, w)

        Hp = h + pad_t + pad_b
        Wp = w + pad_l + pad_r
        OH = (Hp - (DH * (KH - 1) + 1)) // SH + 1
        OW = (Wp - (DW * (KW - 1) + 1)) // SW + 1

        # Lane/sublane friendly padded extents.
        OW_pad = _round_up(OW, 8)                      # free (OH,OW)<->(OH*OW) reshapes
        TILE_OH = max(1, min(OH, max(1, self._M_TILE_TARGET // OW_pad)))
        n_bands = int(pl.cdiv(OH, TILE_OH))
        OH_pad = n_bands * TILE_OH
        OC = self.Cout
        OC_pad = _round_up(OC, 128)                    # full-lane (unmasked) stores
        K_fold = KH * KW * c
        M_tile = TILE_OH * OW_pad

        # Input extents needed to evaluate every (band/width padded) output row.
        Hp_pad = max(Hp, (OH_pad - 1) * SH + (KH - 1) * DH + 1)
        Wp_pad = max(Wp, (OW_pad - 1) * SW + (KW - 1) * DW + 1)

        # NHWC (channels on lanes) + spatial zero padding: a single HBM pass.
        # TODO(synk): accept/emit NHWC end-to-end (or DMA + zero-fill inside the
        # kernel) to remove this transpose+pad and the final output transpose.
        x_nhwc = jnp.transpose(x_in, (0, 2, 3, 1))
        x_pad = jnp.pad(x_nhwc, ((0, 0),
                                 (pad_t, pad_b + (Hp_pad - Hp)),
                                 (pad_l, pad_r + (Wp_pad - Wp)),
                                 (0, 0)))

        # Tap-folded weight (KH,KW,C,OC) -> (KH*KW*C, OC_pad); row order matches
        # the in-kernel tap concatenation order (kh-major, then kw, then c).
        w_fold = jnp.transpose(self.weight, (2, 3, 1, 0)).reshape(K_fold, OC)
        w_fold = jnp.pad(w_fold, ((0, 0), (0, OC_pad - OC)))
        b2d = jnp.pad(self.bias.reshape(1, OC), ((0, 0), (0, OC_pad - OC)))

        if self.compute_dtype != jnp.float32:
            x_pad = x_pad.astype(self.compute_dtype)
            w_fold = w_fold.astype(self.compute_dtype)
        itemsize = jnp.dtype(self.compute_dtype).itemsize

        def run(fold):
            kernel = _make_conv_kernel(TILE_OH, OW_pad, c, OC_pad,
                                       KH, KW, SH, SW, DH, DW, fold)

            # VMEM budget from actual (8,128)-tiled block footprints, double
            # buffered, plus the in-kernel patch/acc values; capped at v7x's
            # 64 MiB physical VMEM, floored at the common 32 MiB scoped default.
            in_blk = Hp_pad * _round_up(Wp_pad, 16) * _round_up(c, 128) * itemsize
            w_blk = _round_up(K_fold, 16) * OC_pad * itemsize
            b_blk = 8 * OC_pad * 4
            out_blk = TILE_OH * OW_pad * OC_pad * 4
            scratch = M_tile * (_round_up(K_fold, 128) * itemsize + OC_pad * 4)
            vmem_limit = 2 * (in_blk + w_blk + b_blk + out_blk) + 2 * scratch
            vmem_limit = int(min(64 << 20, max(32 << 20, vmem_limit + (4 << 20))))

            flops = 2 * n * n_bands * M_tile * K_fold * OC_pad
            bytes_accessed = int(x_pad.size * itemsize + w_fold.size * itemsize
                                 + b2d.size * 4 + n * OH_pad * OW_pad * OC_pad * 4)

            return pl.pallas_call(
                kernel,
                out_shape=jax.ShapeDtypeStruct((n, OH_pad, OW_pad, OC_pad),
                                               jnp.float32),
                grid=(n, n_bands),
                in_specs=[
                    # Padded image of batch element i; index_map is constant
                    # along the band axis so it is fetched once per image.
                    # TODO(synk): for images whose padded NHWC block exceeds the
                    # VMEM budget (size against v7x's 64 MiB), switch this to
                    # memory_space=pl.ANY and row-tile with halo rows via manual
                    # make_async_copy double buffering.
                    pl.BlockSpec((1, Hp_pad, Wp_pad, c),
                                 lambda i, j: (i, 0, 0, 0)),
                    # Tap-folded weights / bias: same block every step.
                    # TODO(synk): single-buffer these via
                    # pipeline_mode=pl.Buffered(1) once validated on the target
                    # toolchain (saves one weight-sized VMEM buffer).
                    pl.BlockSpec((K_fold, OC_pad), lambda i, j: (0, 0)),
                    pl.BlockSpec((1, OC_pad), lambda i, j: (0, 0)),
                ],
                out_specs=pl.BlockSpec((1, TILE_OH, OW_pad, OC_pad),
                                       lambda i, j: (i, j, 0, 0)),
                compiler_params=pltpu.CompilerParams(
                    dimension_semantics=("parallel", "parallel"),
                    vmem_limit_bytes=vmem_limit),
                cost_estimate=pl.CostEstimate(
                    flops=flops, transcendentals=0,
                    bytes_accessed=bytes_accessed),
            )(x_pad, w_fold, b2d)

        if self._fold_ok is None:
            if c < 128:  # K-fold pays off when C is MXU-shallow
                try:
                    out = run(fold=True)
                    jax.block_until_ready(out)
                    self._fold_ok = True
                except Exception:  # lowering safety net -> per-tap path
                    self._fold_ok = False
                    out = run(fold=False)
            else:
                self._fold_ok = False
                out = run(fold=False)
        else:
            out = run(fold=self._fold_ok)

        # Un-pad once at the API boundary, back to NCHW.
        out = out[:, :OH, :OW, :OC]
        return jnp.transpose(out, (0, 3, 1, 2))


# --------------------------------- main -----------------------------------
def _reference(x, conv):
    pad_l, pad_r, pad_t, pad_b = conv._same_pads(x.shape[2], x.shape[3])
    y = jax.lax.conv_general_dilated(
        x, conv.weight, window_strides=conv.S,
        padding=((pad_t, pad_b), (pad_l, pad_r)),
        rhs_dilation=conv.D,
        dimension_numbers=("NCHW", "OIHW", "NCHW"))
    return y + conv.bias.reshape(1, -1, 1, 1)


def _check(key, N, Cin, H, W, Cout, ksize, stride, dilation, compute_dtype, tol):
    kx, kp = jax.random.split(key)
    x = jax.random.normal(kx, (N, Cin, H, W), dtype=jnp.float32)
    conv = Conv2dSame(Cin, Cout, ksize, stride=stride, dilation=dilation,
                      key=kp, compute_dtype=compute_dtype)
    y = jax.block_until_ready(conv(x))
    y_ref = _reference(x, conv)
    assert y.shape == y_ref.shape, (y.shape, y_ref.shape)
    err = float(jnp.max(jnp.abs(y - y_ref)))
    assert jnp.allclose(y, y_ref, atol=tol, rtol=tol), err


if __name__ == "__main__":
    key = jax.random.PRNGKey(0)
    k1, k2 = jax.random.split(key)

    # Canonical small case: batch=2, C=4, 16x16, 3x3, stride 1, f32 (1e-4 tol).
    _check(k1, 2, 4, 16, 16, 8, (3, 3), (1, 1), (1, 1), jnp.float32, 1e-4)
    # Ragged case: odd spatial sizes (multi-band grid + OH/OW/OC padding),
    # dilation 2, bf16 operands with f32 accumulation (looser tolerance).
    _check(k2, 2, 3, 23, 19, 5, (3, 3), (1, 1), (2, 2), jnp.bfloat16, 5e-2)

    print("KERNEL_OK")
</pallas_src>

<mosaic_0001>
module attributes {stable_mosaic.version = 11 : i64} {
  func.func @kernel(%arg0: i32, %arg1: i32, %arg2: memref<1x18x18x4xf32, #tpu.memory_space<vmem>>, %arg3: memref<36x128xf32, #tpu.memory_space<vmem>>, %arg4: memref<1x128xf32, #tpu.memory_space<vmem>>, %arg5: memref<1x16x16x128xf32, #tpu.memory_space<vmem>>) attributes {dimension_semantics = [#tpu.dimension_semantics<parallel>, #tpu.dimension_semantics<parallel>], iteration_bounds = array<i64: 2, 1>, scalar_prefetch = 0 : i64, scratch_operands = 0 : i64, tpu.core_type = #tpu.core_type<tc>, window_params = [{transform_indices = @transform_0, window_bounds = array<i64: 1, 18, 18, 4>}, {pipeline_mode = #tpu.pipeline_mode<synchronous>, transform_indices = @transform_1, window_bounds = array<i64: 36, 128>}, {pipeline_mode = #tpu.pipeline_mode<synchronous>, transform_indices = @transform_2, window_bounds = array<i64: 1, 128>}, {transform_indices = @transform_3, window_bounds = array<i64: 1, 16, 16, 128>}]} {
    %c16_i32 = arith.constant 16 : i32
    %0 = arith.muli %arg1, %c16_i32 : i32
    %c0_i32 = arith.constant 0 : i32
    %1 = arith.addi %0, %c0_i32 : i32
    %c0 = arith.constant 0 : index
    %2 = arith.index_cast %1 : i32 to index
    %c0_0 = arith.constant 0 : index
    %c0_1 = arith.constant 0 : index
    %3 = vector.load %arg2[%c0, %2, %c0_0, %c0_1] : memref<1x18x18x4xf32, #tpu.memory_space<vmem>>, vector<1x16x16x4xf32>
    %4 = vector.shape_cast %3 : vector<1x16x16x4xf32> to vector<16x16x4xf32>
    %c0_i32_2 = arith.constant 0 : i32
    %5 = arith.addi %0, %c0_i32_2 : i32
    %c0_3 = arith.constant 0 : index
    %6 = arith.index_cast %5 : i32 to index
    %c1 = arith.constant 1 : index
    %c0_4 = arith.constant 0 : index
    %7 = vector.load %arg2[%c0_3, %6, %c1, %c0_4] : memref<1x18x18x4xf32, #tpu.memory_space<vmem>>, vector<1x16x16x4xf32>
    %8 = vector.shape_cast %7 : vector<1x16x16x4xf32> to vector<16x16x4xf32>
    %c0_i32_5 = arith.constant 0 : i32
    %9 = arith.addi %0, %c0_i32_5 : i32
    %c0_6 = arith.constant 0 : index
    %10 = arith.index_cast %9 : i32 to index
    %c2 = arith.constant 2 : index
    %c0_7 = arith.constant 0 : index
    %11 = vector.load %arg2[%c0_6, %10, %c2, %c0_7] : memref<1x18x18x4xf32, #tpu.memory_space<vmem>>, vector<1x16x16x4xf32>
    %12 = vector.shape_cast %11 : vector<1x16x16x4xf32> to vector<16x16x4xf32>
    %c1_i32 = arith.constant 1 : i32
    %13 = arith.addi %0, %c1_i32 : i32
    %c0_8 = arith.constant 0 : index
    %14 = arith.index_cast %13 : i32 to index
    %c0_9 = arith.constant 0 : index
    %c0_10 = arith.constant 0 : index
    %15 = vector.load %arg2[%c0_8, %14, %c0_9, %c0_10] : memref<1x18x18x4xf32, #tpu.memory_space<vmem>>, vector<1x16x16x4xf32>
    %16 = vector.shape_cast %15 : vector<1x16x16x4xf32> to vector<16x16x4xf32>
    %c1_i32_11 = arith.constant 1 : i32
    %17 = arith.addi %0, %c1_i32_11 : i32
    %c0_12 = arith.constant 0 : index
    %18 = arith.index_cast %17 : i32 to index
    %c1_13 = arith.constant 1 : index
    %c0_14 = arith.constant 0 : index
    %19 = vector.load %arg2[%c0_12, %18, %c1_13, %c0_14] : memref<1x18x18x4xf32, #tpu.memory_space<vmem>>, vector<1x16x16x4xf32>
    %20 = vector.shape_cast %19 : vector<1x16x16x4xf32> to vector<16x16x4xf32>
    %c1_i32_15 = arith.constant 1 : i32
    %21 = arith.addi %0, %c1_i32_15 : i32
    %c0_16 = arith.constant 0 : index
    %22 = arith.index_cast %21 : i32 to index
    %c2_17 = arith.constant 2 : index
    %c0_18 = arith.constant 0 : index
    %23 = vector.load %arg2[%c0_16, %22, %c2_17, %c0_18] : memref<1x18x18x4xf32, #tpu.memory_space<vmem>>, vector<1x16x16x4xf32>
    %24 = vector.shape_cast %23 : vector<1x16x16x4xf32> to vector<16x16x4xf32>
    %c2_i32 = arith.constant 2 : i32
    %25 = arith.addi %0, %c2_i32 : i32
    %c0_19 = arith.constant 0 : index
    %26 = arith.index_cast %25 : i32 to index
    %c0_20 = arith.constant 0 : index
    %c0_21 = arith.constant 0 : index
    %27 = vector.load %arg2[%c0_19, %26, %c0_20, %c0_21] : memref<1x18x18x4xf32, #tpu.memory_space<vmem>>, vector<1x16x16x4xf32>
    %28 = vector.shape_cast %27 : vector<1x16x16x4xf32> to vector<16x16x4xf32>
    %c2_i32_22 = arith.constant 2 : i32
    %29 = arith.addi %0, %c2_i32_22 : i32
    %c0_23 = arith.constant 0 : index
    %30 = arith.index_cast %29 : i32 to index
    %c1_24 = arith.constant 1 : index
    %c0_25 = arith.constant 0 : index
    %31 = vector.load %arg2[%c0_23, %30, %c1_24, %c0_25] : memref<1x18x18x4xf32, #tpu.memory_space<vmem>>, vector<1x16x16x4xf32>
    %32 = vector.shape_cast %31 : vector<1x16x16x4xf32> to vector<16x16x4xf32>
    %c2_i32_26 = arith.constant 2 : i32
    %33 = arith.addi %0, %c2_i32_26 : i32
    %c0_27 = arith.constant 0 : index
    %34 = arith.index_cast %33 : i32 to index
    %c2_28 = arith.constant 2 : index
    %c0_29 = arith.constant 0 : index
    %35 = vector.load %arg2[%c0_27, %34, %c2_28, %c0_29] : memref<1x18x18x4xf32, #tpu.memory_space<vmem>>, vector<1x16x16x4xf32>
    %36 = vector.shape_cast %35 : vector<1x16x16x4xf32> to vector<16x16x4xf32>
    %37 = tpu.concatenate %4, %8, %12, %16, %20, %24, %28, %32, %36 in 2 : vector<16x16x4xf32>, vector<16x16x4xf32>, vector<16x16x4xf32>, vector<16x16x4xf32>, vector<16x16x4xf32>, vector<16x16x4xf32>, vector<16x16x4xf32>, vector<16x16x4xf32>, vector<16x16x4xf32> -> vector<16x16x36xf32>
    %38 = vector.shape_cast %37 : vector<16x16x36xf32> to vector<256x36xf32>
    %c0_30 = arith.constant 0 : index
    %c0_31 = arith.constant 0 : index
    %39 = vector.load %arg3[%c0_30, %c0_31] : memref<36x128xf32, #tpu.memory_space<vmem>>, vector<36x128xf32>
    %cst = arith.constant dense<0.000000e+00> : vector<256x128xf32>
    %40 = tpu.matmul %38, %39, %cst {dimension_numbers = #tpu.dot_dimension_numbers<[1], [0], [0], [1], [0, 0, 1, 1], [], []>} : vector<256x36xf32>, vector<36x128xf32>, vector<256x128xf32> -> vector<256x128xf32>
    %c0_32 = arith.constant 0 : index
    %c0_33 = arith.constant 0 : index
    %41 = vector.load %arg4[%c0_32, %c0_33] : memref<1x128xf32, #tpu.memory_space<vmem>>, vector<1x128xf32>
    %42 = vector.broadcast %41 : vector<1x128xf32> to vector<256x128xf32>
    %43 = arith.addf %40, %42 : vector<256x128xf32>
    %44 = vector.shape_cast %43 : vector<256x128xf32> to vector<16x16x128xf32>
    %c0_34 = arith.constant 0 : index
    %c0_35 = arith.constant 0 : index
    %c0_36 = arith.constant 0 : index
    %c0_37 = arith.constant 0 : index
    %45 = vector.load %arg5[%c0_34, %c0_35, %c0_36, %c0_37] : memref<1x16x16x128xf32, #tpu.memory_space<vmem>>, vector<1x16x16x128xf32>
    %46 = vector.shape_cast %45 : vector<1x16x16x128xf32> to vector<16x16x128xf32>
    %47 = vector.shape_cast %44 : vector<16x16x128xf32> to vector<1x16x16x128xf32>
    tpu.vector_store %arg5[%c0_34, %c0_35, %c0_36, %c0_37], %47 {strides = array<i32>} : memref<1x16x16x128xf32, #tpu.memory_space<vmem>>, vector<1x16x16x128xf32>,
    return
  }
  func.func @transform_0(%arg0: i32, %arg1: i32) -> (i32, i32, i32, i32) {
    %c0_i32 = arith.constant 0 : i32
    %c0_i32_0 = arith.constant 0 : i32
    %c0_i32_1 = arith.constant 0 : i32
    %c0_i32_2 = arith.constant 0 : i32
    return %arg0, %c0_i32, %c0_i32_0, %c0_i32_1 : i32, i32, i32, i32
  }
  func.func @transform_1(%arg0: i32, %arg1: i32) -> (i32, i32) {
    %c0_i32 = arith.constant 0 : i32
    %c0_i32_0 = arith.constant 0 : i32
    %c0_i32_1 = arith.constant 0 : i32
    return %c0_i32, %c0_i32_0 : i32, i32
  }
  func.func @transform_2(%arg0: i32, %arg1: i32) -> (i32, i32) {
    %c0_i32 = arith.constant 0 : i32
    %c0_i32_0 = arith.constant 0 : i32
    %c0_i32_1 = arith.constant 0 : i32
    return %c0_i32, %c0_i32_0 : i32, i32
  }
  func.func @transform_3(%arg0: i32, %arg1: i32) -> (i32, i32, i32, i32) {
    %c0_i32 = arith.constant 0 : i32
    %c0_i32_0 = arith.constant 0 : i32
    %c0_i32_1 = arith.constant 0 : i32
    return %arg0, %arg1, %c0_i32, %c0_i32_0 : i32, i32, i32, i32
  }
}

module attributes {stable_mosaic.version = 11 : i64} {
  func.func @kernel(%arg0: i32, %arg1: i32, %arg2: memref<1x18x18x4xf32, #tpu.memory_space<vmem>>, %arg3: memref<36x128xf32, #tpu.memory_space<vmem>>, %arg4: memref<1x128xf32, #tpu.memory_space<vmem>>, %arg5: memref<1x16x16x128xf32, #tpu.memory_space<vmem>>) attributes {dimension_semantics = [#tpu.dimension_semantics<parallel>, #tpu.dimension_semantics<parallel>], iteration_bounds = array<i64: 2, 1>, scalar_prefetch = 0 : i64, scratch_operands = 0 : i64, tpu.core_type = #tpu.core_type<tc>, window_params = [{transform_indices = @transform_0, window_bounds = array<i64: 1, 18, 18, 4>}, {pipeline_mode = #tpu.pipeline_mode<synchronous>, transform_indices = @transform_1, window_bounds = array<i64: 36, 128>}, {pipeline_mode = #tpu.pipeline_mode<synchronous>, transform_indices = @transform_2, window_bounds = array<i64: 1, 128>}, {transform_indices = @transform_3, window_bounds = array<i64: 1, 16, 16, 128>}]} {
    %c16_i32 = arith.constant 16 : i32
    %0 = arith.muli %arg1, %c16_i32 : i32
    %c0_i32 = arith.constant 0 : i32
    %1 = arith.addi %0, %c0_i32 : i32
    %c0 = arith.constant 0 : index
    %2 = arith.index_cast %1 : i32 to index
    %c0_0 = arith.constant 0 : index
    %c0_1 = arith.constant 0 : index
    %3 = vector.load %arg2[%c0, %2, %c0_0, %c0_1] : memref<1x18x18x4xf32, #tpu.memory_space<vmem>>, vector<1x16x16x4xf32>
    %4 = vector.shape_cast %3 : vector<1x16x16x4xf32> to vector<16x16x4xf32>
    %c0_i32_2 = arith.constant 0 : i32
    %5 = arith.addi %0, %c0_i32_2 : i32
    %c0_3 = arith.constant 0 : index
    %6 = arith.index_cast %5 : i32 to index
    %c1 = arith.constant 1 : index
    %c0_4 = arith.constant 0 : index
    %7 = vector.load %arg2[%c0_3, %6, %c1, %c0_4] : memref<1x18x18x4xf32, #tpu.memory_space<vmem>>, vector<1x16x16x4xf32>
    %8 = vector.shape_cast %7 : vector<1x16x16x4xf32> to vector<16x16x4xf32>
    %c0_i32_5 = arith.constant 0 : i32
    %9 = arith.addi %0, %c0_i32_5 : i32
    %c0_6 = arith.constant 0 : index
    %10 = arith.index_cast %9 : i32 to index
    %c2 = arith.constant 2 : index
    %c0_7 = arith.constant 0 : index
    %11 = vector.load %arg2[%c0_6, %10, %c2, %c0_7] : memref<1x18x18x4xf32, #tpu.memory_space<vmem>>, vector<1x16x16x4xf32>
    %12 = vector.shape_cast %11 : vector<1x16x16x4xf32> to vector<16x16x4xf32>
    %c1_i32 = arith.constant 1 : i32
    %13 = arith.addi %0, %c1_i32 : i32
    %c0_8 = arith.constant 0 : index
    %14 = arith.index_cast %13 : i32 to index
    %c0_9 = arith.constant 0 : index
    %c0_10 = arith.constant 0 : index
    %15 = vector.load %arg2[%c0_8, %14, %c0_9, %c0_10] : memref<1x18x18x4xf32, #tpu.memory_space<vmem>>, vector<1x16x16x4xf32>
    %16 = vector.shape_cast %15 : vector<1x16x16x4xf32> to vector<16x16x4xf32>
    %c1_i32_11 = arith.constant 1 : i32
    %17 = arith.addi %0, %c1_i32_11 : i32
    %c0_12 = arith.constant 0 : index
    %18 = arith.index_cast %17 : i32 to index
    %c1_13 = arith.constant 1 : index
    %c0_14 = arith.constant 0 : index
    %19 = vector.load %arg2[%c0_12, %18, %c1_13, %c0_14] : memref<1x18x18x4xf32, #tpu.memory_space<vmem>>, vector<1x16x16x4xf32>
    %20 = vector.shape_cast %19 : vector<1x16x16x4xf32> to vector<16x16x4xf32>
    %c1_i32_15 = arith.constant 1 : i32
    %21 = arith.addi %0, %c1_i32_15 : i32
    %c0_16 = arith.constant 0 : index
    %22 = arith.index_cast %21 : i32 to index
    %c2_17 = arith.constant 2 : index
    %c0_18 = arith.constant 0 : index
    %23 = vector.load %arg2[%c0_16, %22, %c2_17, %c0_18] : memref<1x18x18x4xf32, #tpu.memory_space<vmem>>, vector<1x16x16x4xf32>
    %24 = vector.shape_cast %23 : vector<1x16x16x4xf32> to vector<16x16x4xf32>
    %c2_i32 = arith.constant 2 : i32
    %25 = arith.addi %0, %c2_i32 : i32
    %c0_19 = arith.constant 0 : index
    %26 = arith.index_cast %25 : i32 to index
    %c0_20 = arith.constant 0 : index
    %c0_21 = arith.constant 0 : index
    %27 = vector.load %arg2[%c0_19, %26, %c0_20, %c0_21] : memref<1x18x18x4xf32, #tpu.memory_space<vmem>>, vector<1x16x16x4xf32>
    %28 = vector.shape_cast %27 : vector<1x16x16x4xf32> to vector<16x16x4xf32>
    %c2_i32_22 = arith.constant 2 : i32
    %29 = arith.addi %0, %c2_i32_22 : i32
    %c0_23 = arith.constant 0 : index
    %30 = arith.index_cast %29 : i32 to index
    %c1_24 = arith.constant 1 : index
    %c0_25 = arith.constant 0 : index
    %31 = vector.load %arg2[%c0_23, %30, %c1_24, %c0_25] : memref<1x18x18x4xf32, #tpu.memory_space<vmem>>, vector<1x16x16x4xf32>
    %32 = vector.shape_cast %31 : vector<1x16x16x4xf32> to vector<16x16x4xf32>
    %c2_i32_26 = arith.constant 2 : i32
    %33 = arith.addi %0, %c2_i32_26 : i32
    %c0_27 = arith.constant 0 : index
    %34 = arith.index_cast %33 : i32 to index
    %c2_28 = arith.constant 2 : index
    %c0_29 = arith.constant 0 : index
    %35 = vector.load %arg2[%c0_27, %34, %c2_28, %c0_29] : memref<1x18x18x4xf32, #tpu.memory_space<vmem>>, vector<1x16x16x4xf32>
    %36 = vector.shape_cast %35 : vector<1x16x16x4xf32> to vector<16x16x4xf32>
    %cst = arith.constant 0.000000e+00 : f32
    %37 = vector.broadcast %cst : f32 to vector<256x128xf32>
    %38 = vector.shape_cast %4 : vector<16x16x4xf32> to vector<256x4xf32>
    %c0_30 = arith.constant 0 : index
    %c0_31 = arith.constant 0 : index
    %39 = vector.load %arg3[%c0_30, %c0_31] : memref<36x128xf32, #tpu.memory_space<vmem>>, vector<4x128xf32>
    %cst_32 = arith.constant dense<0.000000e+00> : vector<256x128xf32>
    %40 = tpu.matmul %38, %39, %cst_32 {dimension_numbers = #tpu.dot_dimension_numbers<[1], [0], [0], [1], [0, 0, 1, 1], [], []>} : vector<256x4xf32>, vector<4x128xf32>, vector<256x128xf32> -> vector<256x128xf32>
    %41 = arith.addf %37, %40 : vector<256x128xf32>
    %42 = vector.shape_cast %8 : vector<16x16x4xf32> to vector<256x4xf32>
    %c4 = arith.constant 4 : index
    %c0_33 = arith.constant 0 : index
    %43 = vector.load %arg3[%c4, %c0_33] : memref<36x128xf32, #tpu.memory_space<vmem>>, vector<4x128xf32>
    %cst_34 = arith.constant dense<0.000000e+00> : vector<256x128xf32>
    %44 = tpu.matmul %42, %43, %cst_34 {dimension_numbers = #tpu.dot_dimension_numbers<[1], [0], [0], [1], [0, 0, 1, 1], [], []>} : vector<256x4xf32>, vector<4x128xf32>, vector<256x128xf32> -> vector<256x128xf32>
    %45 = arith.addf %41, %44 : vector<256x128xf32>
    %46 = vector.shape_cast %12 : vector<16x16x4xf32> to vector<256x4xf32>
    %c8 = arith.constant 8 : index
    %c0_35 = arith.constant 0 : index
    %47 = vector.load %arg3[%c8, %c0_35] : memref<36x128xf32, #tpu.memory_space<vmem>>, vector<4x128xf32>
    %cst_36 = arith.constant dense<0.000000e+00> : vector<256x128xf32>
    %48 = tpu.matmul %46, %47, %cst_36 {dimension_numbers = #tpu.dot_dimension_numbers<[1], [0], [0], [1], [0, 0, 1, 1], [], []>} : vector<256x4xf32>, vector<4x128xf32>, vector<256x128xf32> -> vector<256x128xf32>
    %49 = arith.addf %45, %48 : vector<256x128xf32>
    %50 = vector.shape_cast %16 : vector<16x16x4xf32> to vector<256x4xf32>
    %c12 = arith.constant 12 : index
    %c0_37 = arith.constant 0 : index
    %51 = vector.load %arg3[%c12, %c0_37] : memref<36x128xf32, #tpu.memory_space<vmem>>, vector<4x128xf32>
    %cst_38 = arith.constant dense<0.000000e+00> : vector<256x128xf32>
    %52 = tpu.matmul %50, %51, %cst_38 {dimension_numbers = #tpu.dot_dimension_numbers<[1], [0], [0], [1], [0, 0, 1, 1], [], []>} : vector<256x4xf32>, vector<4x128xf32>, vector<256x128xf32> -> vector<256x128xf32>
    %53 = arith.addf %49, %52 : vector<256x128xf32>
    %54 = vector.shape_cast %20 : vector<16x16x4xf32> to vector<256x4xf32>
    %c16 = arith.constant 16 : index
    %c0_39 = arith.constant 0 : index
    %55 = vector.load %arg3[%c16, %c0_39] : memref<36x128xf32, #tpu.memory_space<vmem>>, vector<4x128xf32>
    %cst_40 = arith.constant dense<0.000000e+00> : vector<256x128xf32>
    %56 = tpu.matmul %54, %55, %cst_40 {dimension_numbers = #tpu.dot_dimension_numbers<[1], [0], [0], [1], [0, 0, 1, 1], [], []>} : vector<256x4xf32>, vector<4x128xf32>, vector<256x128xf32> -> vector<256x128xf32>
    %57 = arith.addf %53, %56 : vector<256x128xf32>
    %58 = vector.shape_cast %24 : vector<16x16x4xf32> to vector<256x4xf32>
    %c20 = arith.constant 20 : index
    %c0_41 = arith.constant 0 : index
    %59 = vector.load %arg3[%c20, %c0_41] : memref<36x128xf32, #tpu.memory_space<vmem>>, vector<4x128xf32>
    %cst_42 = arith.constant dense<0.000000e+00> : vector<256x128xf32>
    %60 = tpu.matmul %58, %59, %cst_42 {dimension_numbers = #tpu.dot_dimension_numbers<[1], [0], [0], [1], [0, 0, 1, 1], [], []>} : vector<256x4xf32>, vector<4x128xf32>, vector<256x128xf32> -> vector<256x128xf32>
    %61 = arith.addf %57, %60 : vector<256x128xf32>
    %62 = vector.shape_cast %28 : vector<16x16x4xf32> to vector<256x4xf32>
    %c24 = arith.constant 24 : index
    %c0_43 = arith.constant 0 : index
    %63 = vector.load %arg3[%c24, %c0_43] : memref<36x128xf32, #tpu.memory_space<vmem>>, vector<4x128xf32>
    %cst_44 = arith.constant dense<0.000000e+00> : vector<256x128xf32>
    %64 = tpu.matmul %62, %63, %cst_44 {dimension_numbers = #tpu.dot_dimension_numbers<[1], [0], [0], [1], [0, 0, 1, 1], [], []>} : vector<256x4xf32>, vector<4x128xf32>, vector<256x128xf32> -> vector<256x128xf32>
    %65 = arith.addf %61, %64 : vector<256x128xf32>
    %66 = vector.shape_cast %32 : vector<16x16x4xf32> to vector<256x4xf32>
    %c28 = arith.constant 28 : index
    %c0_45 = arith.constant 0 : index
    %67 = vector.load %arg3[%c28, %c0_45] : memref<36x128xf32, #tpu.memory_space<vmem>>, vector<4x128xf32>
    %cst_46 = arith.constant dense<0.000000e+00> : vector<256x128xf32>
    %68 = tpu.matmul %66, %67, %cst_46 {dimension_numbers = #tpu.dot_dimension_numbers<[1], [0], [0], [1], [0, 0, 1, 1], [], []>} : vector<256x4xf32>, vector<4x128xf32>, vector<256x128xf32> -> vector<256x128xf32>
    %69 = arith.addf %65, %68 : vector<256x128xf32>
    %70 = vector.shape_cast %36 : vector<16x16x4xf32> to vector<256x4xf32>
    %c32 = arith.constant 32 : index
    %c0_47 = arith.constant 0 : index
    %71 = vector.load %arg3[%c32, %c0_47] : memref<36x128xf32, #tpu.memory_space<vmem>>, vector<4x128xf32>
    %cst_48 = arith.constant dense<0.000000e+00> : vector<256x128xf32>
    %72 = tpu.matmul %70, %71, %cst_48 {dimension_numbers = #tpu.dot_dimension_numbers<[1], [0], [0], [1], [0, 0, 1, 1], [], []>} : vector<256x4xf32>, vector<4x128xf32>, vector<256x128xf32> -> vector<256x128xf32>
    %73 = arith.addf %69, %72 : vector<256x128xf32>
    %c0_49 = arith.constant 0 : index
    %c0_50 = arith.constant 0 : index
    %74 = vector.load %arg4[%c0_49, %c0_50] : memref<1x128xf32, #tpu.memory_space<vmem>>, vector<1x128xf32>
    %75 = vector.broadcast %74 : vector<1x128xf32> to vector<256x128xf32>
    %76 = arith.addf %73, %75 : vector<256x128xf32>
    %77 = vector.shape_cast %76 : vector<256x128xf32> to vector<16x16x128xf32>
    %c0_51 = arith.constant 0 : index
    %c0_52 = arith.constant 0 : index
    %c0_53 = arith.constant 0 : index
    %c0_54 = arith.constant 0 : index
    %78 = vector.load %arg5[%c0_51, %c0_52, %c0_53, %c0_54] : memref<1x16x16x128xf32, #tpu.memory_space<vmem>>, vector<1x16x16x128xf32>
    %79 = vector.shape_cast %78 : vector<1x16x16x128xf32> to vector<16x16x128xf32>
    %80 = vector.shape_cast %77 : vector<16x16x128xf32> to vector<1x16x16x128xf32>
    tpu.vector_store %arg5[%c0_51, %c0_52, %c0_53, %c0_54], %80 {strides = array<i32>} : memref<1x16x16x128xf32, #tpu.memory_space<vmem>>, vector<1x16x16x128xf32>,
    return
  }
  func.func @transform_0(%arg0: i32, %arg1: i32) -> (i32, i32, i32, i32) {
    %c0_i32 = arith.constant 0 : i32
    %c0_i32_0 = arith.constant 0 : i32
    %c0_i32_1 = arith.constant 0 : i32
    %c0_i32_2 = arith.constant 0 : i32
    return %arg0, %c0_i32, %c0_i32_0, %c0_i32_1 : i32, i32, i32, i32
  }
  func.func @transform_1(%arg0: i32, %arg1: i32) -> (i32, i32) {
    %c0_i32 = arith.constant 0 : i32
    %c0_i32_0 = arith.constant 0 : i32
    %c0_i32_1 = arith.constant 0 : i32
    return %c0_i32, %c0_i32_0 : i32, i32
  }
  func.func @transform_2(%arg0: i32, %arg1: i32) -> (i32, i32) {
    %c0_i32 = arith.constant 0 : i32
    %c0_i32_0 = arith.constant 0 : i32
    %c0_i32_1 = arith.constant 0 : i32
    return %c0_i32, %c0_i32_0 : i32, i32
  }
  func.func @transform_3(%arg0: i32, %arg1: i32) -> (i32, i32, i32, i32) {
    %c0_i32 = arith.constant 0 : i32
    %c0_i32_0 = arith.constant 0 : i32
    %c0_i32_1 = arith.constant 0 : i32
    return %arg0, %arg1, %c0_i32, %c0_i32_0 : i32, i32, i32, i32
  }
}

</mosaic_0001>

<bundles_post_ra>
// kernel: tpu_custom_call.1
= control target key start
LH: loop header
LB: loop body
LE: loop exit
PB: predicated region body
PF: predicated region fallthrough
CT: control target
= control target key end

     0   :  { %8 = vsyncpa [#allocation3], 0  ;;  %s4392_s0 = inlined_call_operand.vmem [shape: f32[2,18,18,4], index: 0, kind: input, shape index: {}]   ;;  %s4393_s1 = inlined_call_operand.vmem [shape: f32[36,128], index: 1, kind: input, shape index: {}]   ;;  %s4394_s2 = inlined_call_operand.vmem [shape: f32[1,128], index: 2, kind: input, shape index: {}]   ;;  %s4395_s3 = inlined_call_operand.hbm [shape: f32[2,16,16,128], index: 3, kind: output, shape index: {}]  }
   0x1   :  { %10 = vsyncpa [#allocation3 + $0x1], 0  ;;  %s2559_s12 = smov 0   ;;  %s2561_s13 = smov 0  }
   0x2   :  { %s2563_s14 = smov 0   ;;  %s2565_s15 = smov 0  }
   0x3   :  { %s2567_s16 = smov 0   ;;  %s2569_s17 = smov 0  }
   0x4 LB: > { %s2126_s18 = sadd.s32 4294967295, %s2528_s17   ;;  %s2127_s19 = sadd.s32 4294967294, %s2528_s17   ;;  %s2528_s17 = sphi %s2569_s17, %s16_s17   ;;  %s2524_s16 = sphi %s2567_s16, %s4683_s16   ;;  %s2520_s15 = sphi %s2565_s15, %s4682_s15   ;;  %s2516_s14 = sphi %s2563_s14, %s4681_s14   ;;  %s2512_s13 = sphi %s2561_s13, %s4680_s13   ;;  %s2508_s12 = sphi %s2559_s12, %s4679_s12  }
   0x5   : > { %s28_s20 = sadd.s32 1, %s2524_s16  ;;  %s105_s21 = sadd.s32 1, %s2516_s14 }
   0x6   : > { %p30_p0 = scmp.ge.s32.totalorder %s28_s20, 2  ;;  %p115_p1 = scmp.ne.s32.totalorder %s2516_s14, %s2512_s13 }
   0x7   : > { %p116_p2 = scmp.eq.s32.totalorder %s2126_s18, 1  ;;  %p121_p3 = scmp.ne.s32.totalorder %s2512_s13, %s2508_s12 }
   0x8   : > { %s4685_s20 = smov (%p30_p0, %s28_s20), 0  ;;  %p122_p5 = scmp.eq.s32.totalorder %s2127_s19, 1 }
   0x9   : > { %p2599_p4 = por %p116_p2, %p115_p1  ;;  %s100_s23 = ssub.s32 %s2524_s16, %s4685_s20 }
   0xa   : > { %p2130_p6 = scmp.ge.s32.totalorder %s2528_s17, 1  ;;  %p103_p7 = scmp.eq.s32.totalorder %s100_s23, 0 }
   0xb   : > { %p2606_p8 = por %p122_p5, %p121_p3  ;;  %p154_p9 = scmp.lt.s32.totalorder %s2528_s17, 3 }
   0xc   : > { %s2612_s25 = scalar_select %p103_p7, %s2516_s14, %s105_s21  }
   0xd   : > { %p155_p10 = pnand %p2130_p6, %p154_p9 }
   0xf   : > { %158 = sbr.rel (%p155_p10) target bundleno = 957 (0x3bd), region = 32 }
  0x14   : > { %p178_p11 = scmp.lt.s32.totalorder %s2520_s15, 1  ;;  %s2530_s4 = smov 4   ;;  %vm1505_vm0 = vcmask 31744   ;;  %vm1538_vm1 = vcmask 64512   ;;  %vm1571_vm2 = vcmask 97280   ;;  %vm1604_vm3 = vcmask 130048  }
  0x15   : > { %s2531_s5 = smov 8   ;;  %s2532_s6 = smov 12   ;;  %vm1637_vm4 = vcmask 162816   ;;  %vm1670_vm5 = vcmask 195584   ;;  %vm1875_vm6 = vcmask 1043456   ;;  %vm1703_vm7 = vcmask 228352  }
  0x16   : > { %s179_s26 = scalar_select %p178_p11, %s2520_s15, 1  ;;  %vm1736_vm8 = vcmask 261120   ;;  %vm1778_vm9 = vcmask 293888  }
  0x17   : > { %s2533_s7 = smov 16   ;;  %s2534_s8 = smov 20  }
  0x18   : > { %s2379_s27 = smul.u32 432, %s179_s26  ;;  %s2535_s9 = smov 24  }
  0x19   : > { %s2536_s10 = smov 32   ;;  %s2537_s11 = smov 28  }
  0x1a   : > { %s2619_s30 = scalar_lea.vmem %s4392_s0, %s2379_s27 }
  0x1b   : > { %v2622_v0 = vld [vmem:[%s2619_s30 + $0x31] sm:$0xff]  ;;  %v2625_v1 = vld [vmem:[%s2619_s30 + $0x19] sm:$0xff]  ;;  %v219_v2 = vld [vmem:[%s2619_s30 + $0x1] sm:$0xff] }
  0x1c   : > { %521 = vrot.lane.b32.xlu2 %v2622_v0, %s2530_s4  ;;  %517 = vrot.lane.b32.xlu1 %v2625_v1, %s2530_s4  ;;  %v2634_v3 = vld [vmem:[%s2619_s30 + $0x39] sm:$0xff]  ;;  %v2637_v4 = vld [vmem:[%s2619_s30 + $0x21] sm:$0xff] }
  0x1d   : > { %513 = vrot.lane.b32.xlu0 %v219_v2, %s2530_s4  ;;  %v220_v5 = vld [vmem:[%s2619_s30 + $0x9] sm:$0xff]  ;;  %v2646_v6 = vld [vmem:[%s2619_s30 + $0x61] sm:$0xff]  ;;  %v2649_v7 = vld [vmem:[%s2619_s30 + $0x51] sm:$0xff] }
  0x1e   : > { %v2652_v8 = vld [vmem:[%s2619_s30 + $0x49] sm:$0xff]  ;;  %v2661_v9 = vld [vmem:[%s2619_s30 + $0x81] sm:$0xff]  ;;  %v2664_v10 = vld [vmem:[%s2619_s30 + $0x79] sm:$0xff] }
  0x1f   : > { %v2667_v11 = vld [vmem:[%s2619_s30 + $0x69] sm:$0xff]  ;;  %v2679_v13 = vld [vmem:[%s2619_s30 + $0x99] sm:$0xff]  ;;  %v2682_v14 = vld [vmem:[%s2619_s30 + $0x91] sm:$0xff] }
  0x20   : > { %v2676_v12 = vld [vmem:[%s2619_s30 + $0xa9] sm:$0xff]  ;;  %v2694_v16 = vld [vmem:[%s2619_s30 + $0xc1] sm:$0xff]  ;;  %v2697_v17 = vld [vmem:[%s2619_s30 + $0xb1] sm:$0xff] }
  0x21   : > { %v2691_v15 = vld [vmem:[%s2619_s30 + $0xc9] sm:$0xff]  ;;  %v2706_v18 = vld [vmem:[%s2619_s30 + $0xf1] sm:$0xff]  ;;  %v2709_v19 = vld [vmem:[%s2619_s30 + $0xe1] sm:$0xff] }
  0x22   : > { %v2712_v20 = vld [vmem:[%s2619_s30 + $0xd9] sm:$0xff]  ;;  %v2721_v21 = vld [vmem:[%s2619_s30 + $0x111] sm:$0xff]  ;;  %v2724_v22 = vld [vmem:[%s2619_s30 + $0x109] sm:$0xff] }
  0x23   : > { %v2727_v23 = vld [vmem:[%s2619_s30 + $0xf9] sm:$0xff]  ;;  %v2739_v25 = vld [vmem:[%s2619_s30 + $0x129] sm:$0xff]  ;;  %v2742_v26 = vld [vmem:[%s2619_s30 + $0x121] sm:$0xff] }
  0x24   : > { %523 = vrot.lane.b32.xlu2 %v2634_v3, %s2530_s4  ;;  %519 = vrot.lane.b32.xlu1 %v2637_v4, %s2530_s4  ;;  %v2736_v24 = vld [vmem:[%s2619_s30 + $0x139] sm:$0xff]  ;;  %v2754_v28 = vld [vmem:[%s2619_s30 + $0x151] sm:$0xff] }
  0x25   : > { %515 = vrot.lane.b32.xlu0 %v220_v5, %s2530_s4  ;;  %v2751_v27 = vld [vmem:[%s2619_s30 + $0x159] sm:$0xff]  ;;  %v2757_v29 = vld [vmem:[%s2619_s30 + $0x141] sm:$0xff]  ;;  %v2767_v31 = vld [vmem:[%s2619_s30 + $0x171] sm:$0xff] }
  0x26   : > { %v251_v30 = vld [vmem:[%s2619_s30 + $0x2] sm:$0xff]  ;;  %v2781_v34 = vld [vmem:[%s2619_s30 + $0x1a] sm:$0xff]  ;;  %v252_v35 = vld [vmem:[%s2619_s30 + $0xa] sm:$0xff] }
  0x27   : > { %v2770_v32 = vld [vmem:[%s2619_s30 + $0x169] sm:$0xff]  ;;  %v2795_v38 = vld [vmem:[%s2619_s30 + $0x3a] sm:$0xff]  ;;  %v2798_v39 = vld [vmem:[%s2619_s30 + $0x32] sm:$0xff] }
  0x28   : > { %v2778_v33 = vld [vmem:[%s2619_s30 + $0x22] sm:$0xff]  ;;  %v2792_v37 = vld [vmem:[%s2619_s30 + $0x4a] sm:$0xff]  ;;  %v2815_v43 = vld [vmem:[%s2619_s30 + $0x52] sm:$0xff] }
  0x29   : > { %v2809_v41 = vld [vmem:[%s2619_s30 + $0x6a] sm:$0xff]  ;;  %v2812_v42 = vld [vmem:[%s2619_s30 + $0x62] sm:$0xff]  ;;  %v2826_v45 = vld [vmem:[%s2619_s30 + $0x92] sm:$0xff] }
  0x2a   : > { %v2829_v46 = vld [vmem:[%s2619_s30 + $0x82] sm:$0xff]  ;;  %v2832_v47 = vld [vmem:[%s2619_s30 + $0x7a] sm:$0xff]  ;;  %v2847_v51 = vld [vmem:[%s2619_s30 + $0xb2] sm:$0xff] }
  0x2b   : > { %v2850_v52 = vld [vmem:[%s2619_s30 + $0xaa] sm:$0xff]  ;;  %v2853_v53 = vld [vmem:[%s2619_s30 + $0x9a] sm:$0xff]  ;;  %v2874_v59 = vld [vmem:[%s2619_s30 + $0xc2] sm:$0xff] }
  0x2c   : > { %529 = vrot.lane.b32.xlu2 %v2646_v6, %s2530_s4  ;;  %527 = vrot.lane.b32.xlu1 %v2649_v7, %s2530_s4  ;;  %v2868_v57 = vld [vmem:[%s2619_s30 + $0xda] sm:$0xff]  ;;  %v2871_v58 = vld [vmem:[%s2619_s30 + $0xca] sm:$0xff] }
  0x2d   : > { %525 = vrot.lane.b32.xlu0 %v2652_v8, %s2530_s4  ;;  %v2889_v63 = vld [vmem:[%s2619_s30 + $0xfa] sm:$0xff]  ;;  %v2892_v2 = vld [vmem:[%s2619_s30 + $0xf2] sm:$0xff]  ;;  %v2895_v5 = vld [vmem:[%s2619_s30 + $0xe2] sm:$0xff] }
  0x34   : > { %535 = vrot.lane.b32.xlu2 %v2661_v9, %s2530_s4  ;;  %533 = vrot.lane.b32.xlu1 %v2664_v10, %s2530_s4 }
  0x35   : > { %531 = vrot.lane.b32.xlu0 %v2667_v11, %s2530_s4 }
  0x3c   : > { %541 = vrot.lane.b32.xlu2 %v2676_v12, %s2530_s4  ;;  %539 = vrot.lane.b32.xlu1 %v2679_v13, %s2530_s4 }
  0x3d   : > { %537 = vrot.lane.b32.xlu0 %v2682_v14, %s2530_s4 }
  0x44   : > { %547 = vrot.lane.b32.xlu2 %v2691_v15, %s2530_s4  ;;  %545 = vrot.lane.b32.xlu1 %v2694_v16, %s2530_s4 }
  0x45   : > { %543 = vrot.lane.b32.xlu0 %v2697_v17, %s2530_s4 }
  0x4c   : > { %553 = vrot.lane.b32.xlu2 %v2706_v18, %s2530_s4  ;;  %551 = vrot.lane.b32.xlu1 %v2709_v19, %s2530_s4 }
  0x4d   : > { %549 = vrot.lane.b32.xlu0 %v2712_v20, %s2530_s4 }
  0x54   : > { %559 = vrot.lane.b32.xlu2 %v2721_v21, %s2530_s4  ;;  %557 = vrot.lane.b32.xlu1 %v2724_v22, %s2530_s4 }
  0x55   : > { %555 = vrot.lane.b32.xlu0 %v2727_v23, %s2530_s4 }
  0x5c   : > { %565 = vrot.lane.b32.xlu2 %v2736_v24, %s2530_s4  ;;  %563 = vrot.lane.b32.xlu1 %v2739_v25, %s2530_s4 }
  0x5d   : > { %561 = vrot.lane.b32.xlu0 %v2742_v26, %s2530_s4 }
  0x64   : > { %571 = vrot.lane.b32.xlu2 %v2751_v27, %s2530_s4  ;;  %569 = vrot.lane.b32.xlu1 %v2754_v28, %s2530_s4 }
  0x65   : > { %567 = vrot.lane.b32.xlu0 %v2757_v29, %s2530_s4 }
  0x6c   : > { %641 = vrot.lane.b32.xlu2 %v251_v30, %s2531_s5  ;;  %575 = vrot.lane.b32.xlu1 %v2767_v31, %s2530_s4 }
  0x6d   : > { %573 = vrot.lane.b32.xlu0 %v2770_v32, %s2530_s4 }
  0x74   : > { %647 = vrot.lane.b32.xlu2 %v2778_v33, %s2531_s5  ;;  %645 = vrot.lane.b32.xlu1 %v2781_v34, %s2531_s5 }
  0x75   : > { %643 = vrot.lane.b32.xlu0 %v252_v35, %s2531_s5 }
  0x76   : > { %v2789_v36 = vpop.permute.xlu2 %521 }
  0x77   : > { %4444 = vst [vmem:[#allocation5_spill] sm:$0xff] %v2789_v36  ;;  %v2934_v36 = vld [vmem:[%s2619_s30 + $0x13a] sm:$0xff] }
  0x7c   : > { %653 = vrot.lane.b32.xlu2 %v2792_v37, %s2531_s5  ;;  %651 = vrot.lane.b32.xlu1 %v2795_v38, %s2531_s5 }
  0x7d   : > { %649 = vrot.lane.b32.xlu0 %v2798_v39, %s2531_s5 }
  0x7e   : > { %v2806_v40 = vpop.permute.xlu2 %523 }
  0x7f   : > { %4445 = vst [vmem:[#allocation6_spill] sm:$0xff] %v2806_v40  ;;  %v2913_v40 = vld [vmem:[%s2619_s30 + $0x112] sm:$0xff] }
  0x84   : > { %659 = vrot.lane.b32.xlu2 %v2809_v41, %s2531_s5  ;;  %657 = vrot.lane.b32.xlu1 %v2812_v42, %s2531_s5 }
  0x85   : > { %655 = vrot.lane.b32.xlu0 %v2815_v43, %s2531_s5 }
  0x86   : > { %v2823_v44 = vpop.permute.xlu2 %529 }
  0x87   : > { %4446 = vst [vmem:[#allocation7_spill] sm:$0xff] %v2823_v44 }
  0x8c   : > { %665 = vrot.lane.b32.xlu2 %v2826_v45, %s2531_s5  ;;  %663 = vrot.lane.b32.xlu1 %v2829_v46, %s2531_s5 }
  0x8d   : > { %661 = vrot.lane.b32.xlu0 %v2832_v47, %s2531_s5 }
  0x8e   : > { %v2840_v48 = vpop.permute.xlu2 %535  ;;  %v2842_v49 = vpop.permute.xlu1 %517 }
  0x8f   : > { %4447 = vst [vmem:[#allocation8_spill] sm:$0xff] %v2840_v48  ;;  %v2844_v50 = vpop.permute.xlu0 %513  ;;  %v2910_v48 = vld [vmem:[%s2619_s30 + $0x122] sm:$0xff] }
  0x90   : > { %4448 = vst [vmem:[#allocation9_spill] sm:$0xff] %v2842_v49  ;;  %v2973_v49 = vld [vmem:[%s2619_s30 + $0x172] sm:$0xff] }
  0x91   : > { %4449 = vst [vmem:[#allocation10_spill] sm:$0xff] %v2844_v50 }
  0x92   : > { %4472 = vst [vmem:[#allocation33_spill] sm:$0xff] %v2973_v49 }
  0x94   : > { %671 = vrot.lane.b32.xlu2 %v2847_v51, %s2531_s5  ;;  %669 = vrot.lane.b32.xlu1 %v2850_v52, %s2531_s5 }
  0x95   : > { %667 = vrot.lane.b32.xlu0 %v2853_v53, %s2531_s5 }
  0x96   : > { %v2861_v54 = vpop.permute.xlu2 %541  ;;  %v2863_v55 = vpop.permute.xlu1 %519 }
  0x97   : > { %4450 = vst [vmem:[#allocation11_spill] sm:$0xff] %v2861_v54  ;;  %v2865_v56 = vpop.permute.xlu0 %515  ;;  %v2958_v54 = vld [vmem:[%s2619_s30 + $0x152] sm:$0xff] }
  0x98   : > { %4451 = vst [vmem:[#allocation12_spill] sm:$0xff] %v2863_v55  ;;  %v2976_v55 = vld [vmem:[%s2619_s30 + $0x18] sm:$0xff] }
  0x99   : > { %4452 = vst [vmem:[#allocation13_spill] sm:$0xff] %v2865_v56  ;;  %v2937_v56 = vld [vmem:[%s2619_s30 + $0x12a] sm:$0xff] }
  0x9a   : > { %4468 = vst [vmem:[#allocation29_spill] sm:$0xff] %v2958_v54 }
  0x9b   : > { %4473 = vst [vmem:[#allocation34_spill] sm:$0xff] %v2976_v55 }
  0x9c   : > { %677 = vrot.lane.b32.xlu2 %v2868_v57, %s2531_s5  ;;  %675 = vrot.lane.b32.xlu1 %v2871_v58, %s2531_s5 }
  0x9d   : > { %673 = vrot.lane.b32.xlu0 %v2874_v59, %s2531_s5 }
  0x9e   : > { %v2882_v60 = vpop.permute.xlu2 %547  ;;  %v2884_v61 = vpop.permute.xlu1 %527 }
  0x9f   : > { %4453 = vst [vmem:[#allocation14_spill] sm:$0xff] %v2882_v60  ;;  %v2886_v62 = vpop.permute.xlu0 %525  ;;  %v2952_v60 = vld [vmem:[%s2619_s30 + $0x16a] sm:$0xff] }
  0xa0   : > { %4454 = vst [vmem:[#allocation15_spill] sm:$0xff] %v2884_v61  ;;  %v2931_v61 = vld [vmem:[%s2619_s30 + $0x142] sm:$0xff] }
  0xa1   : > { %4455 = vst [vmem:[#allocation16_spill] sm:$0xff] %v2886_v62  ;;  %v2916_v62 = vld [vmem:[%s2619_s30 + $0x10a] sm:$0xff] }
  0xa2   : > { %4462 = vst [vmem:[#allocation23_spill] sm:$0xff] %v2931_v61 }
  0xa3   : > { %4466 = vst [vmem:[#allocation27_spill] sm:$0xff] %v2952_v60 }
  0xa4   : > { %683 = vrot.lane.b32.xlu2 %v2889_v63, %s2531_s5  ;;  %681 = vrot.lane.b32.xlu1 %v2892_v2, %s2531_s5 }
  0xa5   : > { %679 = vrot.lane.b32.xlu0 %v2895_v5, %s2531_s5 }
  0xa6   : > { %v2903_v30 = vpop.permute.xlu2 %553  ;;  %v2905_v35 = vpop.permute.xlu1 %533 }
  0xa7   : > { %4456 = vst [vmem:[#allocation17_spill] sm:$0xff] %v2903_v30  ;;  %v2907_v44 = vpop.permute.xlu0 %531 }
  0xa8   : > { %4457 = vst [vmem:[#allocation18_spill] sm:$0xff] %v2905_v35 }
  0xa9   : > { %4458 = vst [vmem:[#allocation19_spill] sm:$0xff] %v2907_v44 }
  0xac   : > { %689 = vrot.lane.b32.xlu2 %v2910_v48, %s2531_s5  ;;  %687 = vrot.lane.b32.xlu1 %v2913_v40, %s2531_s5 }
  0xad   : > { %685 = vrot.lane.b32.xlu0 %v2916_v62, %s2531_s5 }
  0xae   : > { %v2924_v35 = vpop.permute.xlu2 %559  ;;  %v2926_v44 = vpop.permute.xlu1 %539 }
  0xaf   : > { %4459 = vst [vmem:[#allocation20_spill] sm:$0xff] %v2924_v35  ;;  %v2928_v50 = vpop.permute.xlu0 %537 }
  0xb0   : > { %4460 = vst [vmem:[#allocation21_spill] sm:$0xff] %v2926_v44  ;;  %v2955_v44 = vld [vmem:[%s2619_s30 + $0x15a] sm:$0xff] }
  0xb1   : > { %4461 = vst [vmem:[#allocation22_spill] sm:$0xff] %v2928_v50 }
  0xb2   : > { %4467 = vst [vmem:[#allocation28_spill] sm:$0xff] %v2955_v44 }
  0xb4   : > { %695 = vrot.lane.b32.xlu2 %v2931_v61, %s2531_s5  ;;  %693 = vrot.lane.b32.xlu1 %v2934_v36, %s2531_s5  ;;  %v192_v61 = vld [vmem:[%s2619_s30 + $0x38] sm:$0xff] }
  0xb5   : > { %691 = vrot.lane.b32.xlu0 %v2937_v56, %s2531_s5 }
  0xb6   : > { %v2945_v35 = vpop.permute.xlu2 %565  ;;  %v2947_v50 = vpop.permute.xlu1 %545 }
  0xb7   : > { %4463 = vst [vmem:[#allocation24_spill] sm:$0xff] %v2945_v35  ;;  %v2949_v30 = vpop.permute.xlu0 %543 }
  0xb8   : > { %4464 = vst [vmem:[#allocation25_spill] sm:$0xff] %v2947_v50 }
  0xb9   : > { %4465 = vst [vmem:[#allocation26_spill] sm:$0xff] %v2949_v30 }
  0xbc   : > { %701 = vrot.lane.b32.xlu2 %v2952_v60, %s2531_s5  ;;  %699 = vrot.lane.b32.xlu1 %v2955_v44, %s2531_s5  ;;  %v2979_v60 = vld [vmem:[%s2619_s30 + $0x20] sm:$0xff]  ;;  %v2998_v44 = vld [vmem:[%s2619_s30 + $0x30] sm:$0xff] }
  0xbd   : > { %697 = vrot.lane.b32.xlu0 %v2958_v54, %s2531_s5  ;;  %4474 = vst [vmem:[#allocation35_spill] sm:$0xff] %v2979_v60  ;;  %v2995_v54 = vld [vmem:[%s2619_s30 + $0x48] sm:$0xff] }
  0xbe   : > { %v2966_v35 = vpop.permute.xlu2 %571  ;;  %v2968_v50 = vpop.permute.xlu1 %551  ;;  %4478 = vst [vmem:[#allocation39_spill] sm:$0xff] %v2995_v54 }
  0xbf   : > { %4469 = vst [vmem:[#allocation30_spill] sm:$0xff] %v2966_v35  ;;  %v2970_v30 = vpop.permute.xlu0 %549 }
  0xc0   : > { %4470 = vst [vmem:[#allocation31_spill] sm:$0xff] %v2968_v50 }
  0xc1   : > { %4471 = vst [vmem:[#allocation32_spill] sm:$0xff] %v2970_v30 }
  0xc2   : > { %4479 = vst [vmem:[#allocation40_spill] sm:$0xff] %v2998_v44 }
  0xc4   : > { %771 = vrot.lane.b32.xlu2 %v2979_v60, %s2532_s6  ;;  %769 = vrot.lane.b32.xlu1 %v2976_v55, %s2532_s6  ;;  %v195_v55 = vld [vmem:[%s2619_s30 + $0x60] sm:$0xff]  ;;  %v3013_v60 = vld [vmem:[%s2619_s30 + $0x68] sm:$0xff] }
  0xc5   : > { %703 = vrot.lane.b32.xlu0 %v2973_v49, %s2531_s5  ;;  %4483 = vst [vmem:[#allocation44_spill] sm:$0xff] %v3013_v60  ;;  %v3016_v49 = vld [vmem:[%s2619_s30 + $0x50] sm:$0xff] }
  0xc6   : > { %v2987_v35 = vpop.permute.xlu2 %641  ;;  %v2989_v50 = vpop.permute.xlu1 %557  ;;  %4484 = vst [vmem:[#allocation45_spill] sm:$0xff] %v3016_v49 }
  0xc7   : > { %4475 = vst [vmem:[#allocation36_spill] sm:$0xff] %v2987_v35  ;;  %v2991_v30 = vpop.permute.xlu0 %555 }
  0xc8   : > { %4476 = vst [vmem:[#allocation37_spill] sm:$0xff] %v2989_v50 }
  0xc9   : > { %4477 = vst [vmem:[#allocation38_spill] sm:$0xff] %v2991_v30 }
  0xcc   : > { %777 = vrot.lane.b32.xlu2 %v2995_v54, %s2532_s6  ;;  %775 = vrot.lane.b32.xlu1 %v192_v61, %s2532_s6 }
  0xcd   : > { %773 = vrot.lane.b32.xlu0 %v2998_v44, %s2532_s6 }
  0xce   : > { %v3005_v35 = vpop.permute.xlu2 %647  ;;  %v3007_v50 = vpop.permute.xlu1 %563 }
  0xcf   : > { %4480 = vst [vmem:[#allocation41_spill] sm:$0xff] %v3005_v35  ;;  %v3009_v30 = vpop.permute.xlu0 %561  ;;  %v3034_v35 = vld [vmem:[%s2619_s30 + $0x78] sm:$0xff] }
  0xd0   : > { %4481 = vst [vmem:[#allocation42_spill] sm:$0xff] %v3007_v50  ;;  %v3031_v50 = vld [vmem:[%s2619_s30 + $0x90] sm:$0xff] }
  0xd1   : > { %4482 = vst [vmem:[#allocation43_spill] sm:$0xff] %v3009_v30  ;;  %v198_v30 = vld [vmem:[%s2619_s30 + $0x80] sm:$0xff] }
  0xd2   : > { %4488 = vst [vmem:[#allocation49_spill] sm:$0xff] %v3031_v50 }
  0xd3   : > { %4489 = vst [vmem:[#allocation50_spill] sm:$0xff] %v3034_v35 }
  0xd4   : > { %783 = vrot.lane.b32.xlu2 %v3013_v60, %s2532_s6  ;;  %781 = vrot.lane.b32.xlu1 %v195_v55, %s2532_s6  ;;  %v3048_v60 = vld [vmem:[%s2619_s30 + $0xa8] sm:$0xff] }
  0xd5   : > { %779 = vrot.lane.b32.xlu0 %v3016_v49, %s2532_s6  ;;  %4493 = vst [vmem:[#allocation54_spill] sm:$0xff] %v3048_v60  ;;  %v3054_v49 = vld [vmem:[%s2619_s30 + $0x98] sm:$0xff] }
  0xd6   : > { %v3023_v61 = vpop.permute.xlu2 %653  ;;  %v3025_v44 = vpop.permute.xlu1 %569  ;;  %4495 = vst [vmem:[#allocation56_spill] sm:$0xff] %v3054_v49 }
  0xd7   : > { %4485 = vst [vmem:[#allocation46_spill] sm:$0xff] %v3023_v61  ;;  %v3027_v54 = vpop.permute.xlu0 %567 }
  0xd8   : > { %4486 = vst [vmem:[#allocation47_spill] sm:$0xff] %v3025_v44 }
  0xd9   : > { %4487 = vst [vmem:[#allocation48_spill] sm:$0xff] %v3027_v54  ;;  %v3051_v54 = vld [vmem:[%s2619_s30 + $0xb0] sm:$0xff] }
  0xda   : > { %4494 = vst [vmem:[#allocation55_spill] sm:$0xff] %v3051_v54 }
  0xdc   : > { %789 = vrot.lane.b32.xlu2 %v3031_v50, %s2532_s6  ;;  %787 = vrot.lane.b32.xlu1 %v198_v30, %s2532_s6  ;;  %v3069_v50 = vld [vmem:[%s2619_s30 + $0xc8] sm:$0xff] }
  0xdd   : > { %785 = vrot.lane.b32.xlu0 %v3034_v35, %s2532_s6  ;;  %4499 = vst [vmem:[#allocation60_spill] sm:$0xff] %v3069_v50  ;;  %v3075_v35 = vld [vmem:[%s2619_s30 + $0xc0] sm:$0xff] }
  0xde   : > { %v3041_v55 = vpop.permute.xlu2 %659  ;;  %v3043_v61 = vpop.permute.xlu1 %575  ;;  %4501 = vst [vmem:[#allocation62_spill] sm:$0xff] %v3075_v35 }
  0xdf   : > { %4490 = vst [vmem:[#allocation51_spill] sm:$0xff] %v3041_v55  ;;  %v3045_v44 = vpop.permute.xlu0 %573 }
  0xe0   : > { %4491 = vst [vmem:[#allocation52_spill] sm:$0xff] %v3043_v61  ;;  %v3072_v61 = vld [vmem:[%s2619_s30 + $0xd8] sm:$0xff] }
  0xe1   : > { %4492 = vst [vmem:[#allocation53_spill] sm:$0xff] %v3045_v44 }
  0xe2   : > { %4500 = vst [vmem:[#allocation61_spill] sm:$0xff] %v3072_v61 }
  0xe4   : > { %795 = vrot.lane.b32.xlu2 %v3051_v54, %s2532_s6  ;;  %793 = vrot.lane.b32.xlu1 %v3048_v60, %s2532_s6  ;;  %v3090_v54 = vld [vmem:[%s2619_s30 + $0xf0] sm:$0xff] }
  0xe5   : > { %791 = vrot.lane.b32.xlu0 %v3054_v49, %s2532_s6  ;;  %4505 = vst [vmem:[#allocation66_spill] sm:$0xff] %v3090_v54  ;;  %v3096_v49 = vld [vmem:[%s2619_s30 + $0xe0] sm:$0xff] }
  0xe6   : > { %v3062_v30 = vpop.permute.xlu2 %665  ;;  %v3064_v55 = vpop.permute.xlu1 %645  ;;  %4507 = vst [vmem:[#allocation68_spill] sm:$0xff] %v3096_v49 }
  0xe7   : > { %4496 = vst [vmem:[#allocation57_spill] sm:$0xff] %v3062_v30  ;;  %v3066_v44 = vpop.permute.xlu0 %643 }
  0xe8   : > { %4497 = vst [vmem:[#allocation58_spill] sm:$0xff] %v3064_v55  ;;  %v3093_v55 = vld [vmem:[%s2619_s30 + $0xf8] sm:$0xff] }
  0xe9   : > { %4498 = vst [vmem:[#allocation59_spill] sm:$0xff] %v3066_v44 }
  0xea   : > { %4506 = vst [vmem:[#allocation67_spill] sm:$0xff] %v3093_v55 }
  0xec   : > { %801 = vrot.lane.b32.xlu2 %v3072_v61, %s2532_s6  ;;  %799 = vrot.lane.b32.xlu1 %v3069_v50, %s2532_s6  ;;  %v3111_v61 = vld [vmem:[%s2619_s30 + $0x110] sm:$0xff] }
  0xed   : > { %797 = vrot.lane.b32.xlu0 %v3075_v35, %s2532_s6  ;;  %4511 = vst [vmem:[#allocation72_spill] sm:$0xff] %v3111_v61  ;;  %v3117_v35 = vld [vmem:[%s2619_s30 + $0x108] sm:$0xff] }
  0xee   : > { %v3083_v30 = vpop.permute.xlu2 %671  ;;  %v3085_v44 = vpop.permute.xlu1 %651  ;;  %4513 = vst [vmem:[#allocation74_spill] sm:$0xff] %v3117_v35 }
  0xef   : > { %4502 = vst [vmem:[#allocation63_spill] sm:$0xff] %v3083_v30  ;;  %v3087_v60 = vpop.permute.xlu0 %649  ;;  %v3114_v30 = vld [vmem:[%s2619_s30 + $0x120] sm:$0xff] }
  0xf0   : > { %4503 = vst [vmem:[#allocation64_spill] sm:$0xff] %v3085_v44 }
  0xf1   : > { %4504 = vst [vmem:[#allocation65_spill] sm:$0xff] %v3087_v60 }
  0xf2   : > { %4512 = vst [vmem:[#allocation73_spill] sm:$0xff] %v3114_v30 }
  0xf4   : > { %807 = vrot.lane.b32.xlu2 %v3093_v55, %s2532_s6  ;;  %805 = vrot.lane.b32.xlu1 %v3090_v54, %s2532_s6  ;;  %v3132_v55 = vld [vmem:[%s2619_s30 + $0x138] sm:$0xff] }
  0xf5   : > { %803 = vrot.lane.b32.xlu0 %v3096_v49, %s2532_s6  ;;  %4517 = vst [vmem:[#allocation78_spill] sm:$0xff] %v3132_v55  ;;  %v3138_v49 = vld [vmem:[%s2619_s30 + $0x128] sm:$0xff] }
  0xf6   : > { %v3104_v44 = vpop.permute.xlu2 %677  ;;  %v3106_v60 = vpop.permute.xlu1 %657  ;;  %4519 = vst [vmem:[#allocation80_spill] sm:$0xff] %v3138_v49 }
  0xf7   : > { %4508 = vst [vmem:[#allocation69_spill] sm:$0xff] %v3104_v44  ;;  %v3108_v50 = vpop.permute.xlu0 %655  ;;  %v3135_v44 = vld [vmem:[%s2619_s30 + $0x140] sm:$0xff] }
  0xf8   : > { %4509 = vst [vmem:[#allocation70_spill] sm:$0xff] %v3106_v60 }
  0xf9   : > { %4510 = vst [vmem:[#allocation71_spill] sm:$0xff] %v3108_v50 }
  0xfa   : > { %4518 = vst [vmem:[#allocation79_spill] sm:$0xff] %v3135_v44 }
  0xfc   : > { %813 = vrot.lane.b32.xlu2 %v3114_v30, %s2532_s6  ;;  %811 = vrot.lane.b32.xlu1 %v3111_v61, %s2532_s6  ;;  %v3159_v30 = vld [vmem:[%s2619_s30 + $0x150] sm:$0xff] }
  0xfd   : > { %809 = vrot.lane.b32.xlu0 %v3117_v35, %s2532_s6  ;;  %v3156_v35 = vld [vmem:[%s2619_s30 + $0x168] sm:$0xff] }
  0xfe   : > { %v3125_v60 = vpop.permute.xlu2 %683  ;;  %v3127_v50 = vpop.permute.xlu1 %663  ;;  %4524 = vst [vmem:[#allocation85_spill] sm:$0xff] %v3156_v35 }
  0xff   : > { %4514 = vst [vmem:[#allocation75_spill] sm:$0xff] %v3125_v60  ;;  %v3129_v54 = vpop.permute.xlu0 %661  ;;  %v3153_v60 = vld [vmem:[%s2619_s30 + $0x158] sm:$0xff] }
 0x100   : > { %4515 = vst [vmem:[#allocation76_spill] sm:$0xff] %v3127_v50 }
 0x101   : > { %4516 = vst [vmem:[#allocation77_spill] sm:$0xff] %v3129_v54 }
 0x102   : > { %4523 = vst [vmem:[#allocation84_spill] sm:$0xff] %v3153_v60 }
 0x104   : > { %819 = vrot.lane.b32.xlu2 %v3135_v44, %s2532_s6  ;;  %817 = vrot.lane.b32.xlu1 %v3132_v55, %s2532_s6  ;;  %v2164_v44 = vld [vmem:[%s2619_s30 + $0x188] sm:$0xff] }
 0x105   : > { %815 = vrot.lane.b32.xlu0 %v3138_v49, %s2532_s6  ;;  %v3178_v49 = vld [vmem:[%s2619_s30 + $0x170] sm:$0xff] }
 0x106   : > { %v3146_v50 = vpop.permute.xlu2 %689  ;;  %v3148_v54 = vpop.permute.xlu1 %669 }
 0x107   : > { %4520 = vst [vmem:[#allocation81_spill] sm:$0xff] %v3146_v50  ;;  %v3150_v61 = vpop.permute.xlu0 %667  ;;  %v3175_v50 = vld [vmem:[%s2619_s30 + $0x180] sm:$0xff] }
 0x108   : > { %4521 = vst [vmem:[#allocation82_spill] sm:$0xff] %v3148_v54 }
 0x109   : > { %4522 = vst [vmem:[#allocation83_spill] sm:$0xff] %v3150_v61 }
 0x10a   : > { %4527 = vst [vmem:[#allocation88_spill] sm:$0xff] %v3175_v50 }
 0x10c   : > { %825 = vrot.lane.b32.xlu2 %v3156_v35, %s2532_s6  ;;  %823 = vrot.lane.b32.xlu1 %v3153_v60, %s2532_s6 }
 0x10d   : > { %821 = vrot.lane.b32.xlu0 %v3159_v30, %s2532_s6 }
 0x10e   : > { %v3167_v55 = vpop.permute.xlu2 %695  ;;  %v3169_v54 = vpop.permute.xlu1 %675 }
 0x10f   : > { %4525 = vst [vmem:[#allocation86_spill] sm:$0xff] %v3169_v54  ;;  %v3171_v61 = vpop.permute.xlu0 %673 }
 0x110   : > { %4526 = vst [vmem:[#allocation87_spill] sm:$0xff] %v3171_v61 }
 0x114   : > { %831 = vrot.lane.b32.xlu2 %v2164_v44, %s2532_s6  ;;  %829 = vrot.lane.b32.xlu1 %v3175_v50, %s2532_s6 }
 0x115   : > { %827 = vrot.lane.b32.xlu0 %v3178_v49, %s2532_s6  ;;  %s2470_s6 = scalar_lea.hbm %s4395_s3, 512 }
 0x116   : > { %v3185_v60 = vpop.permute.xlu2 %701  ;;  %v3187_v35 = vpop.permute.xlu1 %681 }
 0x117   : > { %v3189_v54 = vpop.permute.xlu0 %679 }
 0x11c   : > { %901 = vrot.lane.b32.xlu2 %v2622_v0, %s2533_s7  ;;  %899 = vrot.lane.b32.xlu1 %v2637_v4, %s2533_s7 }
 0x11d   : > { %897 = vrot.lane.b32.xlu0 %v2625_v1, %s2533_s7 }
 0x11e   : > { %v3197_v44 = vpop.permute.xlu2 %771  ;;  %v3199_v50 = vpop.permute.xlu1 %687 }
 0x11f   : > { %v3201_v61 = vpop.permute.xlu0 %685 }
 0x124   : > { %907 = vrot.lane.b32.xlu2 %v2649_v7, %s2533_s7  ;;  %905 = vrot.lane.b32.xlu1 %v2652_v8, %s2533_s7 }
 0x125   : > { %903 = vrot.lane.b32.xlu0 %v2634_v3, %s2533_s7 }
 0x126   : > { %v3209_v0 = vpop.permute.xlu2 %777  ;;  %v3211_v4 = vpop.permute.xlu1 %693 }
 0x127   : > { %v3213_v1 = vpop.permute.xlu0 %691 }
 0x12c   : > { %913 = vrot.lane.b32.xlu2 %v2664_v10, %s2533_s7  ;;  %911 = vrot.lane.b32.xlu1 %v2667_v11, %s2533_s7 }
 0x12d   : > { %909 = vrot.lane.b32.xlu0 %v2646_v6, %s2533_s7 }
 0x12e   : > { %v3221_v7 = vpop.permute.xlu2 %783  ;;  %v3223_v8 = vpop.permute.xlu1 %699 }
 0x12f   : > { %v3225_v3 = vpop.permute.xlu0 %697 }
 0x134   : > { %919 = vrot.lane.b32.xlu2 %v2679_v13, %s2533_s7  ;;  %917 = vrot.lane.b32.xlu1 %v2682_v14, %s2533_s7 }
 0x135   : > { %915 = vrot.lane.b32.xlu0 %v2661_v9, %s2533_s7 }
 0x136   : > { %v3233_v10 = vpop.permute.xlu2 %789  ;;  %v3235_v11 = vpop.permute.xlu1 %769 }
 0x137   : > { %4528 = vst [vmem:[#allocation89_spill] sm:$0xff] %v3233_v10  ;;  %v3237_v6 = vpop.permute.xlu0 %703  ;;  %v4560_v10 = vld [vmem:[#allocation41_spill] sm:$0xff] }
 0x138   : > { %4529 = vst [vmem:[#allocation90_spill] sm:$0xff] %v3235_v11 }
 0x13c   : > { %925 = vrot.lane.b32.xlu2 %v2694_v16, %s2533_s7  ;;  %923 = vrot.lane.b32.xlu1 %v2697_v17, %s2533_s7 }
 0x13d   : > { %921 = vrot.lane.b32.xlu0 %v2676_v12, %s2533_s7 }
 0x13e   : > { %v3245_v13 = vpop.permute.xlu2 %795  ;;  %v3247_v14 = vpop.permute.xlu1 %775 }
 0x13f   : > { %v3249_v9 = vpop.permute.xlu0 %773 }
 0x144   : > { %931 = vrot.lane.b32.xlu2 %v2709_v19, %s2533_s7  ;;  %929 = vrot.lane.b32.xlu1 %v2712_v20, %s2533_s7 }
 0x145   : > { %927 = vrot.lane.b32.xlu0 %v2691_v15, %s2533_s7 }
 0x146   : > { %v3257_v16 = vpop.permute.xlu2 %801  ;;  %v3259_v17 = vpop.permute.xlu1 %781 }
 0x147   : > { %4530 = vst [vmem:[#allocation91_spill] sm:$0xff] %v3259_v17  ;;  %v3261_v12 = vpop.permute.xlu0 %779  ;;  %v2233_v17 = vld [vmem:[%s2619_s30 + $0x60] sm:$0xff] }
 0x148   : > { %4531 = vst [vmem:[#allocation92_spill] sm:$0xff] %v3261_v12  ;;  %v3453_v12 = vld [vmem:[%s2619_s30 + $0x18a] sm:$0xff] }
 0x14c   : > { %937 = vrot.lane.b32.xlu2 %v2724_v22, %s2533_s7  ;;  %935 = vrot.lane.b32.xlu1 %v2727_v23, %s2533_s7 }
 0x14d   : > { %933 = vrot.lane.b32.xlu0 %v2706_v18, %s2533_s7 }
 0x14e   : > { %v3269_v19 = vpop.permute.xlu2 %807  ;;  %v3271_v20 = vpop.permute.xlu1 %787 }
 0x14f   : > { %4532 = vst [vmem:[#allocation93_spill] sm:$0xff] %v3271_v20  ;;  %v3273_v15 = vpop.permute.xlu0 %785  ;;  %v3312_v20 = vld [vmem:[%s2619_s30 + $0x189] sm:$0xff] }
 0x150   : > { %4533 = vst [vmem:[#allocation94_spill] sm:$0xff] %v3273_v15  ;;  %v3315_v15 = vld [vmem:[%s2619_s30 + $0x181] sm:$0xff] }
 0x151   : > { %4537 = vst [vmem:[#allocation98_spill] sm:$0xff] %v3312_v20 }
 0x152   : > { %4538 = vst [vmem:[#allocation99_spill] sm:$0xff] %v3315_v15 }
 0x154   : > { %943 = vrot.lane.b32.xlu2 %v2739_v25, %s2533_s7  ;;  %941 = vrot.lane.b32.xlu1 %v2742_v26, %s2533_s7 }
 0x155   : > { %939 = vrot.lane.b32.xlu0 %v2721_v21, %s2533_s7 }
 0x156   : > { %v3281_v22 = vpop.permute.xlu2 %813  ;;  %v3283_v18 = vpop.permute.xlu1 %793 }
 0x157   : > { %4534 = vst [vmem:[#allocation95_spill] sm:$0xff] %v3283_v18  ;;  %v3285_v23 = vpop.permute.xlu0 %791 }
 0x158   : > { %4535 = vst [vmem:[#allocation96_spill] sm:$0xff] %v3285_v23  ;;  %v3436_v23 = vld [vmem:[%s2619_s30 + $0x182] sm:$0xff] }
 0x15c   : > { %949 = vrot.lane.b32.xlu2 %v2754_v28, %s2533_s7  ;;  %947 = vrot.lane.b32.xlu1 %v2757_v29, %s2533_s7 }
 0x15d   : > { %945 = vrot.lane.b32.xlu0 %v2736_v24, %s2533_s7 }
 0x15e   : > { %v3293_v25 = vpop.permute.xlu2 %819  ;;  %v3295_v21 = vpop.permute.xlu1 %799 }
 0x15f   : > { %v3297_v26 = vpop.permute.xlu0 %797 }
 0x164   : > { %955 = vrot.lane.b32.xlu2 %v2767_v31, %s2533_s7  ;;  %953 = vrot.lane.b32.xlu1 %v2770_v32, %s2533_s7 }
 0x165   : > { %951 = vrot.lane.b32.xlu0 %v2751_v27, %s2533_s7 }
 0x166   : > { %v3305_v28 = vpop.permute.xlu2 %825  ;;  %v3307_v29 = vpop.permute.xlu1 %805 }
 0x167   : > { %4536 = vst [vmem:[#allocation97_spill] sm:$0xff] %v3305_v28  ;;  %v3309_v24 = vpop.permute.xlu0 %803  ;;  %v4564_v28 = vld [vmem:[#allocation43_spill] sm:$0xff] }
 0x16c   : > { %1025 = vrot.lane.b32.xlu2 %v2781_v34, %s2534_s8  ;;  %959 = vrot.lane.b32.xlu1 %v3312_v20, %s2533_s7 }
 0x16d   : > { %957 = vrot.lane.b32.xlu0 %v3315_v15, %s2533_s7 }
 0x16e   : > { %v3323_v27 = vpop.permute.xlu2 %831  ;;  %v3325_v31 = vpop.permute.xlu1 %811 }
 0x16f   : > { %v3327_v32 = vpop.permute.xlu0 %809 }
 0x174   : > { %1031 = vrot.lane.b32.xlu2 %v2795_v38, %s2534_s8  ;;  %1029 = vrot.lane.b32.xlu1 %v2798_v39, %s2534_s8 }
 0x175   : > { %1027 = vrot.lane.b32.xlu0 %v2778_v33, %s2534_s8 }
 0x176   : > { %v3335_v34 = vpop.permute.xlu2 %901  ;;  %v3337_v20 = vpop.permute.xlu1 %817 }
 0x177   : > { %v3339_v15 = vpop.permute.xlu0 %815 }
 0x17c   : > { %1037 = vrot.lane.b32.xlu2 %v2812_v42, %s2534_s8  ;;  %1035 = vrot.lane.b32.xlu1 %v2815_v43, %s2534_s8 }
 0x17d   : > { %1033 = vrot.lane.b32.xlu0 %v2792_v37, %s2534_s8 }
 0x17e   : > { %v3347_v38 = vpop.permute.xlu2 %907  ;;  %v3349_v39 = vpop.permute.xlu1 %823 }
 0x17f   : > { %4539 = vst [vmem:[#allocation100_spill] sm:$0xff] %v3347_v38  ;;  %v3351_v33 = vpop.permute.xlu0 %821  ;;  %v2230_v38 = vld [vmem:[%s2619_s30 + $0x38] sm:$0xff] }
 0x184   : > { %1043 = vrot.lane.b32.xlu2 %v2829_v46, %s2534_s8  ;;  %1041 = vrot.lane.b32.xlu1 %v2832_v47, %s2534_s8 }
 0x185   : > { %1039 = vrot.lane.b32.xlu0 %v2809_v41, %s2534_s8 }
 0x186   : > { %v3359_v42 = vpop.permute.xlu2 %913  ;;  %v3361_v43 = vpop.permute.xlu1 %829 }
 0x187   : > { %4540 = vst [vmem:[#allocation101_spill] sm:$0xff] %v3359_v42  ;;  %v3363_v37 = vpop.permute.xlu0 %827 }
 0x188   : > { %4541 = vst [vmem:[#allocation102_spill] sm:$0xff] %v3363_v37 }
 0x18c   : > { %1049 = vrot.lane.b32.xlu2 %v2850_v52, %s2534_s8  ;;  %1047 = vrot.lane.b32.xlu1 %v2853_v53, %s2534_s8 }
 0x18d   : > { %1045 = vrot.lane.b32.xlu0 %v2826_v45, %s2534_s8 }
 0x18e   : > { %v3371_v46 = vpop.permute.xlu2 %919  ;;  %v3373_v47 = vpop.permute.xlu1 %899 }
 0x18f   : > { %4542 = vst [vmem:[#allocation103_spill] sm:$0xff] %v3371_v46  ;;  %v3375_v41 = vpop.permute.xlu0 %897 }
 0x190   : > { %4543 = vst [vmem:[#allocation104_spill] sm:$0xff] %v3375_v41  ;;  %v4559_v41 = vld [vmem:[#allocation35_spill] sm:$0xff] }
 0x194   : > { %1055 = vrot.lane.b32.xlu2 %v2871_v58, %s2534_s8  ;;  %1053 = vrot.lane.b32.xlu1 %v2874_v59, %s2534_s8 }
 0x195   : > { %1051 = vrot.lane.b32.xlu0 %v2847_v51, %s2534_s8 }
 0x196   : > { %v3383_v52 = vpop.permute.xlu2 %925  ;;  %v3385_v53 = vpop.permute.xlu1 %905 }
 0x197   : > { %v904_v45 = vpop.permute.xlu0 %903 }
 0x19c   : > { %1061 = vrot.lane.b32.xlu2 %v2892_v2, %s2534_s8  ;;  %1059 = vrot.lane.b32.xlu1 %v2895_v5, %s2534_s8  ;;  %v4549_v5 = vld [vmem:[#allocation28_spill] sm:$0xff] }
 0x19d   : > { %1057 = vrot.lane.b32.xlu0 %v2868_v57, %s2534_s8  ;;  %4552 = vst [vmem:[#allocation28_spill] sm:$0xff] %v3436_v23 }
 0x19e   : > { %v3393_v58 = vpop.permute.xlu2 %931  ;;  %v3395_v59 = vpop.permute.xlu1 %911 }
 0x19f   : > { %4544 = vst [vmem:[#allocation105_spill] sm:$0xff] %v3395_v59  ;;  %v3397_v42 = vpop.permute.xlu0 %909  ;;  %v4565_v59 = vld [vmem:[#allocation73_spill] sm:$0xff] }
 0x1a0   : > { %4545 = vst [vmem:[#allocation106_spill] sm:$0xff] %v3397_v42  ;;  %v2229_v42 = vld [vmem:[%s2619_s30 + $0x30] sm:$0xff]  ;;  %v1530_v37 = vsel %vm1505_vm0, %v4565_v59, %v4564_v28 }
 0x1a4   : > { %1067 = vrot.lane.b32.xlu2 %v2913_v40, %s2534_s8  ;;  %1065 = vrot.lane.b32.xlu1 %v2916_v62, %s2534_s8 }
 0x1a5   : > { %1063 = vrot.lane.b32.xlu0 %v2889_v63, %s2534_s8 }
 0x1a6   : > { %v3405_v51 = vpop.permute.xlu2 %937  ;;  %v3407_v2 = vpop.permute.xlu1 %917 }
 0x1a7   : > { %4546 = vst [vmem:[#allocation107_spill] sm:$0xff] %v3407_v2  ;;  %v3409_v57 = vpop.permute.xlu0 %915  ;;  %v4558_v2 = vld [vmem:[#allocation12_spill] sm:$0xff] }
 0x1a8   : > { %4547 = vst [vmem:[#allocation108_spill] sm:$0xff] %v3409_v57  ;;  %v1509_v11 = vsel %vm1505_vm0, %v4559_v41, %v4558_v2  ;;  %v4567_v2 = vld [vmem:[#allocation81_spill] sm:$0xff] }
 0x1ac   : > { %1073 = vrot.lane.b32.xlu2 %v2934_v36, %s2534_s8  ;;  %1071 = vrot.lane.b32.xlu1 %v2937_v56, %s2534_s8  ;;  %v4550_v36 = vld [vmem:[#allocation29_spill] sm:$0xff]  ;;  %v4551_v56 = vld [vmem:[#allocation23_spill] sm:$0xff] }
 0x1ad   : > { %1069 = vrot.lane.b32.xlu0 %v2910_v48, %s2534_s8  ;;  %4556 = vst [vmem:[#allocation23_spill] sm:$0xff] %v3453_v12 }
 0x1ae   : > { %v3417_v40 = vpop.permute.xlu2 %943  ;;  %v3419_v62 = vpop.permute.xlu1 %923 }
 0x1af   : > { %v3421_v63 = vpop.permute.xlu0 %921 }
 0x1b0   : > { %4548 = vst [vmem:[#allocation109_spill] sm:$0xff] %v3421_v63  ;;  %v4553_v63 = vld [vmem:[#allocation33_spill] sm:$0xff] }
 0x1b4   : > { %1079 = vrot.lane.b32.xlu2 %v4549_v5, %s2534_s8  ;;  %1077 = vrot.lane.b32.xlu1 %v4550_v36, %s2534_s8  ;;  %v4554_v5 = vld [vmem:[#allocation27_spill] sm:$0xff] }
 0x1b5   : > { %1075 = vrot.lane.b32.xlu0 %v4551_v56, %s2534_s8 }
 0x1b6   : > { %v3429_v57 = vpop.permute.xlu2 %949  ;;  %v3431_v48 = vpop.permute.xlu1 %929 }
 0x1b7   : > { %v3433_v46 = vpop.permute.xlu0 %927 }
 0x1bc   : > { %1085 = vrot.lane.b32.xlu2 %v3436_v23, %s2534_s8  ;;  %1083 = vrot.lane.b32.xlu1 %v4553_v63, %s2534_s8 }
 0x1bd   : > { %1081 = vrot.lane.b32.xlu0 %v4554_v5, %s2534_s8 }
 0x1be   : > { %v3444_v36 = vpop.permute.xlu2 %955  ;;  %v3446_v56 = vpop.permute.xlu1 %935 }
 0x1bf   : > { %4555 = vst [vmem:[#allocation29_spill] sm:$0xff] %v3444_v36  ;;  %v3448_v18 = vpop.permute.xlu0 %933  ;;  %v4562_v36 = vld [vmem:[#allocation80_spill] sm:$0xff] }
 0x1c4   : > { %1155 = vrot.lane.b32.xlu2 %v2230_v38, %s2535_s9  ;;  %1153 = vrot.lane.b32.xlu1 %v2229_v42, %s2535_s9  ;;  %v1542_v38 = vsel %vm1538_vm1, %v1509_v11, %v4560_v10  ;;  %v4561_v42 = vld [vmem:[#allocation42_spill] sm:$0xff]  ;;  %v4566_v11 = vld [vmem:[#allocation39_spill] sm:$0xff] }
 0x1c5   : > { %1087 = vrot.lane.b32.xlu0 %v3453_v12, %s2534_s8  ;;  %v1531_v12 = vsel %vm1505_vm0, %v4562_v36, %v4561_v42  ;;  %v1575_v10 = vsel %vm1571_vm2, %v1542_v38, %v3247_v14 }
 0x1c6   : > { %v3459_v63 = vpop.permute.xlu2 %1025  ;;  %v3461_v5 = vpop.permute.xlu1 %941  ;;  %v1564_v41 = vsel %vm1538_vm1, %v1531_v12, %v3213_v1  ;;  %v1608_v42 = vsel %vm1604_vm3, %v1575_v10, %v904_v45  ;;  %v4568_v45 = vld [vmem:[#allocation50_spill] sm:$0xff]  ;;  %v4570_v10 = vld [vmem:[#allocation79_spill] sm:$0xff] }
 0x1c7   : > { %4557 = vst [vmem:[#allocation33_spill] sm:$0xff] %v3459_v63  ;;  %v3463_v23 = vpop.permute.xlu0 %939  ;;  %v4563_v63 = vld [vmem:[#allocation45_spill] sm:$0xff]  ;;  %v1597_v36 = vsel %vm1571_vm2, %v1564_v41, %v3293_v25  ;;  %v4569_v41 = vld [vmem:[#allocation48_spill] sm:$0xff] }
 0x1c8   : > { %v2236_v25 = vld [vmem:[%s2619_s30 + $0x80] sm:$0xff] }
 0x1cc   : > { %1161 = vrot.lane.b32.xlu2 %v2233_v17, %s2535_s9  ;;  %1159 = vrot.lane.b32.xlu1 %v4563_v63, %s2535_s9  ;;  %v1563_v17 = vsel %vm1538_vm1, %v1530_v37, %v4567_v2  ;;  %v4571_v2 = vld [vmem:[#allocation44_spill] sm:$0xff] }
 0x1cd   : > { %1157 = vrot.lane.b32.xlu0 %v4566_v11, %s2535_s9  ;;  %v1596_v1 = vsel %vm1571_vm2, %v1563_v17, %v3337_v20  ;;  %v1533_v20 = vsel %vm1505_vm0, %v4570_v10, %v4569_v41  ;;  %v2277_v11 = vld [vmem:[%s2619_s30 + $0xf1] sm:$0xff] }
 0x1ce   : > { %v1032_v28 = vpop.permute.xlu2 %1031  ;;  %v948_v59 = vpop.permute.xlu1 %947  ;;  %v1566_v17 = vsel %vm1538_vm1, %v1533_v20, %v3167_v55  ;;  %v4574_v55 = vld [vmem:[#allocation56_spill] sm:$0xff]  ;;  %v4575_v20 = vld [vmem:[#allocation49_spill] sm:$0xff] }
 0x1cf   : > { %v3494_v14 = vsel %vm1637_vm4, %v1608_v42, %v1032_v28  ;;  %v3497_v12 = vsel %vm1604_vm3, %v1597_v36, %v948_v59  ;;  %v946_v38 = vpop.permute.xlu0 %945  ;;  %v1599_v28 = vsel %vm1571_vm2, %v1566_v17, %v3349_v39 }
 0x1d0   : > { %v3500_v37 = vsel %vm1604_vm3, %v1596_v1, %v946_v38  ;;  %v2239_v38 = vld [vmem:[%s2619_s30 + $0xa8] sm:$0xff] }
 0x1d4   : > { %1167 = vrot.lane.b32.xlu2 %v2236_v25, %s2535_s9  ;;  %1165 = vrot.lane.b32.xlu1 %v4568_v45, %s2535_s9  ;;  %v4573_v25 = vld [vmem:[#allocation52_spill] sm:$0xff] }
 0x1d5   : > { %1163 = vrot.lane.b32.xlu0 %v4571_v2, %s2535_s9  ;;  %v1537_v41 = vsel %vm1505_vm0, %v3178_v49, %v4573_v25  ;;  %v4578_v25 = vld [vmem:[#allocation34_spill] sm:$0xff] }
 0x1d6   : > { %v3513_v36 = vpop.permute.xlu2 %1037  ;;  %v3515_v42 = vpop.permute.xlu1 %953  ;;  %v1570_v10 = vsel %vm1538_vm1, %v1537_v41, %v3237_v6  ;;  %v4579_v41 = vld [vmem:[#allocation58_spill] sm:$0xff] }
 0x1d7   : > { %4572 = vst [vmem:[#allocation27_spill] sm:$0xff] %v3513_v36  ;;  %v952_v59 = vpop.permute.xlu0 %951  ;;  %v1603_v39 = vsel %vm1571_vm2, %v1570_v10, %v3323_v27  ;;  %v4580_v27 = vld [vmem:[#allocation62_spill] sm:$0xff] }
 0x1d8   : > { %v3520_v1 = vsel %vm1604_vm3, %v1599_v28, %v952_v59  ;;  %v2242_v59 = vld [vmem:[%s2619_s30 + $0xc8] sm:$0xff] }
 0x1dc   : > { %1173 = vrot.lane.b32.xlu2 %v2239_v38, %s2535_s9  ;;  %1171 = vrot.lane.b32.xlu1 %v4574_v55, %s2535_s9  ;;  %v4577_v38 = vld [vmem:[#allocation9_spill] sm:$0xff] }
 0x1dd   : > { %1169 = vrot.lane.b32.xlu0 %v4575_v20, %s2535_s9  ;;  %v1508_v6 = vsel %vm1505_vm0, %v4578_v25, %v4577_v38 }
 0x1de   : > { %v3535_v2 = vpop.permute.xlu2 %1043  ;;  %v960_v17 = vpop.permute.xlu1 %959  ;;  %v1541_v20 = vsel %vm1538_vm1, %v1508_v6, %v4579_v41  ;;  %v4584_v41 = vld [vmem:[#allocation26_spill] sm:$0xff] }
 0x1df   : > { %4576 = vst [vmem:[#allocation12_spill] sm:$0xff] %v3535_v2  ;;  %v3538_v49 = vsel %vm1604_vm3, %v1603_v39, %v960_v17  ;;  %v3540_v28 = vpop.permute.xlu0 %957  ;;  %v1574_v10 = vsel %vm1571_vm2, %v1541_v20, %v3249_v9  ;;  %v4581_v39 = vld [vmem:[#allocation55_spill] sm:$0xff] }
 0x1e0   : > { %v1607_v17 = vsel %vm1604_vm3, %v1574_v10, %v3335_v34  ;;  %v1521_v36 = vsel %vm1505_vm0, %v4581_v39, %v4584_v41  ;;  %v4585_v9 = vld [vmem:[#allocation63_spill] sm:$0xff]  ;;  %v4586_v34 = vld [vmem:[#allocation68_spill] sm:$0xff] }
 0x1e1   : > { %v1554_v20 = vsel %vm1538_vm1, %v1521_v36, %v4585_v9  ;;  %v4590_v41 = vld [vmem:[#allocation32_spill] sm:$0xff]  ;;  %v4591_v9 = vld [vmem:[#allocation69_spill] sm:$0xff] }
 0x1e2   : > { %v1587_v10 = vsel %vm1571_vm2, %v1554_v20, %v3295_v21 }
 0x1e4   : > { %1179 = vrot.lane.b32.xlu2 %v2242_v59, %s2535_s9  ;;  %1177 = vrot.lane.b32.xlu1 %v4580_v27, %s2535_s9  ;;  %v2245_v59 = vld [vmem:[%s2619_s30 + $0xf0] sm:$0xff] }
 0x1e5   : > { %1175 = vrot.lane.b32.xlu0 %v4581_v39, %s2535_s9 }
 0x1e6   : > { %v3557_v2 = vpop.permute.xlu2 %1049  ;;  %v1030_v38 = vpop.permute.xlu1 %1029 }
 0x1e7   : > { %4582 = vst [vmem:[#allocation35_spill] sm:$0xff] %v3557_v2  ;;  %v3560_v25 = vsel %vm1637_vm4, %v1607_v17, %v1030_v38  ;;  %v3562_v6 = vpop.permute.xlu0 %1027  ;;  %v4587_v17 = vld [vmem:[#allocation61_spill] sm:$0xff]  ;;  %v1620_v38 = vsel %vm1604_vm3, %v1587_v10, %v3433_v46  ;;  %v4592_v46 = vld [vmem:[#allocation74_spill] sm:$0xff] }
 0x1e8   : > { %4583 = vst [vmem:[#allocation41_spill] sm:$0xff] %v3560_v25  ;;  %v1524_v21 = vsel %vm1505_vm0, %v4587_v17, %v4590_v41  ;;  %v4597_v25 = vld [vmem:[#allocation75_spill] sm:$0xff] }
 0x1e9   : > { %v1557_v20 = vsel %vm1538_vm1, %v1524_v21, %v4591_v9  ;;  %v2309_v9 = vld [vmem:[%s2619_s30 + $0xf2] sm:$0xff] }
 0x1ea   : > { %v1590_v10 = vsel %vm1571_vm2, %v1557_v20, %v3307_v29  ;;  %v4596_v29 = vld [vmem:[#allocation38_spill] sm:$0xff] }
 0x1ec   : > { %1185 = vrot.lane.b32.xlu2 %v2245_v59, %s2535_s9  ;;  %1183 = vrot.lane.b32.xlu1 %v4586_v34, %s2535_s9 }
 0x1ed   : > { %1181 = vrot.lane.b32.xlu0 %v4587_v17, %s2535_s9 }
 0x1ee   : > { %v1056_v2 = vpop.permute.xlu2 %1055  ;;  %v3579_v39 = vpop.permute.xlu1 %1035 }
 0x1ef   : > { %4588 = vst [vmem:[#allocation42_spill] sm:$0xff] %v3579_v39  ;;  %v3582_v36 = vsel %vm1637_vm4, %v1620_v38, %v1056_v2  ;;  %v3584_v59 = vpop.permute.xlu0 %1033  ;;  %v4593_v2 = vld [vmem:[#allocation67_spill] sm:$0xff]  ;;  %v1623_v38 = vsel %vm1604_vm3, %v1590_v10, %v3448_v18 }
 0x1f0   : > { %4589 = vst [vmem:[#allocation80_spill] sm:$0xff] %v3582_v36  ;;  %v2285_v39 = vld [vmem:[%s2619_s30 + $0x151] sm:$0xff]  ;;  %v1527_v20 = vsel %vm1505_vm0, %v4593_v2, %v4596_v29 }
 0x1f1   : > { %v1560_v18 = vsel %vm1538_vm1, %v1527_v20, %v4597_v25  ;;  %v2261_v29 = vld [vmem:[%s2619_s30 + $0x31] sm:$0xff] }
 0x1f2   : > { %v2317_v20 = vld [vmem:[%s2619_s30 + $0x152] sm:$0xff] }
 0x1f4   : > { %1201 = vrot.lane.b32.xlu2 %v3159_v30, %s2535_s9  ;;  %1189 = vrot.lane.b32.xlu1 %v4592_v46, %s2535_s9 }
 0x1f5   : > { %1187 = vrot.lane.b32.xlu0 %v4593_v2, %s2535_s9 }
 0x1f6   : > { %v1062_v36 = vpop.permute.xlu2 %1061  ;;  %v3601_v17 = vpop.permute.xlu1 %1041 }
 0x1f7   : > { %4594 = vst [vmem:[#allocation45_spill] sm:$0xff] %v3601_v17  ;;  %v3604_v41 = vsel %vm1637_vm4, %v1623_v38, %v1062_v36  ;;  %v3606_v21 = vpop.permute.xlu0 %1039  ;;  %v1593_v36 = vsel %vm1571_vm2, %v1560_v18, %v3325_v31  ;;  %v4599_v17 = vld [vmem:[#allocation54_spill] sm:$0xff]  ;;  %v4600_v18 = vld [vmem:[#allocation21_spill] sm:$0xff] }
 0x1f8   : > { %4595 = vst [vmem:[#allocation43_spill] sm:$0xff] %v3604_v41  ;;  %v1626_v10 = vsel %vm1604_vm3, %v1593_v36, %v3463_v23  ;;  %v4601_v23 = vld [vmem:[#allocation82_spill] sm:$0xff] }
 0x1fc   : > { %1441 = vrot.lane.b32.xlu2 %v2309_v9, %s2536_s10  ;;  %1329 = vrot.lane.b32.xlu1 %v2285_v39, %s2537_s11  ;;  %v2269_v9 = vld [vmem:[%s2619_s30 + $0x91] sm:$0xff] }
 0x1fd   : > { %1313 = vrot.lane.b32.xlu0 %v2277_v11, %s2537_s11  ;;  %v4598_v39 = vld [vmem:[#allocation11_spill] sm:$0xff]  ;;  %v1519_v11 = vsel %vm1505_vm0, %v4574_v55, %v4600_v18 }
 0x1fe   : > { %v1068_v38 = vpop.permute.xlu2 %1067  ;;  %v3623_v41 = vpop.permute.xlu1 %1047  ;;  %v1520_v31 = vsel %vm1505_vm0, %v4599_v17, %v4598_v39 }
 0x1ff   : > { %v3626_v2 = vsel %vm1637_vm4, %v1626_v10, %v1068_v38  ;;  %v3628_v25 = vpop.permute.xlu0 %1045  ;;  %v1553_v36 = vsel %vm1538_vm1, %v1520_v31, %v4601_v23  ;;  %v4602_v10 = vld [vmem:[#allocation83_spill] sm:$0xff] }
 0x200   : > { %v1552_v38 = vsel %vm1538_vm1, %v1519_v11, %v4602_v10  ;;  %v1586_v17 = vsel %vm1571_vm2, %v1553_v36, %v3297_v26  ;;  %v2293_v23 = vld [vmem:[%s2619_s30 + $0x32] sm:$0xff] }
 0x201   : > { %v1585_v55 = vsel %vm1571_vm2, %v1552_v38, %v3245_v13  ;;  %v1619_v39 = vsel %vm1604_vm3, %v1586_v17, %v3383_v52  ;;  %v2301_v13 = vld [vmem:[%s2619_s30 + $0x92] sm:$0xff]  ;;  %v4603_v52 = vld [vmem:[#allocation14_spill] sm:$0xff]  ;;  %v4605_v17 = vld [vmem:[#allocation25_spill] sm:$0xff] }
 0x202   : > { %v2254_v36 = vld [vmem:[%s2619_s30 + $0x158] sm:$0xff] }
 0x203   : > { %v4604_v10 = vld [vmem:[#allocation60_spill] sm:$0xff] }
 0x204   : > { %1297 = vrot.lane.b32.xlu2 %v2269_v9, %s2537_s11  ;;  %1281 = vrot.lane.b32.xlu1 %v2261_v29, %s2537_s11  ;;  %v1618_v9 = vsel %vm1604_vm3, %v1585_v55, %v3419_v62  ;;  %v1523_v38 = vsel %vm1505_vm0, %v4604_v10, %v4603_v52  ;;  %v1522_v62 = vsel %vm1505_vm0, %v4580_v27, %v4605_v17  ;;  %v2278_v17 = vld [vmem:[%s2619_s30 + $0xf9] sm:$0xff] }
 0x205   : > { %1457 = vrot.lane.b32.xlu0 %v2317_v20, %s2536_s10 }
 0x206   : > { %v1074_v31 = vpop.permute.xlu2 %1073  ;;  %v1054_v18 = vpop.permute.xlu1 %1053 }
 0x207   : > { %v3656_v29 = vsel %vm1637_vm4, %v3500_v37, %v1074_v31  ;;  %v3659_v11 = vsel %vm1637_vm4, %v1619_v39, %v1054_v18  ;;  %v1052_v26 = vpop.permute.xlu0 %1051  ;;  %v4606_v37 = vld [vmem:[#allocation86_spill] sm:$0xff]  ;;  %v4607_v39 = vld [vmem:[#allocation87_spill] sm:$0xff] }
 0x208   : > { %v3662_v20 = vsel %vm1637_vm4, %v1618_v9, %v1052_v26  ;;  %v1556_v55 = vsel %vm1538_vm1, %v1523_v38, %v4606_v37  ;;  %v1555_v31 = vsel %vm1538_vm1, %v1522_v62, %v4607_v39  ;;  %v2286_v38 = vld [vmem:[%s2619_s30 + $0x159] sm:$0xff]  ;;  %v4609_v62 = vld [vmem:[#allocation66_spill] sm:$0xff]  ;;  %v4612_v39 = vld [vmem:[#allocation31_spill] sm:$0xff] }
 0x209   : > { %v1589_v18 = vsel %vm1571_vm2, %v1556_v55, %v3309_v24  ;;  %v1588_v27 = vsel %vm1571_vm2, %v1555_v31, %v3257_v16  ;;  %v2310_v16 = vld [vmem:[%s2619_s30 + $0xfa] sm:$0xff]  ;;  %v1525_v31 = vsel %vm1505_vm0, %v4586_v34, %v4612_v39 }
 0x20a   : > { %v1622_v9 = vsel %vm1604_vm3, %v1589_v18, %v3393_v58  ;;  %v4608_v58 = vld [vmem:[#allocation17_spill] sm:$0xff] }
 0x20b   : > { %v1526_v37 = vsel %vm1505_vm0, %v4609_v62, %v4608_v58  ;;  %v4610_v55 = vld [vmem:[#allocation53_spill] sm:$0xff] }
 0x20c   : > { %1425 = vrot.lane.b32.xlu2 %v2301_v13, %s2536_s10  ;;  %1409 = vrot.lane.b32.xlu1 %v2293_v23, %s2536_s10  ;;  %v1621_v13 = vsel %vm1604_vm3, %v1588_v27, %v3431_v48  ;;  %v4611_v48 = vld [vmem:[#allocation85_spill] sm:$0xff]  ;;  %v1559_v27 = vsel %vm1538_vm1, %v1526_v37, %v3187_v35  ;;  %v4614_v37 = vld [vmem:[#allocation20_spill] sm:$0xff] }
 0x20d   : > { %1203 = vrot.lane.b32.xlu0 %v2254_v36, %s2535_s9  ;;  %v4613_v58 = vld [vmem:[#allocation13_spill] sm:$0xff] }
 0x20e   : > { %v1080_v26 = vpop.permute.xlu2 %1079  ;;  %v1060_v52 = vpop.permute.xlu1 %1059  ;;  %v2318_v62 = vld [vmem:[%s2619_s30 + $0x15a] sm:$0xff] }
 0x20f   : > { %v3690_v23 = vsel %vm1637_vm4, %v3520_v1, %v1080_v26  ;;  %v3693_v10 = vsel %vm1637_vm4, %v1622_v9, %v1060_v52  ;;  %v1058_v24 = vpop.permute.xlu0 %1057  ;;  %v1536_v1 = vsel %vm1505_vm0, %v4611_v48, %v4610_v55  ;;  %v1558_v9 = vsel %vm1538_vm1, %v1525_v31, %v3189_v54  ;;  %v4615_v55 = vld [vmem:[#allocation72_spill] sm:$0xff]  ;;  %v4617_v31 = vld [vmem:[#allocation37_spill] sm:$0xff] }
 0x210   : > { %v3696_v36 = vsel %vm1637_vm4, %v1621_v13, %v1058_v24  ;;  %v1569_v18 = vsel %vm1538_vm1, %v1536_v1, %v3185_v60  ;;  %v1592_v26 = vsel %vm1571_vm2, %v1559_v27, %v3327_v32  ;;  %v1591_v60 = vsel %vm1571_vm2, %v1558_v9, %v3269_v19  ;;  %v188_v24 = vld [vmem:[%s2619_s30 + $0x8] sm:$0xff]  ;;  %v4616_v1 = vld [vmem:[#allocation59_spill] sm:$0xff] }
 0x211   : > { %v1602_v34 = vsel %vm1571_vm2, %v1569_v18, %v3361_v43  ;;  %v1625_v35 = vsel %vm1604_vm3, %v1592_v26, %v3405_v51  ;;  %v1624_v32 = vsel %vm1604_vm3, %v1591_v60, %v3446_v56  ;;  %v2270_v51 = vld [vmem:[%s2619_s30 + $0x99] sm:$0xff]  ;;  %v1529_v56 = vsel %vm1505_vm0, %v4615_v55, %v4614_v37 }
 0x212   : > { %v1635_v52 = vsel %vm1604_vm3, %v1602_v34, %v3540_v28  ;;  %v1507_v28 = vsel %vm1505_vm0, %v188_v24, %v4613_v58  ;;  %v1528_v18 = vsel %vm1505_vm0, %v4592_v46, %v4617_v31  ;;  %v1562_v9 = vsel %vm1538_vm1, %v1529_v56, %v3199_v50  ;;  %v4618_v24 = vld [vmem:[#allocation5_spill] sm:$0xff] }
 0x213   : > { %v1540_v39 = vsel %vm1538_vm1, %v1507_v28, %v4616_v1  ;;  %v1561_v26 = vsel %vm1538_vm1, %v1528_v18, %v3201_v61  ;;  %v1595_v34 = vsel %vm1571_vm2, %v1562_v9, %v3339_v15  ;;  %v2287_v18 = vld [vmem:[%s2619_s30 + $0x169] sm:$0xff] }
 0x214   : > { %1443 = vrot.lane.b32.xlu2 %v2310_v16, %s2536_s10  ;;  %1331 = vrot.lane.b32.xlu1 %v2286_v38, %s2537_s11  ;;  %v1573_v27 = vsel %vm1571_vm2, %v1540_v39, %v3197_v44  ;;  %v1594_v50 = vsel %vm1571_vm2, %v1561_v26, %v3281_v22  ;;  %v1628_v44 = vsel %vm1604_vm3, %v1595_v34, %v3417_v40  ;;  %v2294_v40 = vld [vmem:[%s2619_s30 + $0x3a] sm:$0xff]  ;;  %v4624_v9 = vld [vmem:[#allocation30_spill] sm:$0xff] }
 0x215   : > { %1315 = vrot.lane.b32.xlu0 %v2278_v17, %s2537_s11  ;;  %v2262_v17 = vld [vmem:[%s2619_s30 + $0x39] sm:$0xff]  ;;  %v1606_v46 = vsel %vm1604_vm3, %v1573_v27, %v3373_v47  ;;  %v1627_v61 = vsel %vm1604_vm3, %v1594_v50, %v3461_v5  ;;  %v4623_v27 = vld [vmem:[#allocation15_spill] sm:$0xff] }
 0x216   : > { %v1086_v54 = vpop.permute.xlu2 %1085  ;;  %v1066_v13 = vpop.permute.xlu1 %1065  ;;  %v1639_v60 = vsel %vm1637_vm4, %v1606_v46, %v3562_v6  ;;  %v4625_v26 = vld [vmem:[#allocation84_spill] sm:$0xff]  ;;  %v4626_v46 = vld [vmem:[#allocation71_spill] sm:$0xff] }
 0x217   : > { %v3733_v43 = vsel %vm1637_vm4, %v1635_v52, %v1086_v54  ;;  %v3736_v16 = vsel %vm1637_vm4, %v1625_v35, %v1066_v13  ;;  %v1064_v38 = vpop.permute.xlu0 %1063  ;;  %v2302_v13 = vld [vmem:[%s2619_s30 + $0x9a] sm:$0xff]  ;;  %v1535_v34 = vsel %vm1505_vm0, %v4625_v26, %v4624_v9  ;;  %v4639_v9 = vld [vmem:[#allocation107_spill] sm:$0xff] }
 0x218   : > { %v3739_v19 = vsel %vm1637_vm4, %v1624_v32, %v1064_v38  ;;  %v4619_v32 = vld [vmem:[#allocation40_spill] sm:$0xff] }
 0x219   : > { %v1510_v6 = vsel %vm1505_vm0, %v4619_v32, %v4618_v24  ;;  %v4620_v38 = vld [vmem:[#allocation24_spill] sm:$0xff] }
 0x21c   : > { %1299 = vrot.lane.b32.xlu2 %v2270_v51, %s2537_s11  ;;  %1283 = vrot.lane.b32.xlu1 %v2262_v17, %s2537_s11  ;;  %v4621_v51 = vld [vmem:[#allocation78_spill] sm:$0xff]  ;;  %v4622_v17 = vld [vmem:[#allocation65_spill] sm:$0xff] }
 0x21d   : > { %1459 = vrot.lane.b32.xlu0 %v2318_v62, %s2536_s10  ;;  %v1532_v5 = vsel %vm1505_vm0, %v4621_v51, %v4620_v38  ;;  %v1543_v58 = vsel %vm1538_vm1, %v1510_v6, %v4622_v17  ;;  %v187_v6 = vld [vmem:[%s2619_s30] sm:$0xff] }
 0x21e   : > { %v1156_v35 = vpop.permute.xlu2 %1155  ;;  %v1072_v52 = vpop.permute.xlu1 %1071  ;;  %v1576_v28 = vsel %vm1571_vm2, %v1543_v58, %v3209_v0  ;;  %v1565_v62 = vsel %vm1538_vm1, %v1532_v5, %v3211_v4 }
 0x21f   : > { %v3776_v15 = vsel %vm1670_vm5, %v1639_v60, %v1156_v35  ;;  %v3779_v47 = vsel %vm1637_vm4, %v1628_v44, %v1072_v52  ;;  %v1070_v54 = vpop.permute.xlu0 %1069  ;;  %v1598_v37 = vsel %vm1571_vm2, %v1565_v62, %v3351_v33  ;;  %v1609_v55 = vsel %vm1604_vm3, %v1576_v28, %v3385_v53  ;;  %v4627_v44 = vld [vmem:[#allocation47_spill] sm:$0xff]  ;;  %v4628_v52 = vld [vmem:[#allocation102_spill] sm:$0xff] }
 0x220   : > { %v3782_v22 = vsel %vm1637_vm4, %v1627_v61, %v1070_v54  ;;  %v1631_v0 = vsel %vm1604_vm3, %v1598_v37, %v3429_v57  ;;  %v1642_v4 = vsel %vm1637_vm4, %v1609_v55, %v3584_v59  ;;  %v1513_v57 = vsel %vm1505_vm0, %v4563_v63, %v4623_v27  ;;  %v2279_v59 = vld [vmem:[%s2619_s30 + $0x109] sm:$0xff]  ;;  %v4629_v54 = vld [vmem:[#allocation105_spill] sm:$0xff] }
 0x221   : > { %v1546_v50 = vsel %vm1538_vm1, %v1513_v57, %v4626_v46  ;;  %v1568_v35 = vsel %vm1538_vm1, %v1535_v34, %v3223_v8  ;;  %v2271_v28 = vld [vmem:[%s2619_s30 + $0xa9] sm:$0xff]  ;;  %v4640_v34 = vld [vmem:[#allocation33_spill] sm:$0xff] }
 0x222   : > { %v1579_v60 = vsel %vm1571_vm2, %v1546_v50, %v3221_v7  ;;  %v1601_v61 = vsel %vm1571_vm2, %v1568_v35, %v4628_v52  ;;  %v4630_v7 = vld [vmem:[#allocation97_spill] sm:$0xff]  ;;  %v2263_v62 = vld [vmem:[%s2619_s30 + $0x49] sm:$0xff] }
 0x223   : > { %v4632_v37 = vld [vmem:[#allocation10_spill] sm:$0xff] }
 0x224   : > { %1427 = vrot.lane.b32.xlu2 %v2302_v13, %s2536_s10  ;;  %1411 = vrot.lane.b32.xlu1 %v2294_v40, %s2536_s10  ;;  %v4631_v13 = vld [vmem:[#allocation29_spill] sm:$0xff]  ;;  %v4633_v55 = vld [vmem:[#allocation18_spill] sm:$0xff] }
 0x225   : > { %1205 = vrot.lane.b32.xlu0 %v4611_v48, %s2535_s9  ;;  %v2311_v48 = vld [vmem:[%s2619_s30 + $0x10a] sm:$0xff]  ;;  %v1634_v40 = vsel %vm1604_vm3, %v1601_v61, %v4631_v13 }
 0x226   : > { %v1162_v56 = vpop.permute.xlu2 %1161  ;;  %v1078_v1 = vpop.permute.xlu1 %1077  ;;  %v4637_v27 = vld [vmem:[#allocation90_spill] sm:$0xff] }
 0x227   : > { %v3811_v39 = vsel %vm1670_vm5, %v1642_v4, %v1162_v56  ;;  %v3814_v31 = vsel %vm1637_vm4, %v1631_v0, %v1078_v1  ;;  %v1076_v33 = vpop.permute.xlu0 %1075  ;;  %v1516_v0 = vsel %vm1505_vm0, %v4568_v45, %v4633_v55  ;;  %v4634_v4 = vld [vmem:[#allocation36_spill] sm:$0xff]  ;;  %v4635_v1 = vld [vmem:[#allocation77_spill] sm:$0xff]  ;;  %v2295_v61 = vld [vmem:[%s2619_s30 + $0x4a] sm:$0xff] }
 0x228   : > { %v3818_v53 = vsel %vm1637_vm4, %v3497_v12, %v1076_v33  ;;  %v1534_v12 = vsel %vm1505_vm0, %v3159_v30, %v4627_v44  ;;  %v1612_v30 = vsel %vm1604_vm3, %v1579_v60, %v4629_v54  ;;  %v1549_v33 = vsel %vm1538_vm1, %v1516_v0, %v4635_v1  ;;  %v4638_v45 = vld [vmem:[#allocation104_spill] sm:$0xff]  ;;  %v2256_v54 = vld [vmem:[%s2619_s30 + $0x170] sm:$0xff]  ;;  %v4645_v0 = vld [vmem:[#allocation46_spill] sm:$0xff] }
 0x229   : > { %v1567_v63 = vsel %vm1538_vm1, %v1534_v12, %v3225_v3  ;;  %v1645_v24 = vsel %vm1637_vm4, %v1612_v30, %v3606_v21  ;;  %v1506_v21 = vsel %vm1505_vm0, %v187_v6, %v4632_v37  ;;  %v2248_v30 = vld [vmem:[%s2619_s30 + $0x110] sm:$0xff]  ;;  %v4642_v6 = vld [vmem:[#allocation16_spill] sm:$0xff] }
 0x22a   : > { %v1600_v8 = vsel %vm1571_vm2, %v1567_v63, %v4630_v7  ;;  %v1539_v56 = vsel %vm1538_vm1, %v1506_v21, %v4634_v4  ;;  %v2445_v37 = vld [vmem:[%s2619_s30 + $0x38] sm:$0xff]  ;;  %v4644_v21 = vld [vmem:[#allocation6_spill] sm:$0xff]  ;;  %v4647_v1 = vld [vmem:[#allocation91_spill] sm:$0xff] }
 0x22b   : > { %v1633_v38 = vsel %vm1604_vm3, %v1600_v8, %v3515_v42  ;;  %v2319_v42 = vld [vmem:[%s2619_s30 + $0x16a] sm:$0xff]  ;;  %v1572_v57 = vsel %vm1571_vm2, %v1539_v56, %v4637_v27  ;;  %v1511_v55 = vsel %vm1505_vm0, %v2445_v37, %v4644_v21  ;;  %v4646_v4 = vld [vmem:[#allocation64_spill] sm:$0xff]  ;;  %v4655_v21 = vld [vmem:[#allocation57_spill] sm:$0xff] }
 0x22c   : > { %1445 = vrot.lane.b32.xlu2 %v2311_v48, %s2536_s10  ;;  %1333 = vrot.lane.b32.xlu1 %v2287_v18, %s2537_s11  ;;  %v4636_v48 = vld [vmem:[#allocation89_spill] sm:$0xff]  ;;  %v1544_v56 = vsel %vm1538_vm1, %v1511_v55, %v4646_v4  ;;  %v4649_v27 = vld [vmem:[#allocation106_spill] sm:$0xff]  ;;  %v4657_v4 = vld [vmem:[#allocation95_spill] sm:$0xff] }
 0x22d   : > { %1317 = vrot.lane.b32.xlu0 %v2279_v59, %s2537_s11  ;;  %v1582_v18 = vsel %vm1571_vm2, %v1549_v33, %v4636_v48  ;;  %v1605_v59 = vsel %vm1604_vm3, %v1572_v57, %v4638_v45  ;;  %v4648_v48 = vld [vmem:[#allocation92_spill] sm:$0xff]  ;;  %v1770_v45 = vld [vmem:[%s4393_s1 + $0x8] sm:$0xff] }
 0x22e   : > { %v1168_v3 = vpop.permute.xlu2 %1167  ;;  %v1084_v32 = vpop.permute.xlu1 %1083  ;;  %v1615_v26 = vsel %vm1604_vm3, %v1582_v18, %v4639_v9  ;;  %v1638_v46 = vsel %vm1637_vm4, %v1605_v59, %v4640_v34  ;;  %v1577_v18 = vsel %vm1571_vm2, %v1544_v56, %v4648_v48  ;;  %v4650_v59 = vld [vmem:[#allocation100_spill] sm:$0xff] }
 0x22f   : > { %v3857_v51 = vsel %vm1670_vm5, %v1645_v24, %v1168_v3  ;;  %v3860_v5 = vsel %vm1637_vm4, %v1634_v40, %v1084_v32  ;;  %v1082_v17 = vpop.permute.xlu0 %1081  ;;  %v1648_v50 = vsel %vm1637_vm4, %v1615_v26, %v3628_v25  ;;  %v1773_v40 = vld [vmem:[%s4393_s1 + $0x20] sm:$0xf]  ;;  %v2288_v32 = vld [vmem:[%s2619_s30 + $0x171] sm:$0xff]  ;;  %v1610_v9 = vsel %vm1604_vm3, %v1577_v18, %v4650_v59 }
 0x230   : > { %v3863_v58 = vsel %vm1637_vm4, %v1633_v38, %v1082_v17  ;;  %v4641_v24 = vld [vmem:[#allocation41_spill] sm:$0xff]  ;;  %2364 = vmatpush.msk.msra.mxu1 %vm1875_vm6, %v1773_v40  ;;  %2365 = vmatpush.msk.msra.mxu2 %vm1875_vm6, %v1773_v40  ;;  %v4643_v38 = vld [vmem:[#allocation39_spill] sm:$0xff] }
 0x231   : > { %2366 = vmatpush.msk.msra.mxu3 %vm1875_vm6, %v1773_v40  ;;  %2325 = vmatpush.msk.msra.mxu0 %vm1875_vm6, %v1773_v40  ;;  %v1512_v17 = vsel %vm1505_vm0, %v4643_v38, %v4642_v6  ;;  %v4651_v26 = vld [vmem:[#allocation27_spill] sm:$0xff]  ;;  %v4653_v6 = vld [vmem:[#allocation22_spill] sm:$0xff]  ;;  %v4660_v18 = vld [vmem:[#allocation109_spill] sm:$0xff] }
 0x232   : > { %v4662_v59 = vld [vmem:[#allocation35_spill] sm:$0xff] }
 0x234   : > { %1301 = vrot.lane.b32.xlu2 %v2271_v28, %s2537_s11  ;;  %1285 = vrot.lane.b32.xlu1 %v2263_v62, %s2537_s11  ;;  %v2303_v28 = vld [vmem:[%s2619_s30 + $0xaa] sm:$0xff] }
 0x235   : > { %1461 = vrot.lane.b32.xlu0 %v2319_v42, %s2536_s10  ;;  %v1771_v62 = vld [vmem:[%s4393_s1 + $0x10] sm:$0xff]  ;;  %v1545_v42 = vsel %vm1538_vm1, %v1512_v17, %v4645_v0  ;;  %v4656_v0 = vld [vmem:[#allocation76_spill] sm:$0xff] }
 0x236   : > { %v1174_v44 = vpop.permute.xlu2 %1173  ;;  %v1154_v12 = vpop.permute.xlu1 %1153  ;;  %v1578_v33 = vsel %vm1571_vm2, %v1545_v42, %v4647_v1  ;;  %v2272_v17 = vld [vmem:[%s2619_s30 + $0xb1] sm:$0xff] }
 0x237   : > { %v3893_v60 = vsel %vm1670_vm5, %v1648_v50, %v1174_v44  ;;  %v3896_v35 = vsel %vm1670_vm5, %v1638_v46, %v1154_v12  ;;  %v1088_v63 = vpop.permute.xlu0 %1087  ;;  %v1611_v57 = vsel %vm1604_vm3, %v1578_v33, %v4649_v27  ;;  %v4652_v44 = vld [vmem:[#allocation42_spill] sm:$0xff]  ;;  %v4658_v1 = vld [vmem:[#allocation88_spill] sm:$0xff] }
 0x238   : > { %v3900_v52 = vsel %vm1637_vm4, %v3538_v49, %v1088_v63  ;;  %v1644_v34 = vsel %vm1637_vm4, %v1611_v57, %v4651_v26  ;;  %v1643_v12 = vsel %vm1637_vm4, %v1610_v9, %v4652_v44  ;;  %v4659_v33 = vld [vmem:[#allocation96_spill] sm:$0xff]  ;;  %v4661_v57 = vld [vmem:[#allocation103_spill] sm:$0xff] }
 0x23c   : > { %1413 = vrot.lane.b32.xlu2 %v2295_v61, %s2536_s10  ;;  %1207 = vrot.lane.b32.xlu1 %v2256_v54, %s2535_s9  ;;  %v1769_v54 = vld [vmem:[%s4393_s1] sm:$0xff] }
 0x23d   : > { %1191 = vrot.lane.b32.xlu0 %v2248_v30, %s2535_s9 }
 0x23e   : > { %v1180_v25 = vpop.permute.xlu2 %1179  ;;  %v1160_v7 = vpop.permute.xlu1 %1159 }
 0x23f   : > { %v3910_v8 = vsel %vm1670_vm5, %v3662_v20, %v1180_v25  ;;  %v3914_v49 = vsel %vm1670_vm5, %v3494_v14, %v1160_v7  ;;  %v1158_v13 = vpop.permute.xlu0 %1157  ;;  %v1772_v20 = vld [vmem:[%s4393_s1 + $0x18] sm:$0xff] }
 0x240   : > { %v3921_v3 = vsel %vm1670_vm5, %v4641_v24, %v1158_v13  ;;  %v2280_v14 = vld [vmem:[%s2619_s30 + $0x111] sm:$0xff]  ;;  %2367 = vmatpush.msra.mxu1 %v1772_v20  ;;  %2368 = vmatpush.msra.mxu2 %v1772_v20 }
 0x241   : > { %2369 = vmatpush.msra.mxu3 %v1772_v20  ;;  %1891 = vmatpush.msra.mxu0 %v1772_v20  ;;  %v2264_v25 = vld [vmem:[%s2619_s30 + $0x51] sm:$0xff] }
 0x242   : > { %2370 = vmatpush.msra.mxu1 %v1771_v62  ;;  %2371 = vmatpush.msra.mxu2 %v1771_v62  ;;  %v2320_v7 = vld [vmem:[%s2619_s30 + $0x172] sm:$0xff] }
 0x243   : > { %2372 = vmatpush.msra.mxu3 %v1771_v62  ;;  %1892 = vmatpush.msra.mxu0 %v1771_v62  ;;  %v2312_v13 = vld [vmem:[%s2619_s30 + $0x112] sm:$0xff] }
 0x244   : > { %1335 = vrot.lane.b32.xlu2 %v2288_v32, %s2537_s11  ;;  %1319 = vrot.lane.b32.xlu1 %v2280_v14, %s2537_s11  ;;  %v2249_v32 = vld [vmem:[%s2619_s30 + $0x120] sm:$0xff]  ;;  %v2446_v14 = vld [vmem:[%s2619_s30 + $0x90] sm:$0xff]  ;;  %v4654_v62 = vld [vmem:[#allocation8_spill] sm:$0xff] }
 0x245   : > { %1429 = vrot.lane.b32.xlu0 %v2303_v28, %s2536_s10  ;;  %2373 = vmatpush.msra.mxu1 %v1770_v45  ;;  %v1518_v38 = vsel %vm1505_vm0, %v2446_v14, %v4653_v6  ;;  %v2447_v28 = vld [vmem:[%s2619_s30 + $0x80] sm:$0xff] }
 0x246   : > { %v3958_v46 = vpop.permute.xlu2 %1185  ;;  %v1166_v50 = vpop.permute.xlu1 %1165  ;;  %2374 = vmatpush.msra.mxu2 %v1770_v45  ;;  %2375 = vmatpush.msra.mxu3 %v1770_v45  ;;  %v1517_v37 = vsel %vm1505_vm0, %v2447_v28, %v4654_v62  ;;  %v1551_v55 = vsel %vm1538_vm1, %v1518_v38, %v4655_v21  ;;  %v2448_v38 = vld [vmem:[%s2619_s30 + $0x60] sm:$0xff] }
 0x247   : > { %v3963_v63 = vsel %vm1670_vm5, %v1644_v34, %v1166_v50  ;;  %v1164_v61 = vpop.permute.xlu0 %1163  ;;  %2376 = vmatpush.msra.mxu1 %v1769_v54  ;;  %1893 = vmatpush.msra.mxu0 %v1770_v45  ;;  %v1550_v42 = vsel %vm1538_vm1, %v1517_v37, %v4656_v0  ;;  %v1584_v56 = vsel %vm1571_vm2, %v1551_v55, %v4657_v4  ;;  %v4665_v37 = vld [vmem:[#allocation70_spill] sm:$0xff]  ;;  %v4667_v4 = vld [vmem:[#allocation101_spill] sm:$0xff] }
 0x248   : > { %v3969_v30 = vsel %vm1670_vm5, %v1643_v12, %v1164_v61  ;;  %2377 = vmatpush.msra.mxu2 %v1769_v54  ;;  %2378 = vmatpush.msra.mxu3 %v1769_v54  ;;  %v1583_v48 = vsel %vm1571_vm2, %v1550_v42, %v4659_v33  ;;  %v1617_v27 = vsel %vm1604_vm3, %v1584_v56, %v4660_v18  ;;  %v2313_v55 = vld [vmem:[%s2619_s30 + $0x122] sm:$0xff]  ;;  %v4670_v18 = vld [vmem:[#allocation99_spill] sm:$0xff] }
 0x249   : > { %1894 = vmatpush.msra.mxu0 %v1769_v54  ;;  %v1616_v45 = vsel %vm1604_vm3, %v1583_v48, %v4661_v57  ;;  %v1650_v9 = vsel %vm1637_vm4, %v1617_v27, %v4662_v59  ;;  %v2281_v54 = vld [vmem:[%s2619_s30 + $0x121] sm:$0xff] }
 0x24a   : > { %v1649_v50 = vsel %vm1637_vm4, %v1616_v45, %v3623_v41  ;;  %v4663_v41 = vld [vmem:[#allocation80_spill] sm:$0xff]  ;;  %v4666_v0 = vld [vmem:[#allocation94_spill] sm:$0xff] }
 0x24c   : > { %1287 = vrot.lane.b32.xlu2 %v2264_v25, %s2537_s11  ;;  %1463 = vrot.lane.b32.xlu1 %v2320_v7, %s2536_s10  ;;  %v2304_v25 = vld [vmem:[%s2619_s30 + $0xb2] sm:$0xff] }
 0x24d   : > { %1447 = vrot.lane.b32.xlu0 %v2312_v13, %s2536_s10  ;;  %v2296_v7 = vld [vmem:[%s2619_s30 + $0x52] sm:$0xff] }
 0x24e   : > { %v3977_v40 = vpop.permute.xlu2 %1201  ;;  %v3979_v24 = vpop.permute.xlu1 %1171 }
 0x24f   : > { %v1170_v20 = vpop.permute.xlu0 %1169 }
 0x254   : > { %1209 = vrot.lane.b32.xlu2 %v4658_v1, %s2535_s9  ;;  %1193 = vrot.lane.b32.xlu1 %v2249_v32, %s2535_s9  ;;  %v4668_v1 = vld [vmem:[#allocation45_spill] sm:$0xff] }
 0x255   : > { %1303 = vrot.lane.b32.xlu0 %v2272_v17, %s2537_s11  ;;  %v4664_v17 = vld [vmem:[#allocation7_spill] sm:$0xff] }
 0x256   : > { %v1442_v26 = vpop.permute.xlu2 %1441  ;;  %v1178_v34 = vpop.permute.xlu1 %1177  ;;  %v1514_v28 = vsel %vm1505_vm0, %v2448_v38, %v4664_v17  ;;  %v2258_v38 = vld [vmem:[%s2619_s30 + $0x188] sm:$0xff] }
 0x257   : > { %v4010_v44 = vsel %vm1670_vm5, %v1650_v9, %v1178_v34  ;;  %v1176_v12 = vpop.permute.xlu0 %1175  ;;  %v1547_v21 = vsel %vm1538_vm1, %v1514_v28, %v4665_v37  ;;  %v2250_v34 = vld [vmem:[%s2619_s30 + $0x128] sm:$0xff] }
 0x258   : > { %v4013_v61 = vsel %vm1670_vm5, %v1649_v50, %v1176_v12  ;;  %v1580_v42 = vsel %vm1571_vm2, %v1547_v21, %v4666_v0  ;;  %v2273_v50 = vld [vmem:[%s2619_s30 + $0xc1] sm:$0xff]  ;;  %v4671_v21 = vld [vmem:[#allocation19_spill] sm:$0xff] }
 0x259   : > { %v1613_v56 = vsel %vm1604_vm3, %v1580_v42, %v4667_v4  ;;  %v2449_v37 = vld [vmem:[%s2619_s30 + $0x68] sm:$0xff]  ;;  %v4672_v42 = vld [vmem:[#allocation51_spill] sm:$0xff] }
 0x25a   : > { %v1646_v33 = vsel %vm1637_vm4, %v1613_v56, %v4668_v1  ;;  %v2314_v56 = vld [vmem:[%s2619_s30 + $0x12a] sm:$0xff]  ;;  %v4673_v1 = vld [vmem:[#allocation93_spill] sm:$0xff] }
 0x25b   : > { %v1679_v48 = vsel %vm1670_vm5, %v1646_v33, %v1170_v20  ;;  %v2265_v20 = vld [vmem:[%s2619_s30 + $0x61] sm:$0xff]  ;;  %v4674_v33 = vld [vmem:[#allocation108_spill] sm:$0xff] }
 0x25c   : > { %1321 = vrot.lane.b32.xlu2 %v2281_v54, %s2537_s11  ;;  %1431 = vrot.lane.b32.xlu1 %v2304_v25, %s2536_s10  ;;  %v1687_v25 = vsel %vm1670_vm5, %v3696_v36, %v3958_v46  ;;  %v1695_v36 = vsel %vm1670_vm5, %v3656_v29, %v3977_v40  ;;  %v2282_v40 = vld [vmem:[%s2619_s30 + $0x129] sm:$0xff] }
 0x25d   : > { %1415 = vrot.lane.b32.xlu0 %v2296_v7, %s2536_s10 }
 0x25e   : > { %v1298_v13 = vpop.permute.xlu2 %1297  ;;  %v1184_v32 = vpop.permute.xlu1 %1183 }
 0x25f   : > { %v4023_v14 = vsel %vm1670_vm5, %v4663_v41, %v1184_v32  ;;  %v1182_v6 = vpop.permute.xlu0 %1181  ;;  %v1712_v27 = vsel %vm1703_vm7, %v1679_v48, %v1298_v13  ;;  %v2305_v41 = vld [vmem:[%s2619_s30 + $0xc2] sm:$0xff]  ;;  %v4675_v48 = vld [vmem:[#allocation12_spill] sm:$0xff] }
 0x260   : > { %v4030_v62 = vsel %vm1670_vm5, %v3659_v11, %v1182_v6  ;;  %v4669_v11 = vld [vmem:[#allocation28_spill] sm:$0xff]  ;;  %v2297_v6 = vld [vmem:[%s2619_s30 + $0x62] sm:$0xff] }
 0x264   : > { %1465 = vrot.lane.b32.xlu2 %v4669_v11, %s2536_s10  ;;  %1449 = vrot.lane.b32.xlu1 %v2313_v55, %s2536_s10  ;;  %v1515_v55 = vsel %vm1505_vm0, %v2449_v37, %v4671_v21 }
 0x265   : > { %1337 = vrot.lane.b32.xlu0 %v4670_v18, %s2537_s11  ;;  %v1548_v4 = vsel %vm1538_vm1, %v1515_v55, %v4672_v42  ;;  %v2283_v42 = vld [vmem:[%s2619_s30 + $0x139] sm:$0xff] }
 0x266   : > { %v1426_v57 = vpop.permute.xlu2 %1425  ;;  %v4048_v45 = vpop.permute.xlu1 %1189  ;;  %v1581_v29 = vsel %vm1571_vm2, %v1548_v4, %v4673_v1  ;;  %v2306_v4 = vld [vmem:[%s2619_s30 + $0xca] sm:$0xff] }
 0x267   : > { %v1188_v59 = vpop.permute.xlu0 %1187  ;;  %v1745_v9 = vsel %vm1736_vm8, %v1712_v27, %v1426_v57  ;;  %v1614_v11 = vsel %vm1604_vm3, %v1581_v29, %v4674_v33  ;;  %v4676_v27 = vld [vmem:[#allocation98_spill] sm:$0xff]  ;;  %v2267_v33 = vld [vmem:[%s2619_s30 + $0x79] sm:$0xff] }
 0x268   : > { %2334 = vmatmul.msk.f32.vlgmr.msra.gmra.mxu1 %vm1778_vm9, %v1745_v9  ;;  %v1647_v18 = vsel %vm1637_vm4, %v1614_v11, %v4675_v48  ;;  %v2323_v11 = vld [vmem:[%s2619_s30 + $0x19a] sm:$0xff] }
 0x269   : > { %v1680_v57 = vsel %vm1670_vm5, %v1647_v18, %v3979_v24  ;;  %v2274_v24 = vld [vmem:[%s2619_s30 + $0xc9] sm:$0xff]  ;;  %v2315_v48 = vld [vmem:[%s2619_s30 + $0x13a] sm:$0xff] }
 0x26c   : > { %1195 = vrot.lane.b32.xlu2 %v2250_v34, %s2535_s9  ;;  %1305 = vrot.lane.b32.xlu1 %v2273_v50, %s2537_s11 }
 0x26d   : > { %1289 = vrot.lane.b32.xlu0 %v2265_v20, %s2537_s11 }
 0x26e   : > { %v1444_v12 = vpop.permute.xlu2 %1443  ;;  %v1330_v54 = vpop.permute.xlu1 %1329 }
 0x26f   : > { %v1314_v7 = vpop.permute.xlu0 %1313 }
 0x270   : > { %v1720_v13 = vsel %vm1703_vm7, %v1687_v25, %v1314_v7 }
 0x271   : > { %v1753_v32 = vsel %vm1736_vm8, %v1720_v13, %v1442_v26  ;;  %v1728_v26 = vsel %vm1703_vm7, %v1695_v36, %v1330_v54  ;;  %v2266_v13 = vld [vmem:[%s2619_s30 + $0x69] sm:$0xff] }
 0x272   : > { %2342 = vmatmul.msk.f32.vlgmr.msra.gmra.mxu2 %vm1778_vm9, %v1753_v32 }
 0x274   : > { %1433 = vrot.lane.b32.xlu2 %v2305_v41, %s2536_s10  ;;  %1417 = vrot.lane.b32.xlu1 %v2297_v6, %s2536_s10  ;;  %v1688_v6 = vsel %vm1670_vm5, %v3693_v10, %v1188_v59 }
 0x275   : > { %1211 = vrot.lane.b32.xlu0 %v2258_v38, %s2535_s9 }
 0x276   : > { %v1300_v46 = vpop.permute.xlu2 %1299  ;;  %v1282_v17 = vpop.permute.xlu1 %1281 }
 0x277   : > { %v1458_v28 = vpop.permute.xlu0 %1457  ;;  %v1713_v9 = vsel %vm1703_vm7, %v1680_v57, %v1300_v46  ;;  %v1704_v34 = vsel %vm1703_vm7, %v3896_v35, %v1282_v17  ;;  %v4677_v35 = vld [vmem:[#allocation23_spill] sm:$0xff] }
 0x278   : > { %v1761_v0 = vsel %vm1736_vm8, %v1728_v26, %v1458_v28  ;;  %v2298_v17 = vld [vmem:[%s2619_s30 + $0x6a] sm:$0xff]  ;;  %v2259_v26 = vld [vmem:[%s2619_s30 + $0x198] sm:$0xff] }
 0x279   : > { %2350 = vmatmul.msk.f32.vlgmr.msra.gmra.mxu3 %vm1778_vm9, %v1761_v0  ;;  %v2251_v28 = vld [vmem:[%s2619_s30 + $0x138] sm:$0xff] }
 0x27a   : > { %v2291_v0 = vld [vmem:[%s2619_s30 + $0x199] sm:$0xff] }
 0x27c   : > { %1451 = vrot.lane.b32.xlu2 %v2314_v56, %s2536_s10  ;;  %1339 = vrot.lane.b32.xlu1 %v4676_v27, %s2537_s11  ;;  %v4678_v27 = vld [vmem:[#allocation43_spill] sm:$0xff] }
 0x27d   : > { %1323 = vrot.lane.b32.xlu0 %v2282_v40, %s2537_s11  ;;  %v1689_v57 = vsel %vm1670_vm5, %v4678_v27, %v4048_v45 }
 0x27e   : > { %v1428_v50 = vpop.permute.xlu2 %1427  ;;  %v1410_v20 = vpop.permute.xlu1 %1409 }
 0x27f   : > { %v1204_v54 = vpop.permute.xlu0 %1203  ;;  %v1737_v25 = vsel %vm1736_vm8, %v1704_v34, %v1410_v20  ;;  %v1746_v7 = vsel %vm1736_vm8, %v1713_v9, %v1428_v50  ;;  %v2260_v20 = vld [vmem:[%s2619_s30 + $0x1a0] sm:$0xff] }
 0x280   : > { %2326 = vmatmul.msk.f32.vlgmr.msra.gmra.mxu0 %vm1778_vm9, %v1737_v25  ;;  %2335 = vmatmul.msk.f32.gmra.mxu1 %vm1778_vm9, %v1746_v7  ;;  %v1696_v10 = vsel %vm1670_vm5, %v3818_v53, %v1204_v54  ;;  %v2252_v54 = vld [vmem:[%s2619_s30 + $0x140] sm:$0xff] }
 0x281   : > { %v2275_v25 = vld [vmem:[%s2619_s30 + $0xd9] sm:$0xff] }
 0x284   : > { %1307 = vrot.lane.b32.xlu2 %v2274_v24, %s2537_s11  ;;  %1291 = vrot.lane.b32.xlu1 %v2266_v13, %s2537_s11 }
 0x285   : > { %1467 = vrot.lane.b32.xlu0 %v4677_v35, %s2536_s10 }
 0x286   : > { %v1446_v32 = vpop.permute.xlu2 %1445  ;;  %v1332_v41 = vpop.permute.xlu1 %1331 }
 0x287   : > { %v1316_v38 = vpop.permute.xlu0 %1315 }
 0x288   : > { %v1721_v36 = vsel %vm1703_vm7, %v1688_v6, %v1316_v38  ;;  %v2284_v38 = vld [vmem:[%s2619_s30 + $0x141] sm:$0xff] }
 0x289   : > { %v1754_v46 = vsel %vm1736_vm8, %v1721_v36, %v1444_v12  ;;  %v1729_v12 = vsel %vm1703_vm7, %v1696_v10, %v1332_v41  ;;  %v2299_v36 = vld [vmem:[%s2619_s30 + $0x7a] sm:$0xff] }
 0x28a   : > { %2343 = vmatmul.msk.f32.gmra.mxu2 %vm1778_vm9, %v1754_v46  ;;  %v2292_v10 = vld [vmem:[%s2619_s30 + $0x1a1] sm:$0xff] }
 0x28c   : > { %1419 = vrot.lane.b32.xlu2 %v2298_v17, %s2536_s10  ;;  %1213 = vrot.lane.b32.xlu1 %v2259_v26, %s2535_s9  ;;  %v2316_v26 = vld [vmem:[%s2619_s30 + $0x142] sm:$0xff] }
 0x28d   : > { %1197 = vrot.lane.b32.xlu0 %v2251_v28, %s2535_s9  ;;  %v2324_v28 = vld [vmem:[%s2619_s30 + $0x1a2] sm:$0xff] }
 0x28e   : > { %v4121_v59 = vpop.permute.xlu2 %1301  ;;  %v1284_v37 = vpop.permute.xlu1 %1283 }
 0x28f   : > { %v1460_v21 = vpop.permute.xlu0 %1459  ;;  %v1705_v53 = vsel %vm1703_vm7, %v3776_v15, %v1284_v37 }
 0x290   : > { %v1762_v55 = vsel %vm1736_vm8, %v1729_v12, %v1460_v21  ;;  %v1714_v12 = vsel %vm1703_vm7, %v3893_v60, %v4121_v59 }
 0x291   : > { %2351 = vmatmul.msk.f32.gmra.mxu3 %vm1778_vm9, %v1762_v55 }
 0x294   : > { %1341 = vrot.lane.b32.xlu2 %v2291_v0, %s2537_s11  ;;  %1325 = vrot.lane.b32.xlu1 %v2283_v42, %s2537_s11  ;;  %v2276_v0 = vld [vmem:[%s2619_s30 + $0xe1] sm:$0xff] }
 0x295   : > { %1435 = vrot.lane.b32.xlu0 %v2306_v4, %s2536_s10  ;;  %v2300_v42 = vld [vmem:[%s2619_s30 + $0x82] sm:$0xff] }
 0x296   : > { %v1414_v56 = vpop.permute.xlu2 %1413  ;;  %v1412_v1 = vpop.permute.xlu1 %1411 }
 0x297   : > { %v1206_v29 = vpop.permute.xlu0 %1205  ;;  %v1738_v40 = vsel %vm1736_vm8, %v1705_v53, %v1412_v1  ;;  %v2268_v53 = vld [vmem:[%s2619_s30 + $0x81] sm:$0xff] }
 0x298   : > { %2327 = vmatmul.msk.f32.gmra.mxu0 %vm1778_vm9, %v1738_v40  ;;  %v1697_v45 = vsel %vm1670_vm5, %v3814_v31, %v1206_v29  ;;  %v2307_v31 = vld [vmem:[%s2619_s30 + $0xda] sm:$0xff] }
 0x29c   : > { %1293 = vrot.lane.b32.xlu2 %v2267_v33, %s2537_s11  ;;  %1469 = vrot.lane.b32.xlu1 %v2323_v11, %s2536_s10 }
 0x29d   : > { %1453 = vrot.lane.b32.xlu0 %v2315_v48, %s2536_s10 }
 0x29e   : > { %v1336_v15 = vpop.permute.xlu2 %1335  ;;  %v1334_v18 = vpop.permute.xlu1 %1333 }
 0x29f   : > { %v1318_v9 = vpop.permute.xlu0 %1317  ;;  %v1730_v13 = vsel %vm1703_vm7, %v1697_v45, %v1334_v18 }
 0x2a0   : > { %v1722_v34 = vsel %vm1703_vm7, %v1689_v57, %v1318_v9 }
 0x2a1   : > { %v1755_v50 = vsel %vm1736_vm8, %v1722_v34, %v1446_v32 }
 0x2a2   : > { %2344 = vmatmul.msk.f32.gmra.mxu2 %vm1778_vm9, %v1755_v50 }
 0x2a4   : > { %1215 = vrot.lane.b32.xlu2 %v2260_v20, %s2535_s9  ;;  %1199 = vrot.lane.b32.xlu1 %v2252_v54, %s2535_s9 }
 0x2a5   : > { %1309 = vrot.lane.b32.xlu0 %v2275_v25, %s2537_s11 }
 0x2a6   : > { %v1288_v7 = vpop.permute.xlu2 %1287  ;;  %v1286_v24 = vpop.permute.xlu1 %1285 }
 0x2a7   : > { %v1706_v35 = vsel %vm1703_vm7, %v3921_v3, %v1286_v24  ;;  %v1462_v32 = vpop.permute.xlu0 %1461  ;;  %v1707_v9 = vsel %vm1703_vm7, %v3914_v49, %v1288_v7 }
 0x2a8   : > { %v1763_v41 = vsel %vm1736_vm8, %v1730_v13, %v1462_v32  ;;  %v1739_v6 = vsel %vm1736_vm8, %v1706_v35, %v1414_v56 }
 0x2a9   : > { %2352 = vmatmul.msk.f32.gmra.mxu3 %vm1778_vm9, %v1763_v41  ;;  %2328 = vmatmul.msk.f32.gmra.mxu0 %vm1778_vm9, %v1739_v6 }
 0x2ac   : > { %1437 = vrot.lane.b32.xlu1 %v2307_v31, %s2536_s10  ;;  %1327 = vrot.lane.b32.xlu2 %v2284_v38, %s2537_s11  ;;  %v4226_v31 = vld [vmem:[%s4394_s2] ss:$0 sm:$0xff] }
 0x2ad   : > { %1421 = vrot.lane.b32.xlu0 %v2299_v36, %s2536_s10 }
 0x2ae   : > { %v1208_v3 = vpop.permute.xlu1 %1207  ;;  %v1210_v17 = vpop.permute.xlu2 %1209 }
 0x2af   : > { %v1192_v46 = vpop.permute.xlu0 %1191  ;;  %v1698_v56 = vsel %vm1670_vm5, %v3690_v23, %v1208_v3  ;;  %v2308_v23 = vld [vmem:[%s2619_s30 + $0xe2] sm:$0xff]  ;;  %v1699_v49 = vsel %vm1670_vm5, %v3863_v58, %v1210_v17  ;;  %s175_s30 = sand.u32 1, %s2512_s13  }
 0x2b0   : > { %v1690_v60 = vsel %vm1670_vm5, %v3739_v19, %v1192_v46  ;;  %v1731_v1 = vsel %vm1703_vm7, %v1698_v56, %v1336_v15  ;;  %s2131_s7 = sshll.u32 %s175_s30, 8 }
 0x2b4   : > { %1455 = vrot.lane.b32.xlu1 %v2316_v26, %s2536_s10  ;;  %1471 = vrot.lane.b32.xlu2 %v2324_v28, %s2536_s10 }
 0x2b5   : > { %1343 = vrot.lane.b32.xlu0 %v2292_v10, %s2537_s11 }
 0x2b6   : > { %v1320_v37 = vpop.permute.xlu1 %1319  ;;  %v1322_v4 = vpop.permute.xlu2 %1321 }
 0x2b7   : > { %v1430_v21 = vpop.permute.xlu0 %1429  ;;  %v1723_v29 = vsel %vm1703_vm7, %v1690_v60, %v1320_v37 }
 0x2b8   : > { %v1747_v55 = vsel %vm1736_vm8, %v1714_v12, %v1430_v21 }
 0x2b9   : > { %2336 = vmatmul.msk.f32.gmra.mxu1 %vm1778_vm9, %v1747_v55 }
 0x2bc   : > { %1311 = vrot.lane.b32.xlu1 %v2276_v0, %s2537_s11  ;;  %1423 = vrot.lane.b32.xlu2 %v2300_v42, %s2536_s10 }
 0x2bd   : > { %1295 = vrot.lane.b32.xlu0 %v2268_v53, %s2537_s11  ;;  %s2363_s11 = sshll.u32 %s2520_s15, 8  ;;  %s2025_s15 = scalar_lea.sflag [#allocation3], %s175_s30 }
 0x2be   : > { %v1464_v59 = vpop.permute.xlu1 %1463  ;;  %v1466_v48 = vpop.permute.xlu2 %1465  ;;  %s2039_s21 = scalar_lea.hbm %s4395_s3, %s2363_s11 }
 0x2bf   : > { %v1448_v40 = vpop.permute.xlu0 %1447  ;;  %v1764_v33 = vsel %vm1736_vm8, %v1731_v1, %v1464_v59  ;;  %s2042_s26 = sshll.u32 %s2039_s21, 4  ;;  %s2043_s26 = int_to_ptr.hbm [resolvable:$true] %s2042_s26 }
 0x2c0   : > { %v1756_v11 = vsel %vm1736_vm8, %v1723_v29, %v1448_v40  ;;  %2353 = vmatmul.msk.f32.gmra.mxu3 %vm1778_vm9, %v1764_v33  ;;  %s2464_s27 = sshra.s32 %s2043_s26, 4  ;;  %s2465_s27 = int_to_ptr.hbm [resolvable:$true] %s2464_s27 }
 0x2c1   : > { %2345 = vmatmul.msk.f32.gmra.mxu2 %vm1778_vm9, %v1756_v11  ;;  %s2466_s28 = scalar_lea.hbm %s2465_s27, 256  ;;  %p2471_p1 = scmp.lt.s32.totalorder %s2465_s27, %s4395_s3 }
 0x2c2   : > { %p2467_p12 = scmp.ne.s32.totalorder %s2465_s27, %s2466_s28  ;;  %p2472_p2 = scmp.lt.s32.totalorder %s2470_s6, %s2466_s28 }
 0x2c4   : > { %p2468_p13 = pnand %p2467_p12, %p2599_p4  ;;  %p2473_p3 = por %p2472_p2, %p2471_p1 }
 0x2c5   : > { %1439 = vrot.lane.b32.xlu0 %v2308_v23, %s2536_s10  ;;  %s4232_s10 = scalar_lea.vmem [#allocation2], %s2131_s7 }
 0x2c6   : > { %v1194_v18 = vpop.permute.xlu1 %1193  ;;  %v1196_v27 = vpop.permute.xlu2 %1195  ;;  %s2040_s23 = sshll.u32 %s4232_s10, 4  ;;  %p2469_p0 = pneg %p2468_p13  ;;  %s2041_s23 = int_to_ptr.vmem [resolvable:$true] %s2040_s23 }
 0x2c7   : > { %v1304_v19 = vpop.permute.xlu0 %1303  ;;  %v1691_v54 = vsel %vm1670_vm5, %v3736_v16, %v1194_v18  ;;  %v1692_v10 = vsel %vm1670_vm5, %v3626_v2, %v1196_v27 }
 0x2c8   : > { %v1715_v15 = vsel %vm1703_vm7, %v4013_v61, %v1304_v19  ;;  %v1724_v61 = vsel %vm1703_vm7, %v1691_v54, %v1322_v4  ;;  %p2474_p5 = pnand %p2473_p3, %p2469_p0 }
 0x2ce   : > { %v1432_v57 = vpop.permute.xlu1 %1431  ;;  %v1434_v24 = vpop.permute.xlu2 %1433 }
 0x2cf   : > { %v1416_v34 = vpop.permute.xlu0 %1415  ;;  %v1748_v50 = vsel %vm1736_vm8, %v1715_v15, %v1432_v57 }
 0x2d0   : > { %v1740_v20 = vsel %vm1736_vm8, %v1707_v9, %v1416_v34  ;;  %2337 = vmatmul.msk.f32.gmra.mxu1 %vm1778_vm9, %v1748_v50 }
 0x2d1   : > { %2329 = vmatmul.msk.f32.gmra.mxu0 %vm1778_vm9, %v1740_v20 }
 0x2d6   : > { %v1450_v25 = vpop.permute.xlu1 %1449  ;;  %v1452_v6 = vpop.permute.xlu2 %1451 }
 0x2d7   : > { %v1338_v45 = vpop.permute.xlu0 %1337  ;;  %v1757_v7 = vsel %vm1736_vm8, %v1724_v61, %v1450_v25 }
 0x2d8   : > { %v1732_v13 = vsel %vm1703_vm7, %v1699_v49, %v1338_v45  ;;  %2346 = vmatmul.msk.f32.gmra.mxu2 %vm1778_vm9, %v1757_v7 }
 0x2d9   : > { %v1765_v35 = vsel %vm1736_vm8, %v1732_v13, %v1466_v48 }
 0x2da   : > { %2354 = vmatmul.msk.f32.gmra.mxu3 %vm1778_vm9, %v1765_v35 }
 0x2de   : > { %v1306_v16 = vpop.permute.xlu1 %1305  ;;  %v1308_v26 = vpop.permute.xlu2 %1307 }
 0x2df   : > { %v1716_v32 = vsel %vm1703_vm7, %v4010_v44, %v1306_v16  ;;  %v1290_v41 = vpop.permute.xlu0 %1289  ;;  %v1717_v19 = vsel %vm1703_vm7, %v3910_v8, %v1308_v26 }
 0x2e0   : > { %v1749_v58 = vsel %vm1736_vm8, %v1716_v32, %v1434_v24  ;;  %v1708_v36 = vsel %vm1703_vm7, %v3811_v39, %v1290_v41 }
 0x2e1   : > { %2338 = vmatmul.msk.f32.gmra.mxu1 %vm1778_vm9, %v1749_v58 }
 0x2e5   : > { %v1920_v38 = vpop.f32.mrf.mxu1 }
 0x2e6   : > { %v1921_v44 = vadd.f32 %v4226_v31, %v1920_v38  ;;  %v1418_v3 = vpop.permute.xlu1 %1417  ;;  %v1420_v55 = vpop.permute.xlu2 %1419 }
 0x2e7   : > { %v1212_v46 = vpop.permute.xlu0 %1211  ;;  %v1741_v17 = vsel %vm1736_vm8, %v1708_v36, %v1418_v3 }
 0x2e8   : > { %2000 = vst [vmem:[%s4232_s10 + $0x40] sm:$0xff] %v1921_v44  ;;  %2330 = vmatmul.msk.f32.gmra.mxu0 %vm1778_vm9, %v1741_v17  ;;  %v1700_v0 = vsel %vm1670_vm5, %v3860_v5, %v1212_v46 }
 0x2ee   : > { %v1340_v28 = vpop.permute.xlu1 %1339  ;;  %v1342_v48 = vpop.permute.xlu2 %1341 }
 0x2ef   : > { %v1324_v37 = vpop.permute.xlu0 %1323  ;;  %v1733_v53 = vsel %vm1703_vm7, %v1700_v0, %v1340_v28 }
 0x2f0   : > { %v1725_v39 = vsel %vm1703_vm7, %v1692_v10, %v1324_v37 }
 0x2f1   : > { %v1758_v12 = vsel %vm1736_vm8, %v1725_v39, %v1452_v6 }
 0x2f2   : > { %2347 = vmatmul.msk.f32.gmra.mxu2 %vm1778_vm9, %v1758_v12 }
 0x2f5   : > { %v1944_v21 = vpop.f32.mrf.mxu2 }
 0x2f6   : > { %v1945_v42 = vadd.f32 %v4226_v31, %v1944_v21  ;;  %v1292_v4 = vpop.permute.xlu1 %1291  ;;  %v1294_v57 = vpop.permute.xlu2 %1293 }
 0x2f7   : > { %v1709_v2 = vsel %vm1703_vm7, %v3969_v30, %v1292_v4  ;;  %v1468_v56 = vpop.permute.xlu0 %1467  ;;  %v1710_v6 = vsel %vm1703_vm7, %v3963_v63, %v1294_v57 }
 0x2f8   : > { %2008 = vst [vmem:[%s4232_s10 + $0x80] sm:$0xff] %v1945_v42  ;;  %v1766_v60 = vsel %vm1736_vm8, %v1733_v53, %v1468_v56  ;;  %v1742_v59 = vsel %vm1736_vm8, %v1709_v2, %v1420_v55 }
 0x2f9   : > { %2355 = vmatmul.msk.f32.gmra.mxu3 %vm1778_vm9, %v1766_v60  ;;  %2331 = vmatmul.msk.f32.gmra.mxu0 %vm1778_vm9, %v1742_v59 }
 0x2fc   : > { %v1968_v5 = vpop.f32.mrf.mxu3 }
 0x2fd   : > { %v1969_v1 = vadd.f32 %v4226_v31, %v1968_v5  ;;  %v1896_v29 = vpop.f32.mrf.mxu0  ;;  %v1923_v40 = vpop.f32.mrf.mxu1 }
 0x2fe   : > { %v1897_v33 = vadd.f32 %v4226_v31, %v1896_v29  ;;  %v1924_v30 = vadd.f32 %v4226_v31, %v1923_v40  ;;  %v1214_v11 = vpop.permute.xlu1 %1213 }
 0x2ff   : > { %2016 = vst [vmem:[%s4232_s10 + $0xc0] sm:$0xff] %v1969_v1  ;;  %v1198_v23 = vpop.permute.xlu0 %1197  ;;  %v1701_v9 = vsel %vm1670_vm5, %v3733_v43, %v1214_v11  ;;  %v1216_v43 = vpop.permute.xlu2 %1215 }
 0x300   : > { %1992 = vst [vmem:[%s4232_s10] sm:$0xff] %v1897_v33  ;;  %v1693_v50 = vsel %vm1670_vm5, %v3782_v22, %v1198_v23  ;;  %v1734_v25 = vsel %vm1703_vm7, %v1701_v9, %v1342_v48  ;;  %v1702_v10 = vsel %vm1670_vm5, %v3900_v52, %v1216_v43 }
 0x301   : > { %2001 = vst [vmem:[%s4232_s10 + $0x48] sm:$0xff] %v1924_v30 }
 0x306   : > { %v1326_v18 = vpop.permute.xlu1 %1325 }
 0x307   : > { %v1436_v27 = vpop.permute.xlu0 %1435  ;;  %v1726_v8 = vsel %vm1703_vm7, %v1693_v50, %v1326_v18  ;;  %v1328_v32 = vpop.permute.xlu2 %1327 }
 0x308   : > { %v1750_v15 = vsel %vm1736_vm8, %v1717_v19, %v1436_v27 }
 0x309   : > { %2339 = vmatmul.msk.f32.gmra.mxu1 %vm1778_vm9, %v1750_v15 }
 0x30d   : > { %v1947_v34 = vpop.f32.mrf.mxu2 }
 0x30e   : > { %v1948_v20 = vadd.f32 %v4226_v31, %v1947_v34  ;;  %v1470_v54 = vpop.permute.xlu1 %1469 }
 0x30f   : > { %v1454_v61 = vpop.permute.xlu0 %1453  ;;  %v1767_v49 = vsel %vm1736_vm8, %v1734_v25, %v1470_v54  ;;  %v1472_v46 = vpop.permute.xlu2 %1471 }
 0x310   : > { %2009 = vst [vmem:[%s4232_s10 + $0x88] sm:$0xff] %v1948_v20  ;;  %v1759_v45 = vsel %vm1736_vm8, %v1726_v8, %v1454_v61  ;;  %2356 = vmatmul.msk.f32.gmra.mxu3 %vm1778_vm9, %v1767_v49 }
 0x311   : > { %2348 = vmatmul.msk.f32.gmra.mxu2 %vm1778_vm9, %v1759_v45 }
 0x314   : > { %v1971_v22 = vpop.f32.mrf.mxu3 }
 0x315   : > { %v1972_v7 = vadd.f32 %v4226_v31, %v1971_v22  ;;  %v1899_v24 = vpop.f32.mrf.mxu0 }
 0x316   : > { %v1900_v13 = vadd.f32 %v4226_v31, %v1899_v24  ;;  %v1200_v35 = vpop.permute.xlu1 %1199 }
 0x317   : > { %2017 = vst [vmem:[%s4232_s10 + $0xc8] sm:$0xff] %v1972_v7  ;;  %v1310_v16 = vpop.permute.xlu0 %1309  ;;  %v1694_v3 = vsel %vm1670_vm5, %v3779_v47, %v1200_v35  ;;  %v1424_v52 = vpop.permute.xlu2 %1423 }
 0x318   : > { %1993 = vst [vmem:[%s4232_s10 + $0x8] sm:$0xff] %v1900_v13  ;;  %v1718_v41 = vsel %vm1703_vm7, %v4030_v62, %v1310_v16  ;;  %v1727_v17 = vsel %vm1703_vm7, %v1694_v3, %v1328_v32 }
 0x31e   : > { %v1438_v58 = vpop.permute.xlu1 %1437 }
 0x31f   : > { %v1422_v38 = vpop.permute.xlu0 %1421  ;;  %v1751_v36 = vsel %vm1736_vm8, %v1718_v41, %v1438_v58 }
 0x320   : > { %v1743_v44 = vsel %vm1736_vm8, %v1710_v6, %v1422_v38  ;;  %2340 = vmatmul.msk.f32.gmra.mxu1 %vm1778_vm9, %v1751_v36 }
 0x321   : > { %2332 = vmatmul.msk.f32.gmra.mxu0 %vm1778_vm9, %v1743_v44 }
 0x325   : > { %v1950_v62 = vpop.f32.mrf.mxu2 }
 0x326   : > { %v1951_v63 = vadd.f32 %v4226_v31, %v1950_v62  ;;  %v1456_v26 = vpop.permute.xlu1 %1455  ;;  %v1902_v28 = vpop.f32.mrf.mxu0 }
 0x327   : > { %v1344_v37 = vpop.permute.xlu0 %1343  ;;  %v1903_v39 = vadd.f32 %v4226_v31, %v1902_v28  ;;  %v1760_v12 = vsel %vm1736_vm8, %v1727_v17, %v1456_v26 }
 0x328   : > { %2010 = vst [vmem:[%s4232_s10 + $0x90] sm:$0xff] %v1951_v63  ;;  %v1735_v47 = vsel %vm1703_vm7, %v1702_v10, %v1344_v37  ;;  %2349 = vmatmul.msk.f32.gmra.mxu2 %vm1778_vm9, %v1760_v12 }
 0x329   : > { %1994 = vst [vmem:[%s4232_s10 + $0x10] sm:$0xff] %v1903_v39  ;;  %v1768_v21 = vsel %vm1736_vm8, %v1735_v47, %v1472_v46 }
 0x32a   : > { %2357 = vmatmul.msk.f32.gmra.mxu3 %vm1778_vm9, %v1768_v21 }
 0x32c   : > { %v1974_v55 = vpop.f32.mrf.mxu3 }
 0x32d   : > { %v1975_v0 = vadd.f32 %v4226_v31, %v1974_v55 }
 0x32e   : > { %v1312_v2 = vpop.permute.xlu1 %1311 }
 0x32f   : > { %2018 = vst [vmem:[%s4232_s10 + $0xd0] sm:$0xff] %v1975_v0  ;;  %v1296_v42 = vpop.permute.xlu0 %1295  ;;  %v1719_v60 = vsel %vm1703_vm7, %v4023_v14, %v1312_v2 }
 0x330   : > { %v1711_v4 = vsel %vm1703_vm7, %v3857_v51, %v1296_v42 }
 0x331   : > { %v1744_v53 = vsel %vm1736_vm8, %v1711_v4, %v1424_v52 }
 0x332   : > { %2333 = vmatmul.msk.f32.gmra.mxu0 %vm1778_vm9, %v1744_v53 }
 0x336   : > { %v1926_v56 = vpop.f32.mrf.mxu1 }
 0x337   : > { %v1927_v59 = vadd.f32 %v4226_v31, %v1926_v56  ;;  %v1440_v5 = vpop.permute.xlu0 %1439 }
 0x338   : > { %v1752_v1 = vsel %vm1736_vm8, %v1719_v60, %v1440_v5 }
 0x339   : > { %2002 = vst [vmem:[%s4232_s10 + $0x50] sm:$0xff] %v1927_v59  ;;  %2341 = vmatmul.msk.f32.gmra.mxu1 %vm1778_vm9, %v1752_v1 }
 0x343   : > { %v1977_v51 = vpop.f32.mrf.mxu3 }
 0x344   : > { %v1953_v29 = vpop.f32.mrf.mxu2  ;;  %v1978_v40 = vadd.f32 %v4226_v31, %v1977_v51 }
 0x345   : > { %v1954_v33 = vadd.f32 %v4226_v31, %v1953_v29 }
 0x346   : > { %2019 = vst [vmem:[%s4232_s10 + $0xd8] sm:$0xff] %v1978_v40 }
 0x347   : > { %2011 = vst [vmem:[%s4232_s10 + $0x98] sm:$0xff] %v1954_v33 }
 0x34d   : > { %v1929_v14 = vpop.f32.mrf.mxu1 }
 0x34e   : > { %v1905_v30 = vpop.f32.mrf.mxu0  ;;  %v1930_v11 = vadd.f32 %v4226_v31, %v1929_v14 }
 0x34f   : > { %v1906_v23 = vadd.f32 %v4226_v31, %v1905_v30 }
 0x350   : > { %2003 = vst [vmem:[%s4232_s10 + $0x58] sm:$0xff] %v1930_v11 }
 0x351   : > { %1995 = vst [vmem:[%s4232_s10 + $0x18] sm:$0xff] %v1906_v23 }
 0x35b   : > { %v1956_v48 = vpop.f32.mrf.mxu2 }
 0x35c   : > { %v1957_v18 = vadd.f32 %v4226_v31, %v1956_v48 }
 0x35d   : > { %v1980_v19 = vpop.f32.mrf.mxu3 }
 0x35e   : > { %2012 = vst [vmem:[%s4232_s10 + $0xa0] sm:$0xff] %v1957_v18  ;;  %v1981_v27 = vadd.f32 %v4226_v31, %v1980_v19  ;;  %v1932_v15 = vpop.f32.mrf.mxu1 }
 0x35f   : > { %v1933_v57 = vadd.f32 %v4226_v31, %v1932_v15 }
 0x360   : > { %2020 = vst [vmem:[%s4232_s10 + $0xe0] sm:$0xff] %v1981_v27 }
 0x361   : > { %2004 = vst [vmem:[%s4232_s10 + $0x60] sm:$0xff] %v1933_v57 }
 0x365   : > { %v1908_v9 = vpop.f32.mrf.mxu0 }
 0x366   : > { %v1909_v34 = vadd.f32 %v4226_v31, %v1908_v9 }
 0x368   : > { %1996 = vst [vmem:[%s4232_s10 + $0x20] sm:$0xff] %v1909_v34 }
 0x375   : > { %v1959_v50 = vpop.f32.mrf.mxu2 }
 0x376   : > { %v1960_v20 = vadd.f32 %v4226_v31, %v1959_v50  ;;  %v1911_v54 = vpop.f32.mrf.mxu0 }
 0x377   : > { %v1912_v25 = vadd.f32 %v4226_v31, %v1911_v54 }
 0x378   : > { %2013 = vst [vmem:[%s4232_s10 + $0xa8] sm:$0xff] %v1960_v20 }
 0x379   : > { %1997 = vst [vmem:[%s4232_s10 + $0x28] sm:$0xff] %v1912_v25 }
 0x37c   : > { %v1983_v8 = vpop.f32.mrf.mxu3 }
 0x37d   : > { %v1984_v61 = vadd.f32 %v4226_v31, %v1983_v8 }
 0x37f   : > { %2021 = vst [vmem:[%s4232_s10 + $0xe8] sm:$0xff] %v1984_v61 }
 0x386   : > { %v1935_v49 = vpop.f32.mrf.mxu1 }
 0x387   : > { %v1936_v45 = vadd.f32 %v4226_v31, %v1935_v49 }
 0x389   : > { %2005 = vst [vmem:[%s4232_s10 + $0x68] sm:$0xff] %v1936_v45 }
 0x393   : > { %v1986_v43 = vpop.f32.mrf.mxu3 }
 0x394   : > { %v1962_v22 = vpop.f32.mrf.mxu2  ;;  %v1987_v7 = vadd.f32 %v4226_v31, %v1986_v43 }
 0x395   : > { %v1963_v24 = vadd.f32 %v4226_v31, %v1962_v22 }
 0x396   : > { %2022 = vst [vmem:[%s4232_s10 + $0xf0] sm:$0xff] %v1987_v7 }
 0x397   : > { %2014 = vst [vmem:[%s4232_s10 + $0xb0] sm:$0xff] %v1963_v24 }
 0x39d   : > { %v1938_v13 = vpop.f32.mrf.mxu1 }
 0x39e   : > { %v1914_v35 = vpop.f32.mrf.mxu0  ;;  %v1939_v16 = vadd.f32 %v4226_v31, %v1938_v13 }
 0x39f   : > { %v1915_v32 = vadd.f32 %v4226_v31, %v1914_v35 }
 0x3a0   : > { %2006 = vst [vmem:[%s4232_s10 + $0x70] sm:$0xff] %v1939_v16 }
 0x3a1   : > { %1998 = vst [vmem:[%s4232_s10 + $0x30] sm:$0xff] %v1915_v32 }
 0x3ab   : > { %v1965_v41 = vpop.f32.mrf.mxu2 }
 0x3ac   : > { %v1966_v58 = vadd.f32 %v4226_v31, %v1965_v41 }
 0x3ad   : > { %v1989_v6 = vpop.f32.mrf.mxu3 }
 0x3ae   : > { %2015 = vst [vmem:[%s4232_s10 + $0xb8] sm:$0xff] %v1966_v58  ;;  %v1990_v38 = vadd.f32 %v4226_v31, %v1989_v6 }
 0x3af   : > { %v1917_v36 = vpop.f32.mrf.mxu0 }
 0x3b0   : > { %2023 = vst [vmem:[%s4232_s10 + $0xf8] sm:$0xff] %v1990_v38  ;;  %v1918_v44 = vadd.f32 %v4226_v31, %v1917_v36 }
 0x3b2   : > { %1999 = vst [vmem:[%s4232_s10 + $0x38] sm:$0xff] %v1918_v44 }
 0x3b6   : > { %v1941_v3 = vpop.f32.mrf.mxu1 }
 0x3b7   : > { %v1942_v46 = vadd.f32 %v4226_v31, %v1941_v3 }
 0x3b9   : > { %2007 = vst [vmem:[%s4232_s10 + $0x78] sm:$0xff] %v1942_v46 }
 0x3ba   : > { %2477 = shalt.err (!%p2474_p5)
}
 0x3bb   : > { %s2538_s30 = smov 128  }
 0x3bc   : > { %2380 = dma.vmem_to_hbm [thread:$0]  (%p2599_p4), %s2041_s23, 4096, %s2043_s26, %s2025_s15, %s2538_s30, %s2538_s30, %s2531_s5  }
 0x3bd PF: > { %p2386_p6 = scmp.ge.s32.totalorder %s2528_s17, 2  ;;  %s2057_s9 = sand.u32 1, %s2508_s12  }
 0x3be   : > { %s2058_s10 = scalar_lea.sflag [#allocation3], %s2057_s9 }
 0x3bf   : > { %p2383_p7 = pnand %p2386_p6, %p2606_p8 }
 0x3c1   : > { %p2384_p9 = pneg %p2383_p7 }
 0x3c3   : > { %2503 = dma.done.wait (%p2384_p9), %s2058_s10, 4096  }
 0x3c4   : > { %2505 = vsyncadd (%p2384_p9), %s2058_s10, 4294963200  ;;  %s16_s17 = sadd.s32 1, %s2528_s17   ;;  %s4679_s12 = smov %s2512_s13 }
 0x3c5   : > { %p13_p10 = scmp.ge.s32.totalorder %s16_s17, 4   ;;  %s4680_s13 = smov %s2516_s14 }
 0x3c6   : > { %s4681_s14 = smov %s2612_s25  ;;  %s4682_s15 = smov %s2524_s16 }
 0x3c7   : > { %s4683_s16 = smov %s4685_s20  ;;  %15 = sbr.rel (!%p13_p10) target bundleno = 4 (0x4), region = 70 }
 0x3cc   :  { %2064 = vsyncpa [#allocation3], 1 }
 0x3cd   :  { %2066 = vsyncpa [#allocation3 + $0x1], 1 }

// kernel: tpu_custom_call.1
= control target key start
LH: loop header
LB: loop body
LE: loop exit
PB: predicated region body
PF: predicated region fallthrough
CT: control target
= control target key end

     0   :  { %8 = vsyncpa [#allocation3], 0  ;;  %s4706_s0 = inlined_call_operand.vmem [shape: f32[2,18,18,4], index: 0, kind: input, shape index: {}]   ;;  %s4707_s1 = inlined_call_operand.vmem [shape: f32[36,128], index: 1, kind: input, shape index: {}]   ;;  %s4708_s2 = inlined_call_operand.vmem [shape: f32[1,128], index: 2, kind: input, shape index: {}]   ;;  %s4709_s3 = inlined_call_operand.hbm [shape: f32[2,16,16,128], index: 3, kind: output, shape index: {}]  }
   0x1   :  { %10 = vsyncpa [#allocation3 + $0x1], 0  ;;  %s3460_s12 = smov 0   ;;  %s3462_s13 = smov 0  }
   0x2   :  { %s3464_s14 = smov 0   ;;  %s3466_s15 = smov 0  }
   0x3   :  { %s3468_s16 = smov 0   ;;  %s3470_s17 = smov 0  }
   0x4 LB: > { %s2794_s18 = sadd.s32 4294967295, %s3436_s17   ;;  %s2795_s19 = sadd.s32 4294967294, %s3436_s17   ;;  %s3436_s17 = sphi %s3470_s17, %s16_s17   ;;  %s3432_s16 = sphi %s3468_s16, %s4832_s16   ;;  %s3428_s15 = sphi %s3466_s15, %s4831_s15   ;;  %s3424_s14 = sphi %s3464_s14, %s4830_s14   ;;  %s3420_s13 = sphi %s3462_s13, %s4829_s13   ;;  %s3416_s12 = sphi %s3460_s12, %s4828_s12  }
   0x5   : > { %s28_s20 = sadd.s32 1, %s3432_s16  ;;  %s105_s21 = sadd.s32 1, %s3424_s14 }
   0x6   : > { %p30_p0 = scmp.ge.s32.totalorder %s28_s20, 2  ;;  %p115_p1 = scmp.ne.s32.totalorder %s3424_s14, %s3420_s13 }
   0x7   : > { %p116_p2 = scmp.eq.s32.totalorder %s2794_s18, 1  ;;  %p121_p3 = scmp.ne.s32.totalorder %s3420_s13, %s3416_s12 }
   0x8   : > { %s4834_s20 = smov (%p30_p0, %s28_s20), 0  ;;  %p122_p5 = scmp.eq.s32.totalorder %s2795_s19, 1 }
   0x9   : > { %p3500_p4 = por %p116_p2, %p115_p1  ;;  %s100_s23 = ssub.s32 %s3432_s16, %s4834_s20 }
   0xa   : > { %p2798_p6 = scmp.ge.s32.totalorder %s3436_s17, 1  ;;  %p103_p7 = scmp.eq.s32.totalorder %s100_s23, 0 }
   0xb   : > { %p3507_p8 = por %p122_p5, %p121_p3  ;;  %p154_p9 = scmp.lt.s32.totalorder %s3436_s17, 3 }
   0xc   : > { %s3513_s25 = scalar_select %p103_p7, %s3424_s14, %s105_s21  }
   0xd   : > { %p155_p10 = pnand %p2798_p6, %p154_p9 }
   0xf   : > { %158 = sbr.rel (%p155_p10) target bundleno = 741 (0x2e5), region = 32 }
  0x14   : > { %v482_v0 = vld [vmem:[%s4707_s1 + $0x4] sm:$0xf]  ;;  %vm580_vm0 = vcmask 1043456   ;;  %p178_p11 = scmp.lt.s32.totalorder %s3428_s15, 1  ;;  %v909_v1 = vld [vmem:[%s4707_s1 + $0x8] sm:$0xf] }
  0x15   : > { %3296 = vmatpush.msk.msra.mxu1 %vm580_vm0, %v482_v0  ;;  %3297 = vmatpush.msk.msra.mxu2 %vm580_vm0, %v482_v0  ;;  %v1154_v2 = vld [vmem:[%s4707_s1 + $0xc] sm:$0xf]  ;;  %v481_v3 = vld [vmem:[%s4707_s1] sm:$0xf]  ;;  %v1399_v4 = vld [vmem:[%s4707_s1 + $0x10] sm:$0xf] }
  0x16   : > { %s179_s7 = scalar_select %p178_p11, %s3428_s15, 1  ;;  %3298 = vmatpush.msk.msra.mxu3 %vm580_vm0, %v482_v0  ;;  %2993 = vmatpush.msk.msra.mxu0 %vm580_vm0, %v482_v0  ;;  %vm483_vm1 = vcmask 31744   ;;  %v1889_v25 = vld [vmem:[%s4707_s1 + $0x18] sm:$0xf]  ;;  %v2134_v26 = vld [vmem:[%s4707_s1 + $0x1c] sm:$0xf] }
  0x17   : > { %3059 = vmatpush.msk.msrb.mxu2 %vm580_vm0, %v909_v1  ;;  %3026 = vmatpush.msk.msrb.mxu1 %vm580_vm0, %v481_v3  ;;  %v1644_v27 = vld [vmem:[%s4707_s1 + $0x14] sm:$0xf]  ;;  %v2379_v32 = vld [vmem:[%s4707_s1 + $0x20] sm:$0xf]  ;;  %s175_s5 = sand.u32 1, %s3420_s13   ;;  %s3378_s30 = scalar_lea.hbm %s4709_s3, 512 }
  0x18   : > { %3092 = vmatpush.msk.msrb.mxu3 %vm580_vm0, %v1154_v2  ;;  %s3299_s10 = smul.u32 432, %s179_s7  ;;  %3125 = vmatpush.msk.msrb.mxu0 %vm580_vm0, %v1399_v4  ;;  %s2799_s6 = sshll.u32 %s175_s5, 8 }
  0x19   : > { %s4462_s9 = scalar_lea.vmem [#allocation2], %s2799_s6 }
  0x1a   : > { %s3543_s19 = scalar_lea.vmem %s4706_s0, %s3299_s10  ;;  %s3295_s10 = sshll.u32 %s3428_s15, 8 }
  0x1b   : > { %v3546_v5 = vld [vmem:[%s3543_s19 + $0x61] sm:$0xff]  ;;  %v3563_v9 = vld [vmem:[%s3543_s19 + $0x69] sm:$0xff]  ;;  %v3580_v13 = vld [vmem:[%s3543_s19 + $0x79] sm:$0xff]  ;;  %s2708_s21 = sshll.u32 %s4462_s9, 4  ;;  %s2693_s15 = scalar_lea.sflag [#allocation3], %s175_s5  ;;  %s2709_s21 = int_to_ptr.vmem [resolvable:$true] %s2708_s21 }
  0x1c   : > { %v3549_v6 = vld [vmem:[%s3543_s19 + $0xc1] sm:$0xff]  ;;  %3002 = vmatmul.msk.f32.vlgmr.msra.gmra.mxu1 %vm483_vm1, %v3546_v5  ;;  %v3566_v10 = vld [vmem:[%s3543_s19 + $0xc9] sm:$0xff]  ;;  %v3583_v14 = vld [vmem:[%s3543_s19 + $0xd9] sm:$0xff] }
  0x1d   : > { %v3552_v7 = vld [vmem:[%s3543_s19 + $0x121] sm:$0xff]  ;;  %3010 = vmatmul.msk.f32.vlgmr.msra.gmra.mxu2 %vm483_vm1, %v3549_v6  ;;  %v3569_v11 = vld [vmem:[%s3543_s19 + $0x129] sm:$0xff]  ;;  %v3586_v15 = vld [vmem:[%s3543_s19 + $0x139] sm:$0xff]  ;;  %3158 = vmatpush.msk.msra.mxu1 %vm580_vm0, %v1644_v27 }
  0x1e   : > { %v219_v8 = vld [vmem:[%s3543_s19 + $0x1] sm:$0xff]  ;;  %3018 = vmatmul.msk.f32.vlgmr.msra.gmra.mxu3 %vm483_vm1, %v3552_v7  ;;  %v220_v12 = vld [vmem:[%s3543_s19 + $0x9] sm:$0xff]  ;;  %v221_v16 = vld [vmem:[%s3543_s19 + $0x19] sm:$0xff]  ;;  %3191 = vmatpush.msk.msra.mxu2 %vm580_vm0, %v1889_v25 }
  0x1f   : > { %2994 = vmatmul.msk.f32.vlgmr.msra.gmra.mxu0 %vm483_vm1, %v219_v8  ;;  %v3597_v17 = vld [vmem:[%s3543_s19 + $0x81] sm:$0xff]  ;;  %v3614_v21 = vld [vmem:[%s3543_s19 + $0x91] sm:$0xff]  ;;  %3224 = vmatpush.msk.msra.mxu3 %vm580_vm0, %v2134_v26  ;;  %v3646_v28 = vld [vmem:[%s3543_s19 + $0x99] sm:$0xff] }
  0x20   : > { %v3600_v18 = vld [vmem:[%s3543_s19 + $0xe1] sm:$0xff]  ;;  %v3617_v22 = vld [vmem:[%s3543_s19 + $0xf1] sm:$0xff]  ;;  %v3649_v29 = vld [vmem:[%s3543_s19 + $0xf9] sm:$0xff]  ;;  %3257 = vmatpush.msk.msra.mxu0 %vm580_vm0, %v2379_v32 }
  0x21   : > { %v3603_v19 = vld [vmem:[%s3543_s19 + $0x141] sm:$0xff]  ;;  %v3620_v23 = vld [vmem:[%s3543_s19 + $0x151] sm:$0xff]  ;;  %v3652_v30 = vld [vmem:[%s3543_s19 + $0x159] sm:$0xff] }
  0x22   : > { %v222_v20 = vld [vmem:[%s3543_s19 + $0x21] sm:$0xff]  ;;  %v3623_v24 = vld [vmem:[%s3543_s19 + $0x31] sm:$0xff]  ;;  %v3655_v31 = vld [vmem:[%s3543_s19 + $0x39] sm:$0xff] }
  0x23   : > { %v3670_v33 = vld [vmem:[%s3543_s19 + $0xa9] sm:$0xff]  ;;  %v3690_v37 = vld [vmem:[%s3543_s19 + $0xb1] sm:$0xff]  ;;  %v187_v41 = vld [vmem:[%s3543_s19] sm:$0xff] }
  0x24   : > { %3003 = vmatmul.msk.f32.gmra.mxu1 %vm483_vm1, %v3563_v9  ;;  %v3673_v34 = vld [vmem:[%s3543_s19 + $0x109] sm:$0xff]  ;;  %v3693_v38 = vld [vmem:[%s3543_s19 + $0x111] sm:$0xff]  ;;  %v2802_v46 = vld [vmem:[%s3543_s19 + $0x20] sm:$0xff] }
  0x25   : > { %3011 = vmatmul.msk.f32.gmra.mxu2 %vm483_vm1, %v3566_v10  ;;  %v3676_v35 = vld [vmem:[%s3543_s19 + $0x169] sm:$0xff]  ;;  %v3696_v39 = vld [vmem:[%s3543_s19 + $0x171] sm:$0xff]  ;;  %v3724_v47 = vld [vmem:[%s3543_s19 + $0x1a] sm:$0xff] }
  0x26   : > { %3019 = vmatmul.msk.f32.gmra.mxu3 %vm483_vm1, %v3569_v11  ;;  %v3679_v36 = vld [vmem:[%s3543_s19 + $0x49] sm:$0xff]  ;;  %v3699_v40 = vld [vmem:[%s3543_s19 + $0x51] sm:$0xff]  ;;  %v3764_v53 = vld [vmem:[%s3543_s19 + $0x3a] sm:$0xff] }
  0x27   : > { %2995 = vmatmul.msk.f32.gmra.mxu0 %vm483_vm1, %v220_v12  ;;  %v251_v42 = vld [vmem:[%s3543_s19 + $0x2] sm:$0xff]  ;;  %v2801_v43 = vld [vmem:[%s3543_s19 + $0x18] sm:$0xff]  ;;  %v252_v45 = vld [vmem:[%s3543_s19 + $0xa] sm:$0xff] }
  0x28   : > { %v188_v44 = vld [vmem:[%s3543_s19 + $0x8] sm:$0xff]  ;;  %v3727_v48 = vld [vmem:[%s3543_s19 + $0x30] sm:$0xff]  ;;  %v3740_v50 = vld [vmem:[%s3543_s19 + $0x38] sm:$0xff] }
  0x29   : > { %v3737_v49 = vld [vmem:[%s3543_s19 + $0x22] sm:$0xff]  ;;  %v3750_v51 = vld [vmem:[%s3543_s19 + $0x32] sm:$0xff]  ;;  %v3778_v55 = vld [vmem:[%s3543_s19 + $0x4a] sm:$0xff] }
  0x2a   : > { %v3753_v52 = vld [vmem:[%s3543_s19 + $0x48] sm:$0xff]  ;;  %v3767_v54 = vld [vmem:[%s3543_s19 + $0x50] sm:$0xff]  ;;  %v3781_v56 = vld [vmem:[%s3543_s19 + $0x60] sm:$0xff] }
  0x2b   : > { %v3792_v57 = vld [vmem:[%s3543_s19 + $0x52] sm:$0xff]  ;;  %v3795_v58 = vld [vmem:[%s3543_s19 + $0x68] sm:$0xff]  ;;  %v3833_v3 = vld [vmem:[%s3543_s19 + $0x80] sm:$0xff] }
  0x2c   : > { %3004 = vmatmul.msk.f32.gmra.mxu1 %vm483_vm1, %v3580_v13  ;;  %4740 = vst [vmem:[#allocation5_spill] sm:$0xff] %v3795_v58  ;;  %v3808_v60 = vld [vmem:[%s3543_s19 + $0x62] sm:$0xff]  ;;  %v3811_v61 = vld [vmem:[%s3543_s19 + $0x78] sm:$0xff]  ;;  %v3830_v2 = vld [vmem:[%s3543_s19 + $0x6a] sm:$0xff] }
  0x2d   : > { %3012 = vmatmul.msk.f32.gmra.mxu2 %vm483_vm1, %v3583_v14  ;;  %4741 = vst [vmem:[#allocation6_spill] sm:$0xff] %v3811_v61  ;;  %v3852_v12 = vld [vmem:[%s3543_s19 + $0x7a] sm:$0xff]  ;;  %v3874_v26 = vld [vmem:[%s3543_s19 + $0x82] sm:$0xff] }
  0x2e   : > { %3020 = vmatmul.msk.f32.gmra.mxu3 %vm483_vm1, %v3586_v15  ;;  %4743 = vst [vmem:[#allocation8_spill] sm:$0xff] %v3830_v2  ;;  %v3877_v27 = vld [vmem:[%s3543_s19 + $0x98] sm:$0xff] }
  0x2f   : > { %2996 = vmatmul.msk.f32.gmra.mxu0 %vm483_vm1, %v221_v16  ;;  %4744 = vst [vmem:[#allocation9_spill] sm:$0xff] %v3833_v3 }
  0x30   : > { %4746 = vst [vmem:[#allocation11_spill] sm:$0xff] %v3852_v12 }
  0x31   : > { %4749 = vst [vmem:[#allocation14_spill] sm:$0xff] %v3874_v26 }
  0x32   : > { %4750 = vst [vmem:[#allocation15_spill] sm:$0xff] %v3877_v27 }
  0x34   : > { %3005 = vmatmul.msk.f32.gmra.mxu1 %vm483_vm1, %v3597_v17 }
  0x35   : > { %3013 = vmatmul.msk.f32.gmra.mxu2 %vm483_vm1, %v3600_v18 }
  0x36   : > { %3021 = vmatmul.msk.f32.gmra.mxu3 %vm483_vm1, %v3603_v19 }
  0x37   : > { %2997 = vmatmul.msk.f32.gmra.mxu0 %vm483_vm1, %v222_v20 }
  0x3c   : > { %3006 = vmatmul.msk.f32.gmra.mxu1 %vm483_vm1, %v3614_v21 }
  0x3d   : > { %3014 = vmatmul.msk.f32.gmra.mxu2 %vm483_vm1, %v3617_v22 }
  0x3e   : > { %3022 = vmatmul.msk.f32.gmra.mxu3 %vm483_vm1, %v3620_v23 }
  0x3f   : > { %2998 = vmatmul.msk.f32.gmra.mxu0 %vm483_vm1, %v3623_v24 }
  0x44   : > { %3007 = vmatmul.msk.f32.gmra.mxu1 %vm483_vm1, %v3646_v28 }
  0x45   : > { %3015 = vmatmul.msk.f32.gmra.mxu2 %vm483_vm1, %v3649_v29 }
  0x46   : > { %3023 = vmatmul.msk.f32.gmra.mxu3 %vm483_vm1, %v3652_v30 }
  0x47   : > { %2999 = vmatmul.msk.f32.gmra.mxu0 %vm483_vm1, %v3655_v31 }
  0x4c   : > { %3008 = vmatmul.msk.f32.gmra.mxu1 %vm483_vm1, %v3670_v33 }
  0x4d   : > { %3016 = vmatmul.msk.f32.gmra.mxu2 %vm483_vm1, %v3673_v34 }
  0x4e   : > { %3024 = vmatmul.msk.f32.gmra.mxu3 %vm483_vm1, %v3676_v35 }
  0x4f   : > { %3000 = vmatmul.msk.f32.gmra.mxu0 %vm483_vm1, %v3679_v36 }
  0x54   : > { %3009 = vmatmul.msk.f32.gmra.mxu1 %vm483_vm1, %v3690_v37 }
  0x55   : > { %3017 = vmatmul.msk.f32.gmra.mxu2 %vm483_vm1, %v3693_v38 }
  0x56   : > { %3025 = vmatmul.msk.f32.gmra.mxu3 %vm483_vm1, %v3696_v39 }
  0x57   : > { %3001 = vmatmul.msk.f32.gmra.mxu0 %vm483_vm1, %v3699_v40 }
  0x5c   : > { %3027 = vmatmul.msk.f32.vlgmr.msrb.gmra.mxu1 %vm483_vm1, %v187_v41 }
  0x5d   : > { %3060 = vmatmul.msk.f32.vlgmr.msrb.gmra.mxu2 %vm483_vm1, %v251_v42 }
  0x5e   : > { %3093 = vmatmul.msk.f32.vlgmr.msrb.gmra.mxu3 %vm483_vm1, %v2801_v43 }
  0x5f   : > { %3126 = vmatmul.msk.f32.vlgmr.msrb.gmra.mxu0 %vm483_vm1, %v221_v16 }
  0x64   : > { %3028 = vmatmul.msk.f32.gmra.mxu1 %vm483_vm1, %v188_v44  ;;  %v3899_v44 = vld [vmem:[%s3543_s19 + $0xa8] sm:$0xff] }
  0x65   : > { %3061 = vmatmul.msk.f32.gmra.mxu2 %vm483_vm1, %v252_v45  ;;  %4753 = vst [vmem:[#allocation18_spill] sm:$0xff] %v3899_v44 }
  0x66   : > { %3094 = vmatmul.msk.f32.gmra.mxu3 %vm483_vm1, %v2802_v46 }
  0x67   : > { %3127 = vmatmul.msk.f32.gmra.mxu0 %vm483_vm1, %v222_v20 }
  0x6c   : > { %3029 = vmatmul.msk.f32.gmra.mxu1 %vm483_vm1, %v2801_v43  ;;  %v3896_v43 = vld [vmem:[%s3543_s19 + $0x92] sm:$0xff] }
  0x6d   : > { %3062 = vmatmul.msk.f32.gmra.mxu2 %vm483_vm1, %v3724_v47  ;;  %4752 = vst [vmem:[#allocation17_spill] sm:$0xff] %v3896_v43 }
  0x6e   : > { %3095 = vmatmul.msk.f32.gmra.mxu3 %vm483_vm1, %v3727_v48 }
  0x6f   : > { %3128 = vmatmul.msk.f32.gmra.mxu0 %vm483_vm1, %v3623_v24 }
  0x74   : > { %3030 = vmatmul.msk.f32.gmra.mxu1 %vm483_vm1, %v2802_v46 }
  0x75   : > { %3063 = vmatmul.msk.f32.gmra.mxu2 %vm483_vm1, %v3737_v49 }
  0x76   : > { %3096 = vmatmul.msk.f32.gmra.mxu3 %vm483_vm1, %v3740_v50 }
  0x77   : > { %3129 = vmatmul.msk.f32.gmra.mxu0 %vm483_vm1, %v3655_v31 }
  0x7c   : > { %3031 = vmatmul.msk.f32.gmra.mxu1 %vm483_vm1, %v3727_v48 }
  0x7d   : > { %3064 = vmatmul.msk.f32.gmra.mxu2 %vm483_vm1, %v3750_v51 }
  0x7e   : > { %3097 = vmatmul.msk.f32.gmra.mxu3 %vm483_vm1, %v3753_v52 }
  0x7f   : > { %3130 = vmatmul.msk.f32.gmra.mxu0 %vm483_vm1, %v3679_v36 }
  0x84   : > { %3032 = vmatmul.msk.f32.gmra.mxu1 %vm483_vm1, %v3740_v50 }
  0x85   : > { %3065 = vmatmul.msk.f32.gmra.mxu2 %vm483_vm1, %v3764_v53 }
  0x86   : > { %3098 = vmatmul.msk.f32.gmra.mxu3 %vm483_vm1, %v3767_v54 }
  0x87   : > { %3131 = vmatmul.msk.f32.gmra.mxu0 %vm483_vm1, %v3699_v40 }
  0x8c   : > { %3033 = vmatmul.msk.f32.gmra.mxu1 %vm483_vm1, %v3753_v52 }
  0x8d   : > { %3066 = vmatmul.msk.f32.gmra.mxu2 %vm483_vm1, %v3778_v55 }
  0x8e   : > { %3099 = vmatmul.msk.f32.gmra.mxu3 %vm483_vm1, %v3781_v56 }
  0x8f   : > { %3132 = vmatmul.msk.f32.gmra.mxu0 %vm483_vm1, %v3546_v5 }
  0x94   : > { %3034 = vmatmul.msk.f32.gmra.mxu1 %vm483_vm1, %v3767_v54 }
  0x95   : > { %3067 = vmatmul.msk.f32.gmra.mxu2 %vm483_vm1, %v3792_v57 }
  0x96   : > { %3100 = vmatmul.msk.f32.gmra.mxu3 %vm483_vm1, %v3795_v58 }
  0x97   : > { %3133 = vmatmul.msk.f32.gmra.mxu0 %vm483_vm1, %v3563_v9 }
  0x99   : > { %v3805_v59 = vpop.f32.mrf.mxu1 }
  0x9c   : > { %v3813_v62 = vpop.f32.mrf.mxu0  ;;  %3035 = vmatmul.msk.f32.gmra.mxu1 %vm483_vm1, %v3781_v56 }
  0x9d   : > { %3068 = vmatmul.msk.f32.gmra.mxu2 %vm483_vm1, %v3808_v60 }
  0x9e   : > { %3101 = vmatmul.msk.f32.gmra.mxu3 %vm483_vm1, %v3811_v61 }
  0x9f   : > { %3134 = vmatmul.msk.f32.gmra.mxu0 %vm483_vm1, %v3580_v13  ;;  %v3855_v13 = vld [vmem:[%s3543_s19 + $0x90] sm:$0xff] }
  0xa0   : > { %v3823_v63 = vpop.f32.mrf.mxu2  ;;  %4747 = vst [vmem:[#allocation12_spill] sm:$0xff] %v3855_v13 }
  0xa1   : > { %v3825_v0 = vpop.f32.mrf.mxu3  ;;  %v3827_v1 = vpop.f32.mrf.mxu1 }
  0xa2   : > { %4742 = vst [vmem:[#allocation7_spill] sm:$0xff] %v3825_v0 }
  0xa4   : > { %v3835_v4 = vpop.f32.mrf.mxu0  ;;  %3036 = vmatmul.msk.f32.gmra.mxu1 %vm483_vm1, %v3795_v58  ;;  %v4000_v58 = vld [vmem:[%s3543_s19 + $0xe0] sm:$0xff] }
  0xa5   : > { %3069 = vmatmul.msk.f32.gmra.mxu2 %vm483_vm1, %v3830_v2  ;;  %v3997_v2 = vld [vmem:[%s3543_s19 + $0xca] sm:$0xff] }
  0xa6   : > { %3102 = vmatmul.msk.f32.gmra.mxu3 %vm483_vm1, %v3833_v3 }
  0xa7   : > { %3135 = vmatmul.msk.f32.gmra.mxu0 %vm483_vm1, %v3597_v17 }
  0xa8   : > { %v3845_v5 = vpop.f32.mrf.mxu2 }
  0xa9   : > { %v3847_v8 = vpop.f32.mrf.mxu3  ;;  %v3849_v9 = vpop.f32.mrf.mxu1 }
  0xaa   : > { %4745 = vst [vmem:[#allocation10_spill] sm:$0xff] %v3847_v8  ;;  %v3921_v8 = vld [vmem:[%s3543_s19 + $0xb0] sm:$0xff] }
  0xab   : > { %4757 = vst [vmem:[#allocation22_spill] sm:$0xff] %v3921_v8 }
  0xac   : > { %v3857_v16 = vpop.f32.mrf.mxu0  ;;  %3037 = vmatmul.msk.f32.gmra.mxu1 %vm483_vm1, %v3811_v61  ;;  %v3985_v61 = vld [vmem:[%s3543_s19 + $0xd8] sm:$0xff] }
  0xad   : > { %3070 = vmatmul.msk.f32.gmra.mxu2 %vm483_vm1, %v3852_v12 }
  0xae   : > { %3103 = vmatmul.msk.f32.gmra.mxu3 %vm483_vm1, %v3855_v13 }
  0xaf   : > { %3136 = vmatmul.msk.f32.gmra.mxu0 %vm483_vm1, %v3614_v21 }
  0xb0   : > { %v3867_v17 = vpop.f32.mrf.mxu2 }
  0xb1   : > { %v3869_v20 = vpop.f32.mrf.mxu3  ;;  %v3871_v25 = vpop.f32.mrf.mxu1 }
  0xb2   : > { %4748 = vst [vmem:[#allocation13_spill] sm:$0xff] %v3869_v20  ;;  %v3918_v20 = vld [vmem:[%s3543_s19 + $0x9a] sm:$0xff] }
  0xb3   : > { %4756 = vst [vmem:[#allocation21_spill] sm:$0xff] %v3918_v20 }
  0xb4   : > { %v3879_v32 = vpop.f32.mrf.mxu0  ;;  %3038 = vmatmul.msk.f32.gmra.mxu1 %vm483_vm1, %v3833_v3  ;;  %v3962_v3 = vld [vmem:[%s3543_s19 + $0xb2] sm:$0xff] }
  0xb5   : > { %3071 = vmatmul.msk.f32.gmra.mxu2 %vm483_vm1, %v3874_v26  ;;  %4764 = vst [vmem:[#allocation29_spill] sm:$0xff] %v3962_v3 }
  0xb6   : > { %3104 = vmatmul.msk.f32.gmra.mxu3 %vm483_vm1, %v3877_v27 }
  0xb7   : > { %3137 = vmatmul.msk.f32.gmra.mxu0 %vm483_vm1, %v3646_v28 }
  0xb8   : > { %v3889_v21 = vpop.f32.mrf.mxu2 }
  0xb9   : > { %v3891_v41 = vpop.f32.mrf.mxu3  ;;  %v3893_v42 = vpop.f32.mrf.mxu1 }
  0xba   : > { %4751 = vst [vmem:[#allocation16_spill] sm:$0xff] %v3891_v41 }
  0xbc   : > { %v3901_v45 = vpop.f32.mrf.mxu0  ;;  %3039 = vmatmul.msk.f32.gmra.mxu1 %vm483_vm1, %v3855_v13  ;;  %v3940_v13 = vld [vmem:[%s3543_s19 + $0xaa] sm:$0xff] }
  0xbd   : > { %3072 = vmatmul.msk.f32.gmra.mxu2 %vm483_vm1, %v3896_v43  ;;  %4760 = vst [vmem:[#allocation25_spill] sm:$0xff] %v3940_v13 }
  0xbe   : > { %3105 = vmatmul.msk.f32.gmra.mxu3 %vm483_vm1, %v3899_v44 }
  0xbf   : > { %3138 = vmatmul.msk.f32.gmra.mxu0 %vm483_vm1, %v3670_v33 }
  0xc0   : > { %v3911_v28 = vpop.f32.mrf.mxu2 }
  0xc1   : > { %4754 = vst [vmem:[#allocation19_spill] sm:$0xff] %v3911_v28  ;;  %v3913_v46 = vpop.f32.mrf.mxu3  ;;  %v3915_v41 = vpop.f32.mrf.mxu1 }
  0xc2   : > { %4755 = vst [vmem:[#allocation20_spill] sm:$0xff] %v3913_v46 }
  0xc4   : > { %v3923_v0 = vpop.f32.mrf.mxu0  ;;  %3040 = vmatmul.msk.f32.gmra.mxu1 %vm483_vm1, %v3877_v27  ;;  %v3943_v27 = vld [vmem:[%s3543_s19 + $0xc0] sm:$0xff] }
  0xc5   : > { %3073 = vmatmul.msk.f32.gmra.mxu2 %vm483_vm1, %v3918_v20  ;;  %4761 = vst [vmem:[#allocation26_spill] sm:$0xff] %v3943_v27 }
  0xc6   : > { %3106 = vmatmul.msk.f32.gmra.mxu3 %vm483_vm1, %v3921_v8 }
  0xc7   : > { %3139 = vmatmul.msk.f32.gmra.mxu0 %vm483_vm1, %v3690_v37 }
  0xc8   : > { %v3933_v33 = vpop.f32.mrf.mxu2 }
  0xc9   : > { %4758 = vst [vmem:[#allocation23_spill] sm:$0xff] %v3933_v33  ;;  %v3935_v46 = vpop.f32.mrf.mxu3  ;;  %v3937_v43 = vpop.f32.mrf.mxu1 }
  0xca   : > { %4759 = vst [vmem:[#allocation24_spill] sm:$0xff] %v3935_v46 }
  0xcc   : > { %v3945_v26 = vpop.f32.mrf.mxu0  ;;  %3041 = vmatmul.msk.f32.gmra.mxu1 %vm483_vm1, %v3899_v44  ;;  %v3965_v44 = vld [vmem:[%s3543_s19 + $0xc8] sm:$0xff] }
  0xcd   : > { %3074 = vmatmul.msk.f32.gmra.mxu2 %vm483_vm1, %v3940_v13 }
  0xce   : > { %3107 = vmatmul.msk.f32.gmra.mxu3 %vm483_vm1, %v3943_v27 }
  0xcf   : > { %3140 = vmatmul.msk.f32.gmra.mxu0 %vm483_vm1, %v3549_v6 }
  0xd0   : > { %v3955_v37 = vpop.f32.mrf.mxu2 }
  0xd1   : > { %4762 = vst [vmem:[#allocation27_spill] sm:$0xff] %v3955_v37  ;;  %v3957_v46 = vpop.f32.mrf.mxu3  ;;  %v3959_v20 = vpop.f32.mrf.mxu1  ;;  %v3982_v37 = vld [vmem:[%s3543_s19 + $0xc2] sm:$0xff] }
  0xd2   : > { %4763 = vst [vmem:[#allocation28_spill] sm:$0xff] %v3957_v46 }
  0xd3   : > { %4767 = vst [vmem:[#allocation32_spill] sm:$0xff] %v3982_v37 }
  0xd4   : > { %v3967_v12 = vpop.f32.mrf.mxu0  ;;  %3042 = vmatmul.msk.f32.gmra.mxu1 %vm483_vm1, %v3921_v8 }
  0xd5   : > { %3075 = vmatmul.msk.f32.gmra.mxu2 %vm483_vm1, %v3962_v3 }
  0xd6   : > { %3108 = vmatmul.msk.f32.gmra.mxu3 %vm483_vm1, %v3965_v44 }
  0xd7   : > { %3141 = vmatmul.msk.f32.gmra.mxu0 %vm483_vm1, %v3566_v10 }
  0xd8   : > { %v3977_v6 = vpop.f32.mrf.mxu2 }
  0xd9   : > { %4765 = vst [vmem:[#allocation30_spill] sm:$0xff] %v3977_v6  ;;  %v3979_v46 = vpop.f32.mrf.mxu3  ;;  %v813_v13 = vpop.f32.mrf.mxu1 }
  0xda   : > { %4766 = vst [vmem:[#allocation31_spill] sm:$0xff] %v3979_v46  ;;  %v814_v10 = vadd.f32 %v813_v13, %v3813_v62 }
  0xdc   : > { %v1516_v8 = vpop.f32.mrf.mxu0  ;;  %3043 = vmatmul.msk.f32.gmra.mxu1 %vm483_vm1, %v3943_v27 }
  0xdd   : > { %3076 = vmatmul.msk.f32.gmra.mxu2 %vm483_vm1, %v3982_v37 }
  0xde   : > { %3109 = vmatmul.msk.f32.gmra.mxu3 %vm483_vm1, %v3985_v61 }
  0xdf   : > { %3142 = vmatmul.msk.f32.gmra.mxu0 %vm483_vm1, %v3583_v14 }
  0xe0   : > { %v1026_v46 = vpop.f32.mrf.mxu2 }
  0xe1   : > { %v1122_v3 = vadd.f32 %v1026_v46, %v814_v10  ;;  %v1271_v6 = vpop.f32.mrf.mxu3  ;;  %v816_v33 = vpop.f32.mrf.mxu1 }
  0xe2   : > { %v817_v14 = vadd.f32 %v816_v33, %v3835_v4 }
  0xe3   : > { %v1367_v27 = vadd.f32 %v1271_v6, %v1122_v3  ;;  %v4017_v6 = vld [vmem:[%s3543_s19 + $0xf0] sm:$0xff] }
  0xe4   : > { %v1519_v37 = vpop.f32.mrf.mxu0  ;;  %3044 = vmatmul.msk.f32.gmra.mxu1 %vm483_vm1, %v3965_v44 }
  0xe5   : > { %v4002_v28 = vadd.f32 %v1516_v8, %v1367_v27  ;;  %3077 = vmatmul.msk.f32.gmra.mxu2 %vm483_vm1, %v3997_v2  ;;  %v4014_v27 = vld [vmem:[%s3543_s19 + $0xda] sm:$0xff] }
  0xe6   : > { %3110 = vmatmul.msk.f32.gmra.mxu3 %vm483_vm1, %v4000_v58 }
  0xe7   : > { %4768 = vst [vmem:[#allocation33_spill] sm:$0xff] %v4002_v28  ;;  %3143 = vmatmul.msk.f32.gmra.mxu0 %vm483_vm1, %v3600_v18 }
  0xe8   : > { %v1029_v62 = vpop.f32.mrf.mxu2 }
  0xe9   : > { %v1123_v3 = vadd.f32 %v1029_v62, %v817_v14  ;;  %v1274_v13 = vpop.f32.mrf.mxu3  ;;  %v819_v8 = vpop.f32.mrf.mxu1  ;;  %v4031_v62 = vld [vmem:[%s3543_s19 + $0xe2] sm:$0xff] }
  0xea   : > { %v820_v18 = vadd.f32 %v819_v8, %v3857_v16 }
  0xeb   : > { %v1368_v46 = vadd.f32 %v1274_v13, %v1123_v3  ;;  %v4034_v13 = vld [vmem:[%s3543_s19 + $0xf8] sm:$0xff] }
  0xec   : > { %v1522_v10 = vpop.f32.mrf.mxu0  ;;  %3045 = vmatmul.msk.f32.gmra.mxu1 %vm483_vm1, %v3985_v61 }
  0xed   : > { %v4019_v28 = vadd.f32 %v1519_v37, %v1368_v46  ;;  %3078 = vmatmul.msk.f32.gmra.mxu2 %vm483_vm1, %v4014_v27 }
  0xee   : > { %3111 = vmatmul.msk.f32.gmra.mxu3 %vm483_vm1, %v4017_v6 }
  0xef   : > { %4769 = vst [vmem:[#allocation34_spill] sm:$0xff] %v4019_v28  ;;  %3144 = vmatmul.msk.f32.gmra.mxu0 %vm483_vm1, %v3617_v22 }
  0xf0   : > { %v1032_v4 = vpop.f32.mrf.mxu2 }
  0xf1   : > { %v1124_v33 = vadd.f32 %v1032_v4, %v820_v18  ;;  %v1277_v14 = vpop.f32.mrf.mxu3  ;;  %v822_v37 = vpop.f32.mrf.mxu1  ;;  %v4048_v4 = vld [vmem:[%s3543_s19 + $0xf2] sm:$0xff] }
  0xf2   : > { %v823_v22 = vadd.f32 %v822_v37, %v3879_v32 }
  0xf3   : > { %v1369_v3 = vadd.f32 %v1277_v14, %v1124_v33  ;;  %v4051_v14 = vld [vmem:[%s3543_s19 + $0x108] sm:$0xff] }
  0xf4   : > { %v1525_v46 = vpop.f32.mrf.mxu0  ;;  %3046 = vmatmul.msk.f32.gmra.mxu1 %vm483_vm1, %v4000_v58 }
  0xf5   : > { %v4036_v28 = vadd.f32 %v1522_v10, %v1369_v3  ;;  %3079 = vmatmul.msk.f32.gmra.mxu2 %vm483_vm1, %v4031_v62 }
  0xf6   : > { %3112 = vmatmul.msk.f32.gmra.mxu3 %vm483_vm1, %v4034_v13 }
  0xf7   : > { %4770 = vst [vmem:[#allocation35_spill] sm:$0xff] %v4036_v28  ;;  %3145 = vmatmul.msk.f32.gmra.mxu0 %vm483_vm1, %v3649_v29 }
  0xf8   : > { %v1035_v16 = vpop.f32.mrf.mxu2 }
  0xf9   : > { %v1125_v8 = vadd.f32 %v1035_v16, %v823_v22  ;;  %v1280_v18 = vpop.f32.mrf.mxu3  ;;  %v825_v10 = vpop.f32.mrf.mxu1  ;;  %v4065_v16 = vld [vmem:[%s3543_s19 + $0xfa] sm:$0xff] }
  0xfa   : > { %v826_v29 = vadd.f32 %v825_v10, %v3901_v45 }
  0xfb   : > { %v1370_v33 = vadd.f32 %v1280_v18, %v1125_v8  ;;  %v4068_v18 = vld [vmem:[%s3543_s19 + $0x110] sm:$0xff] }
  0xfc   : > { %v1528_v3 = vpop.f32.mrf.mxu0  ;;  %3047 = vmatmul.msk.f32.gmra.mxu1 %vm483_vm1, %v4017_v6 }
  0xfd   : > { %v4053_v28 = vadd.f32 %v1525_v46, %v1370_v33  ;;  %3080 = vmatmul.msk.f32.gmra.mxu2 %vm483_vm1, %v4048_v4 }
  0xfe   : > { %3113 = vmatmul.msk.f32.gmra.mxu3 %vm483_vm1, %v4051_v14 }
  0xff   : > { %4771 = vst [vmem:[#allocation36_spill] sm:$0xff] %v4053_v28  ;;  %3146 = vmatmul.msk.f32.gmra.mxu0 %vm483_vm1, %v3673_v34 }
 0x100   : > { %v1038_v32 = vpop.f32.mrf.mxu2 }
 0x101   : > { %v1126_v37 = vadd.f32 %v1038_v32, %v826_v29  ;;  %v1283_v22 = vpop.f32.mrf.mxu3  ;;  %v828_v46 = vpop.f32.mrf.mxu1  ;;  %v4082_v32 = vld [vmem:[%s3543_s19 + $0x10a] sm:$0xff] }
 0x102   : > { %v829_v34 = vadd.f32 %v828_v46, %v3923_v0 }
 0x103   : > { %v1371_v8 = vadd.f32 %v1283_v22, %v1126_v37  ;;  %v4085_v22 = vld [vmem:[%s3543_s19 + $0x120] sm:$0xff] }
 0x104   : > { %v1531_v33 = vpop.f32.mrf.mxu0  ;;  %3048 = vmatmul.msk.f32.gmra.mxu1 %vm483_vm1, %v4034_v13 }
 0x105   : > { %v4070_v28 = vadd.f32 %v1528_v3, %v1371_v8  ;;  %3081 = vmatmul.msk.f32.gmra.mxu2 %vm483_vm1, %v4065_v16 }
 0x106   : > { %3114 = vmatmul.msk.f32.gmra.mxu3 %vm483_vm1, %v4068_v18 }
 0x107   : > { %4772 = vst [vmem:[#allocation37_spill] sm:$0xff] %v4070_v28  ;;  %3147 = vmatmul.msk.f32.gmra.mxu0 %vm483_vm1, %v3693_v38 }
 0x108   : > { %v1041_v45 = vpop.f32.mrf.mxu2 }
 0x109   : > { %v1127_v10 = vadd.f32 %v1041_v45, %v829_v34  ;;  %v1286_v29 = vpop.f32.mrf.mxu3  ;;  %v831_v3 = vpop.f32.mrf.mxu1  ;;  %v4099_v45 = vld [vmem:[%s3543_s19 + $0x112] sm:$0xff] }
 0x10a   : > { %v832_v38 = vadd.f32 %v831_v3, %v3945_v26 }
 0x10b   : > { %v1372_v37 = vadd.f32 %v1286_v29, %v1127_v10  ;;  %v4102_v29 = vld [vmem:[%s3543_s19 + $0x128] sm:$0xff] }
 0x10c   : > { %v1534_v8 = vpop.f32.mrf.mxu0  ;;  %3049 = vmatmul.msk.f32.gmra.mxu1 %vm483_vm1, %v4051_v14 }
 0x10d   : > { %v4087_v28 = vadd.f32 %v1531_v33, %v1372_v37  ;;  %3082 = vmatmul.msk.f32.gmra.mxu2 %vm483_vm1, %v4082_v32 }
 0x10e   : > { %3115 = vmatmul.msk.f32.gmra.mxu3 %vm483_vm1, %v4085_v22 }
 0x10f   : > { %4773 = vst [vmem:[#allocation38_spill] sm:$0xff] %v4087_v28  ;;  %3148 = vmatmul.msk.f32.gmra.mxu0 %vm483_vm1, %v3552_v7 }
 0x110   : > { %v1044_v0 = vpop.f32.mrf.mxu2 }
 0x111   : > { %v1128_v46 = vadd.f32 %v1044_v0, %v832_v38  ;;  %v1289_v34 = vpop.f32.mrf.mxu3  ;;  %v834_v33 = vpop.f32.mrf.mxu1  ;;  %v4116_v0 = vld [vmem:[%s3543_s19 + $0x122] sm:$0xff] }
 0x112   : > { %v835_v7 = vadd.f32 %v834_v33, %v3967_v12 }
 0x113   : > { %v1373_v10 = vadd.f32 %v1289_v34, %v1128_v46  ;;  %v4119_v34 = vld [vmem:[%s3543_s19 + $0x138] sm:$0xff] }
 0x114   : > { %v1537_v37 = vpop.f32.mrf.mxu0  ;;  %3050 = vmatmul.msk.f32.gmra.mxu1 %vm483_vm1, %v4068_v18 }
 0x115   : > { %v4104_v28 = vadd.f32 %v1534_v8, %v1373_v10  ;;  %3083 = vmatmul.msk.f32.gmra.mxu2 %vm483_vm1, %v4099_v45 }
 0x116   : > { %3116 = vmatmul.msk.f32.gmra.mxu3 %vm483_vm1, %v4102_v29 }
 0x117   : > { %4774 = vst [vmem:[#allocation39_spill] sm:$0xff] %v4104_v28  ;;  %3149 = vmatmul.msk.f32.gmra.mxu0 %vm483_vm1, %v3569_v11 }
 0x118   : > { %v1047_v26 = vpop.f32.mrf.mxu2 }
 0x119   : > { %v1129_v3 = vadd.f32 %v1047_v26, %v835_v7  ;;  %v1292_v38 = vpop.f32.mrf.mxu3  ;;  %v837_v8 = vpop.f32.mrf.mxu1  ;;  %v4133_v26 = vld [vmem:[%s3543_s19 + $0x12a] sm:$0xff] }
 0x11a   : > { %v838_v11 = vadd.f32 %v837_v8, %v3805_v59 }
 0x11b   : > { %v1374_v46 = vadd.f32 %v1292_v38, %v1129_v3  ;;  %v4136_v38 = vld [vmem:[%s3543_s19 + $0x140] sm:$0xff] }
 0x11c   : > { %v1540_v10 = vpop.f32.mrf.mxu0  ;;  %3051 = vmatmul.msk.f32.gmra.mxu1 %vm483_vm1, %v4085_v22 }
 0x11d   : > { %v4121_v28 = vadd.f32 %v1537_v37, %v1374_v46  ;;  %3084 = vmatmul.msk.f32.gmra.mxu2 %vm483_vm1, %v4116_v0 }
 0x11e   : > { %3117 = vmatmul.msk.f32.gmra.mxu3 %vm483_vm1, %v4119_v34 }
 0x11f   : > { %4775 = vst [vmem:[#allocation40_spill] sm:$0xff] %v4121_v28  ;;  %3150 = vmatmul.msk.f32.gmra.mxu0 %vm483_vm1, %v3586_v15 }
 0x120   : > { %v1050_v12 = vpop.f32.mrf.mxu2 }
 0x121   : > { %v1130_v33 = vadd.f32 %v1050_v12, %v838_v11  ;;  %v1295_v7 = vpop.f32.mrf.mxu3  ;;  %v840_v37 = vpop.f32.mrf.mxu1  ;;  %v4150_v12 = vld [vmem:[%s3543_s19 + $0x13a] sm:$0xff] }
 0x122   : > { %v841_v15 = vadd.f32 %v840_v37, %v3827_v1 }
 0x123   : > { %v1375_v3 = vadd.f32 %v1295_v7, %v1130_v33  ;;  %v4153_v7 = vld [vmem:[%s3543_s19 + $0x150] sm:$0xff] }
 0x124   : > { %v1543_v46 = vpop.f32.mrf.mxu0  ;;  %3052 = vmatmul.msk.f32.gmra.mxu1 %vm483_vm1, %v4102_v29 }
 0x125   : > { %v4138_v28 = vadd.f32 %v1540_v10, %v1375_v3  ;;  %3085 = vmatmul.msk.f32.gmra.mxu2 %vm483_vm1, %v4133_v26 }
 0x126   : > { %3118 = vmatmul.msk.f32.gmra.mxu3 %vm483_vm1, %v4136_v38 }
 0x127   : > { %4776 = vst [vmem:[#allocation41_spill] sm:$0xff] %v4138_v28  ;;  %3151 = vmatmul.msk.f32.gmra.mxu0 %vm483_vm1, %v3603_v19 }
 0x128   : > { %v1053_v59 = vpop.f32.mrf.mxu2 }
 0x129   : > { %v1131_v8 = vadd.f32 %v1053_v59, %v841_v15  ;;  %v1298_v11 = vpop.f32.mrf.mxu3  ;;  %v843_v10 = vpop.f32.mrf.mxu1  ;;  %v4167_v59 = vld [vmem:[%s3543_s19 + $0x142] sm:$0xff] }
 0x12a   : > { %v844_v19 = vadd.f32 %v843_v10, %v3849_v9 }
 0x12b   : > { %v1376_v33 = vadd.f32 %v1298_v11, %v1131_v8  ;;  %v4170_v11 = vld [vmem:[%s3543_s19 + $0x158] sm:$0xff] }
 0x12c   : > { %v1546_v3 = vpop.f32.mrf.mxu0  ;;  %3053 = vmatmul.msk.f32.gmra.mxu1 %vm483_vm1, %v4119_v34 }
 0x12d   : > { %v4155_v28 = vadd.f32 %v1543_v46, %v1376_v33  ;;  %3086 = vmatmul.msk.f32.gmra.mxu2 %vm483_vm1, %v4150_v12 }
 0x12e   : > { %3119 = vmatmul.msk.f32.gmra.mxu3 %vm483_vm1, %v4153_v7 }
 0x12f   : > { %4777 = vst [vmem:[#allocation42_spill] sm:$0xff] %v4155_v28  ;;  %3152 = vmatmul.msk.f32.gmra.mxu0 %vm483_vm1, %v3620_v23 }
 0x130   : > { %v1056_v1 = vpop.f32.mrf.mxu2 }
 0x131   : > { %v1132_v37 = vadd.f32 %v1056_v1, %v844_v19  ;;  %v1301_v15 = vpop.f32.mrf.mxu3  ;;  %v846_v46 = vpop.f32.mrf.mxu1  ;;  %v4184_v1 = vld [vmem:[%s3543_s19 + $0x152] sm:$0xff] }
 0x132   : > { %v847_v23 = vadd.f32 %v846_v46, %v3871_v25 }
 0x133   : > { %v1377_v8 = vadd.f32 %v1301_v15, %v1132_v37  ;;  %v4187_v15 = vld [vmem:[%s3543_s19 + $0x168] sm:$0xff] }
 0x134   : > { %v1549_v33 = vpop.f32.mrf.mxu0  ;;  %3054 = vmatmul.msk.f32.gmra.mxu1 %vm483_vm1, %v4136_v38 }
 0x135   : > { %v4172_v28 = vadd.f32 %v1546_v3, %v1377_v8  ;;  %3087 = vmatmul.msk.f32.gmra.mxu2 %vm483_vm1, %v4167_v59 }
 0x136   : > { %3120 = vmatmul.msk.f32.gmra.mxu3 %vm483_vm1, %v4170_v11 }
 0x137   : > { %4778 = vst [vmem:[#allocation43_spill] sm:$0xff] %v4172_v28  ;;  %3153 = vmatmul.msk.f32.gmra.mxu0 %vm483_vm1, %v3652_v30 }
 0x138   : > { %v1059_v9 = vpop.f32.mrf.mxu2 }
 0x139   : > { %v1133_v10 = vadd.f32 %v1059_v9, %v847_v23  ;;  %v1304_v19 = vpop.f32.mrf.mxu3  ;;  %v849_v3 = vpop.f32.mrf.mxu1  ;;  %v4201_v9 = vld [vmem:[%s3543_s19 + $0x15a] sm:$0xff] }
 0x13a   : > { %v850_v30 = vadd.f32 %v849_v3, %v3893_v42  ;;  %4780 = vst [vmem:[#allocation45_spill] sm:$0xff] %v4201_v9 }
 0x13b   : > { %v1378_v37 = vadd.f32 %v1304_v19, %v1133_v10  ;;  %v4204_v19 = vld [vmem:[%s3543_s19 + $0x170] sm:$0xff] }
 0x13c   : > { %v1552_v8 = vpop.f32.mrf.mxu0  ;;  %3055 = vmatmul.msk.f32.gmra.mxu1 %vm483_vm1, %v4153_v7 }
 0x13d   : > { %v4189_v28 = vadd.f32 %v1549_v33, %v1378_v37  ;;  %3088 = vmatmul.msk.f32.gmra.mxu2 %vm483_vm1, %v4184_v1 }
 0x13e   : > { %3121 = vmatmul.msk.f32.gmra.mxu3 %vm483_vm1, %v4187_v15 }
 0x13f   : > { %4779 = vst [vmem:[#allocation44_spill] sm:$0xff] %v4189_v28  ;;  %3154 = vmatmul.msk.f32.gmra.mxu0 %vm483_vm1, %v3676_v35 }
 0x140   : > { %v1062_v25 = vpop.f32.mrf.mxu2 }
 0x141   : > { %v1134_v46 = vadd.f32 %v1062_v25, %v850_v30  ;;  %v1307_v23 = vpop.f32.mrf.mxu3  ;;  %v852_v33 = vpop.f32.mrf.mxu1 }
 0x142   : > { %v853_v35 = vadd.f32 %v852_v33, %v3915_v41 }
 0x143   : > { %v1379_v10 = vadd.f32 %v1307_v23, %v1134_v46  ;;  %v4221_v23 = vld [vmem:[%s3543_s19 + $0x180] sm:$0xff] }
 0x144   : > { %v1555_v37 = vpop.f32.mrf.mxu0  ;;  %3056 = vmatmul.msk.f32.gmra.mxu1 %vm483_vm1, %v4170_v11 }
 0x145   : > { %v4206_v28 = vadd.f32 %v1552_v8, %v1379_v10  ;;  %3089 = vmatmul.msk.f32.gmra.mxu2 %vm483_vm1, %v4201_v9  ;;  %v4218_v8 = vld [vmem:[%s3543_s19 + $0x16a] sm:$0xff] }
 0x146   : > { %3122 = vmatmul.msk.f32.gmra.mxu3 %vm483_vm1, %v4204_v19  ;;  %4782 = vst [vmem:[#allocation47_spill] sm:$0xff] %v4218_v8 }
 0x147   : > { %4781 = vst [vmem:[#allocation46_spill] sm:$0xff] %v4206_v28  ;;  %3155 = vmatmul.msk.f32.gmra.mxu0 %vm483_vm1, %v3696_v39  ;;  %v4224_v28 = vld [vmem:[%s3543_s19 + $0x181] sm:$0xff] }
 0x148   : > { %v1065_v42 = vpop.f32.mrf.mxu2 }
 0x149   : > { %v1135_v3 = vadd.f32 %v1065_v42, %v853_v35  ;;  %v1310_v30 = vpop.f32.mrf.mxu3  ;;  %v855_v25 = vpop.f32.mrf.mxu1 }
 0x14a   : > { %v856_v39 = vadd.f32 %v855_v25, %v3937_v43 }
 0x14b   : > { %v1380_v46 = vadd.f32 %v1310_v30, %v1135_v3  ;;  %v4241_v30 = vld [vmem:[%s3543_s19 + $0x188] sm:$0xff] }
 0x14c   : > { %v1558_v10 = vpop.f32.mrf.mxu0  ;;  %3057 = vmatmul.msk.f32.gmra.mxu1 %vm483_vm1, %v4187_v15 }
 0x14d   : > { %v4226_v9 = vadd.f32 %v1555_v37, %v1380_v46  ;;  %3090 = vmatmul.msk.f32.gmra.mxu2 %vm483_vm1, %v4218_v8  ;;  %v4238_v37 = vld [vmem:[%s3543_s19 + $0x172] sm:$0xff] }
 0x14e   : > { %3123 = vmatmul.msk.f32.gmra.mxu3 %vm483_vm1, %v4221_v23 }
 0x14f   : > { %4783 = vst [vmem:[#allocation48_spill] sm:$0xff] %v4226_v9  ;;  %3156 = vmatmul.msk.f32.gmra.mxu0 %vm483_vm1, %v4224_v28  ;;  %v4244_v9 = vld [vmem:[%s3543_s19 + $0x189] sm:$0xff] }
 0x150   : > { %v1068_v41 = vpop.f32.mrf.mxu2 }
 0x151   : > { %v1136_v33 = vadd.f32 %v1068_v41, %v856_v39  ;;  %v1313_v35 = vpop.f32.mrf.mxu3  ;;  %v858_v42 = vpop.f32.mrf.mxu1 }
 0x152   : > { %v859_v43 = vadd.f32 %v858_v42, %v3959_v20 }
 0x153   : > { %v1381_v3 = vadd.f32 %v1313_v35, %v1136_v33 }
 0x154   : > { %v1561_v46 = vpop.f32.mrf.mxu0  ;;  %3058 = vmatmul.msk.f32.gmra.mxu1 %vm483_vm1, %v4204_v19 }
 0x155   : > { %v4246_v8 = vadd.f32 %v1558_v10, %v1381_v3  ;;  %3091 = vmatmul.msk.f32.gmra.mxu2 %vm483_vm1, %v4238_v37 }
 0x156   : > { %3124 = vmatmul.msk.f32.gmra.mxu3 %vm483_vm1, %v4241_v30 }
 0x157   : > { %3157 = vmatmul.msk.f32.gmra.mxu0 %vm483_vm1, %v4244_v9 }
 0x158   : > { %v1071_v25 = vpop.f32.mrf.mxu2 }
 0x159   : > { %v1137_v39 = vadd.f32 %v1071_v25, %v859_v43  ;;  %v1316_v41 = vpop.f32.mrf.mxu3  ;;  %v861_v33 = vpop.f32.mrf.mxu1 }
 0x15a   : > { %v862_v20 = vadd.f32 %v861_v33, %v3823_v63 }
 0x15b   : > { %v1382_v10 = vadd.f32 %v1316_v41, %v1137_v39 }
 0x15c   : > { %v1564_v35 = vpop.f32.mrf.mxu0  ;;  %3159 = vmatmul.msk.f32.vlgmr.msra.gmra.mxu1 %vm483_vm1, %v3724_v47 }
 0x15d   : > { %v4257_v3 = vadd.f32 %v1561_v46, %v1382_v10  ;;  %3192 = vmatmul.msk.f32.vlgmr.msra.gmra.mxu2 %vm483_vm1, %v3727_v48 }
 0x15e   : > { %3225 = vmatmul.msk.f32.vlgmr.msra.gmra.mxu3 %vm483_vm1, %v3623_v24 }
 0x15f   : > { %3258 = vmatmul.msk.f32.vlgmr.msra.gmra.mxu0 %vm483_vm1, %v3750_v51 }
 0x160   : > { %v1074_v42 = vpop.f32.mrf.mxu2 }
 0x161   : > { %v1138_v43 = vadd.f32 %v1074_v42, %v862_v20  ;;  %v1319_v25 = vpop.f32.mrf.mxu3  ;;  %v864_v39 = vpop.f32.mrf.mxu1 }
 0x162   : > { %v865_v24 = vadd.f32 %v864_v39, %v3845_v5 }
 0x163   : > { %v1383_v46 = vadd.f32 %v1319_v25, %v1138_v43 }
 0x164   : > { %v1567_v41 = vpop.f32.mrf.mxu0  ;;  %3160 = vmatmul.msk.f32.gmra.mxu1 %vm483_vm1, %v3737_v49 }
 0x165   : > { %v4268_v10 = vadd.f32 %v1564_v35, %v1383_v46  ;;  %3193 = vmatmul.msk.f32.gmra.mxu2 %vm483_vm1, %v3740_v50 }
 0x166   : > { %3226 = vmatmul.msk.f32.gmra.mxu3 %vm483_vm1, %v3655_v31 }
 0x167   : > { %3259 = vmatmul.msk.f32.gmra.mxu0 %vm483_vm1, %v3764_v53 }
 0x168   : > { %v1077_v47 = vpop.f32.mrf.mxu2 }
 0x169   : > { %v1139_v48 = vadd.f32 %v1077_v47, %v865_v24  ;;  %v1322_v63 = vpop.f32.mrf.mxu3  ;;  %v867_v33 = vpop.f32.mrf.mxu1  ;;  %v2933_v47 = vld [vmem:[%s3543_s19 + $0x61] sm:$0xff] }
 0x16a   : > { %v868_v31 = vadd.f32 %v867_v33, %v3867_v17 }
 0x16b   : > { %v1384_v35 = vadd.f32 %v1322_v63, %v1139_v48 }
 0x16c   : > { %v1570_v20 = vpop.f32.mrf.mxu0  ;;  %3161 = vmatmul.msk.f32.gmra.mxu1 %vm483_vm1, %v3750_v51 }
 0x16d   : > { %v4279_v42 = vadd.f32 %v1567_v41, %v1384_v35  ;;  %3194 = vmatmul.msk.f32.gmra.mxu2 %vm483_vm1, %v3753_v52 }
 0x16e   : > { %3227 = vmatmul.msk.f32.gmra.mxu3 %vm483_vm1, %v3679_v36 }
 0x16f   : > { %3260 = vmatmul.msk.f32.gmra.mxu0 %vm483_vm1, %v3778_v55 }
 0x170   : > { %v1080_v49 = vpop.f32.mrf.mxu2 }
 0x171   : > { %v1140_v50 = vadd.f32 %v1080_v49, %v868_v31  ;;  %v1325_v5 = vpop.f32.mrf.mxu3  ;;  %v870_v43 = vpop.f32.mrf.mxu1  ;;  %v2934_v31 = vld [vmem:[%s3543_s19 + $0x69] sm:$0xff] }
 0x172   : > { %v871_v36 = vadd.f32 %v870_v43, %v3889_v21 }
 0x173   : > { %v1385_v25 = vadd.f32 %v1325_v5, %v1140_v50  ;;  %v4787_v5 = vld [vmem:[#allocation23_spill] sm:$0xff] }
 0x174   : > { %v1573_v39 = vpop.f32.mrf.mxu0  ;;  %3162 = vmatmul.msk.f32.gmra.mxu1 %vm483_vm1, %v3764_v53 }
 0x175   : > { %v4290_v46 = vadd.f32 %v1570_v20, %v1385_v25  ;;  %3195 = vmatmul.msk.f32.gmra.mxu2 %vm483_vm1, %v3767_v54 }
 0x176   : > { %3228 = vmatmul.msk.f32.gmra.mxu3 %vm483_vm1, %v3699_v40  ;;  %v4784_v40 = vld [vmem:[#allocation19_spill] sm:$0xff] }
 0x177   : > { %3261 = vmatmul.msk.f32.gmra.mxu0 %vm483_vm1, %v3792_v57 }
 0x178   : > { %v1083_v51 = vpop.f32.mrf.mxu2 }
 0x179   : > { %v1141_v52 = vadd.f32 %v1083_v51, %v871_v36  ;;  %v1328_v17 = vpop.f32.mrf.mxu3  ;;  %v873_v41 = vpop.f32.mrf.mxu1 }
 0x17a   : > { %v874_v54 = vadd.f32 %v873_v41, %v4784_v40 }
 0x17b   : > { %v1386_v24 = vadd.f32 %v1328_v17, %v1141_v52  ;;  %v2935_v17 = vld [vmem:[%s3543_s19 + $0x79] sm:$0xff] }
 0x17c   : > { %v1576_v48 = vpop.f32.mrf.mxu0  ;;  %3163 = vmatmul.msk.f32.gmra.mxu1 %vm483_vm1, %v3778_v55  ;;  %v4785_v55 = vld [vmem:[#allocation5_spill] sm:$0xff] }
 0x17d   : > { %v4302_v53 = vadd.f32 %v1573_v39, %v1386_v24  ;;  %3196 = vmatmul.msk.f32.gmra.mxu2 %vm483_vm1, %v3781_v56  ;;  %v4786_v56 = vld [vmem:[#allocation8_spill] sm:$0xff] }
 0x17e   : > { %3229 = vmatmul.msk.f32.gmra.mxu3 %vm483_vm1, %v2933_v47  ;;  %v4789_v47 = vld [vmem:[#allocation11_spill] sm:$0xff] }
 0x17f   : > { %3262 = vmatmul.msk.f32.gmra.mxu0 %vm483_vm1, %v3808_v60 }
 0x180   : > { %v1086_v21 = vpop.f32.mrf.mxu2 }
 0x181   : > { %v1142_v63 = vadd.f32 %v1086_v21, %v874_v54  ;;  %v1331_v33 = vpop.f32.mrf.mxu3  ;;  %v876_v35 = vpop.f32.mrf.mxu1 }
 0x182   : > { %v877_v43 = vadd.f32 %v876_v35, %v4787_v5  ;;  %v4793_v5 = vld [vmem:[#allocation30_spill] sm:$0xff] }
 0x183   : > { %v1387_v20 = vadd.f32 %v1331_v33, %v1142_v63 }
 0x184   : > { %v1579_v49 = vpop.f32.mrf.mxu0  ;;  %3164 = vmatmul.msk.f32.gmra.mxu1 %vm483_vm1, %v3792_v57  ;;  %v4788_v57 = vld [vmem:[#allocation6_spill] sm:$0xff] }
 0x185   : > { %v4313_v50 = vadd.f32 %v1576_v48, %v1387_v20  ;;  %3197 = vmatmul.msk.f32.gmra.mxu2 %vm483_vm1, %v4785_v55  ;;  %v4790_v48 = vld [vmem:[#allocation27_spill] sm:$0xff]  ;;  %v2936_v20 = vld [vmem:[%s3543_s19 + $0x81] sm:$0xff] }
 0x186   : > { %3230 = vmatmul.msk.f32.gmra.mxu3 %vm483_vm1, %v2934_v31  ;;  %v4792_v55 = vld [vmem:[#allocation14_spill] sm:$0xff] }
 0x187   : > { %3263 = vmatmul.msk.f32.gmra.mxu0 %vm483_vm1, %v4786_v56 }
 0x188   : > { %v1089_v25 = vpop.f32.mrf.mxu2 }
 0x189   : > { %v1143_v39 = vadd.f32 %v1089_v25, %v877_v43  ;;  %v1334_v36 = vpop.f32.mrf.mxu3  ;;  %v879_v51 = vpop.f32.mrf.mxu1 }
 0x18a   : > { %v880_v40 = vadd.f32 %v879_v51, %v4790_v48  ;;  %v4795_v48 = vld [vmem:[#allocation17_spill] sm:$0xff] }
 0x18b   : > { %v1388_v52 = vadd.f32 %v1334_v36, %v1143_v39 }
 0x18c   : > { %v1582_v41 = vpop.f32.mrf.mxu0  ;;  %3165 = vmatmul.msk.f32.gmra.mxu1 %vm483_vm1, %v3808_v60  ;;  %v4791_v60 = vld [vmem:[#allocation9_spill] sm:$0xff] }
 0x18d   : > { %v4324_v24 = vadd.f32 %v1579_v49, %v1388_v52  ;;  %3198 = vmatmul.msk.f32.gmra.mxu2 %vm483_vm1, %v4788_v57 }
 0x18e   : > { %3231 = vmatmul.msk.f32.gmra.mxu3 %vm483_vm1, %v2935_v17  ;;  %v2937_v17 = vld [vmem:[%s3543_s19 + $0x91] sm:$0xff] }
 0x18f   : > { %3264 = vmatmul.msk.f32.gmra.mxu0 %vm483_vm1, %v4789_v47 }
 0x190   : > { %v1092_v54 = vpop.f32.mrf.mxu2 }
 0x191   : > { %v1144_v21 = vadd.f32 %v1092_v54, %v880_v40  ;;  %v1337_v63 = vpop.f32.mrf.mxu3  ;;  %v882_v33 = vpop.f32.mrf.mxu1  ;;  %v4796_v40 = vld [vmem:[#allocation7_spill] sm:$0xff] }
 0x192   : > { %v883_v43 = vadd.f32 %v882_v33, %v4793_v5 }
 0x193   : > { %v1389_v35 = vadd.f32 %v1337_v63, %v1144_v21 }
 0x194   : > { %v1585_v31 = vpop.f32.mrf.mxu0  ;;  %3166 = vmatmul.msk.f32.gmra.mxu1 %vm483_vm1, %v4786_v56  ;;  %v4794_v56 = vld [vmem:[#allocation12_spill] sm:$0xff] }
 0x195   : > { %v4335_v49 = vadd.f32 %v1582_v41, %v1389_v35  ;;  %3199 = vmatmul.msk.f32.gmra.mxu2 %vm483_vm1, %v4791_v60 }
 0x196   : > { %3232 = vmatmul.msk.f32.gmra.mxu3 %vm483_vm1, %v2936_v20 }
 0x197   : > { %3265 = vmatmul.msk.f32.gmra.mxu0 %vm483_vm1, %v4792_v55 }
 0x198   : > { %v1095_v25 = vpop.f32.mrf.mxu2 }
 0x199   : > { %v1145_v39 = vadd.f32 %v1095_v25, %v883_v43  ;;  %v1340_v36 = vpop.f32.mrf.mxu3  ;;  %v885_v51 = vpop.f32.mrf.mxu1  ;;  %v4798_v43 = vld [vmem:[#allocation21_spill] sm:$0xff]  ;;  %v4799_v25 = vld [vmem:[#allocation10_spill] sm:$0xff] }
 0x19a   : > { %v886_v54 = vadd.f32 %v885_v51, %v4796_v40 }
 0x19b   : > { %v1390_v52 = vadd.f32 %v1340_v36, %v1145_v39 }
 0x19c   : > { %v1588_v41 = vpop.f32.mrf.mxu0  ;;  %3167 = vmatmul.msk.f32.gmra.mxu1 %vm483_vm1, %v4789_v47  ;;  %v4797_v47 = vld [vmem:[#allocation15_spill] sm:$0xff] }
 0x19d   : > { %v4346_v57 = vadd.f32 %v1585_v31, %v1390_v52  ;;  %3200 = vmatmul.msk.f32.gmra.mxu2 %vm483_vm1, %v4794_v56  ;;  %v2938_v31 = vld [vmem:[%s3543_s19 + $0x99] sm:$0xff]  ;;  %v2939_v56 = vld [vmem:[%s3543_s19 + $0xa9] sm:$0xff] }
 0x19e   : > { %3233 = vmatmul.msk.f32.gmra.mxu3 %vm483_vm1, %v2937_v17 }
 0x19f   : > { %3266 = vmatmul.msk.f32.gmra.mxu0 %vm483_vm1, %v4795_v48 }
 0x1a0   : > { %v1098_v21 = vpop.f32.mrf.mxu2 }
 0x1a1   : > { %v1146_v63 = vadd.f32 %v1098_v21, %v886_v54  ;;  %v1343_v33 = vpop.f32.mrf.mxu3  ;;  %v888_v35 = vpop.f32.mrf.mxu1  ;;  %v4801_v21 = vld [vmem:[#allocation25_spill] sm:$0xff] }
 0x1a2   : > { %v889_v39 = vadd.f32 %v888_v35, %v4799_v25  ;;  %v2940_v25 = vld [vmem:[%s3543_s19 + $0xb1] sm:$0xff] }
 0x1a3   : > { %v1391_v20 = vadd.f32 %v1343_v33, %v1146_v63  ;;  %v4802_v63 = vld [vmem:[#allocation13_spill] sm:$0xff] }
 0x1a4   : > { %v1591_v60 = vpop.f32.mrf.mxu0  ;;  %3168 = vmatmul.msk.f32.gmra.mxu1 %vm483_vm1, %v4792_v55  ;;  %v4800_v55 = vld [vmem:[#allocation18_spill] sm:$0xff] }
 0x1a5   : > { %v4357_v5 = vadd.f32 %v1588_v41, %v1391_v20  ;;  %3201 = vmatmul.msk.f32.gmra.mxu2 %vm483_vm1, %v4797_v47 }
 0x1a6   : > { %3234 = vmatmul.msk.f32.gmra.mxu3 %vm483_vm1, %v2938_v31 }
 0x1a7   : > { %3267 = vmatmul.msk.f32.gmra.mxu0 %vm483_vm1, %v4798_v43 }
 0x1a8   : > { %v1101_v36 = vpop.f32.mrf.mxu2 }
 0x1a9   : > { %v1147_v51 = vadd.f32 %v1101_v36, %v889_v39  ;;  %v1346_v52 = vpop.f32.mrf.mxu3  ;;  %v891_v17 = vpop.f32.mrf.mxu1 }
 0x1aa   : > { %v892_v33 = vadd.f32 %v891_v17, %v4802_v63 }
 0x1ab   : > { %v1392_v41 = vadd.f32 %v1346_v52, %v1147_v51  ;;  %v4804_v51 = vld [vmem:[#allocation29_spill] sm:$0xff]  ;;  %v4805_v52 = vld [vmem:[#allocation16_spill] sm:$0xff] }
 0x1ac   : > { %v1594_v40 = vpop.f32.mrf.mxu0  ;;  %3169 = vmatmul.msk.f32.gmra.mxu1 %vm483_vm1, %v4795_v48  ;;  %v4803_v48 = vld [vmem:[#allocation22_spill] sm:$0xff] }
 0x1ad   : > { %v4368_v54 = vadd.f32 %v1591_v60, %v1392_v41  ;;  %3202 = vmatmul.msk.f32.gmra.mxu2 %vm483_vm1, %v4800_v55 }
 0x1ae   : > { %3235 = vmatmul.msk.f32.gmra.mxu3 %vm483_vm1, %v2939_v56 }
 0x1af   : > { %3268 = vmatmul.msk.f32.gmra.mxu0 %vm483_vm1, %v4801_v21 }
 0x1b0   : > { %v1104_v35 = vpop.f32.mrf.mxu2 }
 0x1b1   : > { %v1148_v20 = vadd.f32 %v1104_v35, %v892_v33  ;;  %v1349_v31 = vpop.f32.mrf.mxu3  ;;  %v894_v47 = vpop.f32.mrf.mxu1  ;;  %v2941_v33 = vld [vmem:[%s3543_s19 + $0xc1] sm:$0xff] }
 0x1b2   : > { %v895_v17 = vadd.f32 %v894_v47, %v4805_v52  ;;  %v4808_v47 = vld [vmem:[#allocation20_spill] sm:$0xff] }
 0x1b3   : > { %v1393_v60 = vadd.f32 %v1349_v31, %v1148_v20  ;;  %v4807_v31 = vld [vmem:[#allocation32_spill] sm:$0xff] }
 0x1b4   : > { %v1597_v39 = vpop.f32.mrf.mxu0  ;;  %3170 = vmatmul.msk.f32.gmra.mxu1 %vm483_vm1, %v4798_v43  ;;  %v4806_v43 = vld [vmem:[#allocation26_spill] sm:$0xff] }
 0x1b5   : > { %v4379_v36 = vadd.f32 %v1594_v40, %v1393_v60  ;;  %3203 = vmatmul.msk.f32.gmra.mxu2 %vm483_vm1, %v4803_v48 }
 0x1b6   : > { %3236 = vmatmul.msk.f32.gmra.mxu3 %vm483_vm1, %v2940_v25 }
 0x1b7   : > { %3269 = vmatmul.msk.f32.gmra.mxu0 %vm483_vm1, %v4804_v51 }
 0x1b8   : > { %v1107_v41 = vpop.f32.mrf.mxu2 }
 0x1b9   : > { %v1149_v56 = vadd.f32 %v1107_v41, %v895_v17  ;;  %v1352_v55 = vpop.f32.mrf.mxu3  ;;  %v897_v63 = vpop.f32.mrf.mxu1  ;;  %v2942_v41 = vld [vmem:[%s3543_s19 + $0xc9] sm:$0xff] }
 0x1ba   : > { %v898_v60 = vadd.f32 %v897_v63, %v4808_v47 }
 0x1bb   : > { %v1394_v40 = vadd.f32 %v1352_v55, %v1149_v56 }
 0x1bc   : > { %v1600_v35 = vpop.f32.mrf.mxu0  ;;  %3171 = vmatmul.msk.f32.gmra.mxu1 %vm483_vm1, %v4801_v21  ;;  %v4809_v21 = vld [vmem:[#allocation24_spill] sm:$0xff] }
 0x1bd   : > { %v4390_v20 = vadd.f32 %v1597_v39, %v1394_v40  ;;  %3204 = vmatmul.msk.f32.gmra.mxu2 %vm483_vm1, %v4806_v43 }
 0x1be   : > { %3237 = vmatmul.msk.f32.gmra.mxu3 %vm483_vm1, %v2941_v33 }
 0x1bf   : > { %3270 = vmatmul.msk.f32.gmra.mxu0 %vm483_vm1, %v4807_v31 }
 0x1c0   : > { %v1110_v25 = vpop.f32.mrf.mxu2 }
 0x1c1   : > { %v1150_v48 = vadd.f32 %v1110_v25, %v898_v60  ;;  %v1355_v52 = vpop.f32.mrf.mxu3  ;;  %v900_v17 = vpop.f32.mrf.mxu1  ;;  %v2943_v60 = vld [vmem:[%s3543_s19 + $0xd9] sm:$0xff] }
 0x1c2   : > { %v901_v63 = vadd.f32 %v900_v17, %v4809_v21  ;;  %v2944_v21 = vld [vmem:[%s3543_s19 + $0xe1] sm:$0xff] }
 0x1c3   : > { %v1395_v39 = vadd.f32 %v1355_v52, %v1150_v48 }
 0x1c4   : > { %v1603_v56 = vpop.f32.mrf.mxu0  ;;  %3172 = vmatmul.msk.f32.gmra.mxu1 %vm483_vm1, %v4804_v51 }
 0x1c5   : > { %v4401_v55 = vadd.f32 %v1600_v35, %v1395_v39  ;;  %3205 = vmatmul.msk.f32.gmra.mxu2 %vm483_vm1, %v3965_v44  ;;  %v4810_v44 = vld [vmem:[#allocation28_spill] sm:$0xff] }
 0x1c6   : > { %3238 = vmatmul.msk.f32.gmra.mxu3 %vm483_vm1, %v2942_v41 }
 0x1c7   : > { %3271 = vmatmul.msk.f32.gmra.mxu0 %vm483_vm1, %v3997_v2 }
 0x1c8   : > { %v1113_v40 = vpop.f32.mrf.mxu2 }
 0x1c9   : > { %v1151_v33 = vadd.f32 %v1113_v40, %v901_v63  ;;  %v1358_v43 = vpop.f32.mrf.mxu3  ;;  %v903_v47 = vpop.f32.mrf.mxu1 }
 0x1ca   : > { %v904_v51 = vadd.f32 %v903_v47, %v4810_v44 }
 0x1cb   : > { %v1396_v35 = vadd.f32 %v1358_v43, %v1151_v33 }
 0x1cc   : > { %v1606_v25 = vpop.f32.mrf.mxu0  ;;  %3173 = vmatmul.msk.f32.gmra.mxu1 %vm483_vm1, %v4807_v31 }
 0x1cd   : > { %v4412_v48 = vadd.f32 %v1603_v56, %v1396_v35  ;;  %3206 = vmatmul.msk.f32.gmra.mxu2 %vm483_vm1, %v3985_v61  ;;  %v4811_v61 = vld [vmem:[#allocation31_spill] sm:$0xff] }
 0x1ce   : > { %3239 = vmatmul.msk.f32.gmra.mxu3 %vm483_vm1, %v2943_v60 }
 0x1cf   : > { %3272 = vmatmul.msk.f32.gmra.mxu0 %vm483_vm1, %v4014_v27 }
 0x1d0   : > { %v1116_v52 = vpop.f32.mrf.mxu2 }
 0x1d1   : > { %v1152_v17 = vadd.f32 %v1116_v52, %v904_v51  ;;  %v1361_v39 = vpop.f32.mrf.mxu3  ;;  %v906_v41 = vpop.f32.mrf.mxu1 }
 0x1d2   : > { %v907_v31 = vadd.f32 %v906_v41, %v4811_v61  ;;  %v4813_v61 = vld [vmem:[#allocation34_spill] sm:$0xff] }
 0x1d3   : > { %v1397_v56 = vadd.f32 %v1361_v39, %v1152_v17 }
 0x1d4   : > { %v1609_v63 = vpop.f32.mrf.mxu0  ;;  %3174 = vmatmul.msk.f32.gmra.mxu1 %vm483_vm1, %v3997_v2 }
 0x1d5   : > { %v4423_v40 = vadd.f32 %v1606_v25, %v1397_v56  ;;  %3207 = vmatmul.msk.f32.gmra.mxu2 %vm483_vm1, %v4000_v58  ;;  %v2945_v25 = vld [vmem:[%s3543_s19 + $0xf1] sm:$0xff]  ;;  %v4812_v58 = vld [vmem:[#allocation33_spill] sm:$0xff] }
 0x1d6   : > { %3240 = vmatmul.msk.f32.gmra.mxu3 %vm483_vm1, %v2944_v21 }
 0x1d7   : > { %3273 = vmatmul.msk.f32.gmra.mxu0 %vm483_vm1, %v4031_v62 }
 0x1d8   : > { %v1119_v33 = vpop.f32.mrf.mxu2 }
 0x1d9   : > { %v1153_v43 = vadd.f32 %v1119_v33, %v907_v31  ;;  %v1364_v47 = vpop.f32.mrf.mxu3  ;;  %v1761_v35 = vpop.f32.mrf.mxu1 }
 0x1da   : > { %v1857_v51 = vadd.f32 %v1761_v35, %v4812_v58  ;;  %v4814_v58 = vld [vmem:[#allocation35_spill] sm:$0xff] }
 0x1db   : > { %v1398_v60 = vadd.f32 %v1364_v47, %v1153_v43 }
 0x1dc   : > { %v2496_v2 = vpop.f32.mrf.mxu0  ;;  %3175 = vmatmul.msk.f32.gmra.mxu1 %vm483_vm1, %v4014_v27  ;;  %v4450_v27 = vld [vmem:[%s4708_s2] ss:$0 sm:$0xff] }
 0x1dd   : > { %v4434_v44 = vadd.f32 %v1609_v63, %v1398_v60  ;;  %3208 = vmatmul.msk.f32.gmra.mxu2 %vm483_vm1, %v4017_v6  ;;  %v2946_v6 = vld [vmem:[%s3543_s19 + $0xf9] sm:$0xff] }
 0x1de   : > { %3241 = vmatmul.msk.f32.gmra.mxu3 %vm483_vm1, %v2945_v25 }
 0x1df   : > { %3274 = vmatmul.msk.f32.gmra.mxu0 %vm483_vm1, %v4048_v4 }
 0x1e0   : > { %v2006_v52 = vpop.f32.mrf.mxu2 }
 0x1e1   : > { %v2102_v17 = vadd.f32 %v2006_v52, %v1857_v51  ;;  %v2251_v39 = vpop.f32.mrf.mxu3  ;;  %v1764_v41 = vpop.f32.mrf.mxu1 }
 0x1e2   : > { %v1858_v31 = vadd.f32 %v1764_v41, %v4813_v61 }
 0x1e3   : > { %v2347_v56 = vadd.f32 %v2251_v39, %v2102_v17 }
 0x1e4   : > { %v2499_v21 = vpop.f32.mrf.mxu0  ;;  %3176 = vmatmul.msk.f32.gmra.mxu1 %vm483_vm1, %v4031_v62 }
 0x1e5   : > { %v2592_v63 = vadd.f32 %v2496_v2, %v2347_v56  ;;  %3209 = vmatmul.msk.f32.gmra.mxu2 %vm483_vm1, %v4034_v13  ;;  %v2947_v13 = vld [vmem:[%s3543_s19 + $0x109] sm:$0xff] }
 0x1e6   : > { %3242 = vmatmul.msk.f32.gmra.mxu3 %vm483_vm1, %v2946_v6 }
 0x1e7   : > { %3275 = vmatmul.msk.f32.gmra.mxu0 %vm483_vm1, %v4065_v16  ;;  %v2628_v33 = vadd.f32 %v4450_v27, %v2592_v63  ;;  %v4815_v63 = vld [vmem:[#allocation36_spill] sm:$0xff] }
 0x1e8   : > { %v2009_v43 = vpop.f32.mrf.mxu2 }
 0x1e9   : > { %2660 = vst [vmem:[%s4462_s9] sm:$0xff] %v2628_v33  ;;  %v2103_v47 = vadd.f32 %v2009_v43, %v1858_v31  ;;  %v2254_v62 = vpop.f32.mrf.mxu3  ;;  %v1767_v35 = vpop.f32.mrf.mxu1 }
 0x1ea   : > { %v1859_v51 = vadd.f32 %v1767_v35, %v4814_v58 }
 0x1eb   : > { %v2348_v60 = vadd.f32 %v2254_v62, %v2103_v47 }
 0x1ec   : > { %v2502_v25 = vpop.f32.mrf.mxu0  ;;  %3177 = vmatmul.msk.f32.gmra.mxu1 %vm483_vm1, %v4048_v4  ;;  %v2948_v4 = vld [vmem:[%s3543_s19 + $0x111] sm:$0xff] }
 0x1ed   : > { %v2593_v2 = vadd.f32 %v2499_v21, %v2348_v60  ;;  %3210 = vmatmul.msk.f32.gmra.mxu2 %vm483_vm1, %v4051_v14 }
 0x1ee   : > { %3243 = vmatmul.msk.f32.gmra.mxu3 %vm483_vm1, %v2947_v13  ;;  %v4816_v13 = vld [vmem:[#allocation37_spill] sm:$0xff] }
 0x1ef   : > { %3276 = vmatmul.msk.f32.gmra.mxu0 %vm483_vm1, %v4082_v32  ;;  %v2629_v52 = vadd.f32 %v4450_v27, %v2593_v2 }
 0x1f0   : > { %v2012_v17 = vpop.f32.mrf.mxu2 }
 0x1f1   : > { %2661 = vst [vmem:[%s4462_s9 + $0x8] sm:$0xff] %v2629_v52  ;;  %v2104_v39 = vadd.f32 %v2012_v17, %v1859_v51  ;;  %v2257_v41 = vpop.f32.mrf.mxu3  ;;  %v1770_v56 = vpop.f32.mrf.mxu1 }
 0x1f2   : > { %v1860_v61 = vadd.f32 %v1770_v56, %v4815_v63  ;;  %v4817_v56 = vld [vmem:[#allocation38_spill] sm:$0xff] }
 0x1f3   : > { %v2349_v6 = vadd.f32 %v2257_v41, %v2104_v39 }
 0x1f4   : > { %v2505_v21 = vpop.f32.mrf.mxu0  ;;  %3178 = vmatmul.msk.f32.gmra.mxu1 %vm483_vm1, %v4065_v16  ;;  %v2949_v16 = vld [vmem:[%s3543_s19 + $0x121] sm:$0xff] }
 0x1f5   : > { %v2594_v14 = vadd.f32 %v2502_v25, %v2349_v6  ;;  %3211 = vmatmul.msk.f32.gmra.mxu2 %vm483_vm1, %v4068_v18 }
 0x1f6   : > { %3244 = vmatmul.msk.f32.gmra.mxu3 %vm483_vm1, %v2948_v4 }
 0x1f7   : > { %3277 = vmatmul.msk.f32.gmra.mxu0 %vm483_vm1, %v4099_v45  ;;  %v2630_v31 = vadd.f32 %v4450_v27, %v2594_v14 }
 0x1f8   : > { %v2015_v33 = vpop.f32.mrf.mxu2 }
 0x1f9   : > { %2662 = vst [vmem:[%s4462_s9 + $0x10] sm:$0xff] %v2630_v31  ;;  %v2105_v43 = vadd.f32 %v2015_v33, %v1860_v61  ;;  %v2260_v47 = vpop.f32.mrf.mxu3  ;;  %v1773_v62 = vpop.f32.mrf.mxu1 }
 0x1fa   : > { %v1861_v25 = vadd.f32 %v1773_v62, %v4816_v13 }
 0x1fb   : > { %v2350_v35 = vadd.f32 %v2260_v47, %v2105_v43  ;;  %v4818_v43 = vld [vmem:[#allocation39_spill] sm:$0xff] }
 0x1fc   : > { %v2508_v60 = vpop.f32.mrf.mxu0  ;;  %3179 = vmatmul.msk.f32.gmra.mxu1 %vm483_vm1, %v4082_v32  ;;  %v2950_v32 = vld [vmem:[%s3543_s19 + $0x129] sm:$0xff] }
 0x1fd   : > { %v2595_v18 = vadd.f32 %v2505_v21, %v2350_v35  ;;  %3212 = vmatmul.msk.f32.gmra.mxu2 %vm483_vm1, %v4085_v22 }
 0x1fe   : > { %3245 = vmatmul.msk.f32.gmra.mxu3 %vm483_vm1, %v2949_v16 }
 0x1ff   : > { %3278 = vmatmul.msk.f32.gmra.mxu0 %vm483_vm1, %v4116_v0  ;;  %v2631_v2 = vadd.f32 %v4450_v27, %v2595_v18 }
 0x200   : > { %v2018_v58 = vpop.f32.mrf.mxu2 }
 0x201   : > { %2663 = vst [vmem:[%s4462_s9 + $0x18] sm:$0xff] %v2631_v2  ;;  %v2106_v51 = vadd.f32 %v2018_v58, %v1861_v25  ;;  %v2263_v52 = vpop.f32.mrf.mxu3  ;;  %v1776_v17 = vpop.f32.mrf.mxu1  ;;  %v4819_v2 = vld [vmem:[#allocation40_spill] sm:$0xff] }
 0x202   : > { %v1862_v6 = vadd.f32 %v1776_v17, %v4817_v56  ;;  %v4820_v56 = vld [vmem:[#allocation41_spill] sm:$0xff] }
 0x203   : > { %v2351_v39 = vadd.f32 %v2263_v52, %v2106_v51 }
 0x204   : > { %v2511_v41 = vpop.f32.mrf.mxu0  ;;  %3180 = vmatmul.msk.f32.gmra.mxu1 %vm483_vm1, %v4099_v45  ;;  %v2951_v45 = vld [vmem:[%s3543_s19 + $0x139] sm:$0xff] }
 0x205   : > { %v2596_v22 = vadd.f32 %v2508_v60, %v2351_v39  ;;  %3213 = vmatmul.msk.f32.gmra.mxu2 %vm483_vm1, %v4102_v29 }
 0x206   : > { %3246 = vmatmul.msk.f32.gmra.mxu3 %vm483_vm1, %v2950_v32 }
 0x207   : > { %3279 = vmatmul.msk.f32.gmra.mxu0 %vm483_vm1, %v4133_v26  ;;  %v2632_v4 = vadd.f32 %v4450_v27, %v2596_v22 }
 0x208   : > { %v2021_v21 = vpop.f32.mrf.mxu2 }
 0x209   : > { %2664 = vst [vmem:[%s4462_s9 + $0x20] sm:$0xff] %v2632_v4  ;;  %v2107_v14 = vadd.f32 %v2021_v21, %v1862_v6  ;;  %v2266_v63 = vpop.f32.mrf.mxu3  ;;  %v1779_v61 = vpop.f32.mrf.mxu1 }
 0x20a   : > { %v1863_v47 = vadd.f32 %v1779_v61, %v4818_v43 }
 0x20b   : > { %v2352_v31 = vadd.f32 %v2266_v63, %v2107_v14 }
 0x20c   : > { %v2514_v33 = vpop.f32.mrf.mxu0  ;;  %3181 = vmatmul.msk.f32.gmra.mxu1 %vm483_vm1, %v4116_v0  ;;  %v2952_v0 = vld [vmem:[%s3543_s19 + $0x141] sm:$0xff] }
 0x20d   : > { %v2597_v29 = vadd.f32 %v2511_v41, %v2352_v31  ;;  %3214 = vmatmul.msk.f32.gmra.mxu2 %vm483_vm1, %v4119_v34 }
 0x20e   : > { %3247 = vmatmul.msk.f32.gmra.mxu3 %vm483_vm1, %v2951_v45 }
 0x20f   : > { %3280 = vmatmul.msk.f32.gmra.mxu0 %vm483_vm1, %v4150_v12  ;;  %v2633_v62 = vadd.f32 %v4450_v27, %v2597_v29  ;;  %v4822_v29 = vld [vmem:[#allocation42_spill] sm:$0xff] }
 0x210   : > { %v2024_v35 = vpop.f32.mrf.mxu2 }
 0x211   : > { %2665 = vst [vmem:[%s4462_s9 + $0x28] sm:$0xff] %v2633_v62  ;;  %v2108_v16 = vadd.f32 %v2024_v35, %v1863_v47  ;;  %v2269_v60 = vpop.f32.mrf.mxu3  ;;  %v1782_v18 = vpop.f32.mrf.mxu1 }
 0x212   : > { %v1864_v58 = vadd.f32 %v1782_v18, %v4819_v2 }
 0x213   : > { %v2353_v13 = vadd.f32 %v2269_v60, %v2108_v16 }
 0x214   : > { %v2517_v25 = vpop.f32.mrf.mxu0  ;;  %3182 = vmatmul.msk.f32.gmra.mxu1 %vm483_vm1, %v4133_v26  ;;  %v2953_v26 = vld [vmem:[%s3543_s19 + $0x151] sm:$0xff] }
 0x215   : > { %v2598_v34 = vadd.f32 %v2514_v33, %v2353_v13  ;;  %3215 = vmatmul.msk.f32.gmra.mxu2 %vm483_vm1, %v4136_v38  ;;  %v4821_v33 = vld [vmem:[#allocation45_spill] sm:$0xff] }
 0x216   : > { %3248 = vmatmul.msk.f32.gmra.mxu3 %vm483_vm1, %v2952_v0  ;;  %v4823_v0 = vld [vmem:[#allocation47_spill] sm:$0xff] }
 0x217   : > { %3281 = vmatmul.msk.f32.gmra.mxu0 %vm483_vm1, %v4167_v59  ;;  %v2634_v51 = vadd.f32 %v4450_v27, %v2598_v34 }
 0x218   : > { %v2027_v52 = vpop.f32.mrf.mxu2 }
 0x219   : > { %2666 = vst [vmem:[%s4462_s9 + $0x30] sm:$0xff] %v2634_v51  ;;  %v2109_v17 = vadd.f32 %v2027_v52, %v1864_v58  ;;  %v2272_v39 = vpop.f32.mrf.mxu3  ;;  %v1785_v32 = vpop.f32.mrf.mxu1 }
 0x21a   : > { %v1865_v6 = vadd.f32 %v1785_v32, %v4820_v56 }
 0x21b   : > { %v2354_v41 = vadd.f32 %v2272_v39, %v2109_v17 }
 0x21c   : > { %v2520_v22 = vpop.f32.mrf.mxu0  ;;  %3183 = vmatmul.msk.f32.gmra.mxu1 %vm483_vm1, %v4150_v12  ;;  %v2954_v12 = vld [vmem:[%s3543_s19 + $0x159] sm:$0xff] }
 0x21d   : > { %v2599_v38 = vadd.f32 %v2517_v25, %v2354_v41  ;;  %3216 = vmatmul.msk.f32.gmra.mxu2 %vm483_vm1, %v4153_v7  ;;  %v4824_v25 = vld [vmem:[#allocation43_spill] sm:$0xff]  ;;  %v4825_v41 = vld [vmem:[#allocation44_spill] sm:$0xff] }
 0x21e   : > { %3249 = vmatmul.msk.f32.gmra.mxu3 %vm483_vm1, %v2953_v26 }
 0x21f   : > { %3282 = vmatmul.msk.f32.gmra.mxu0 %vm483_vm1, %v4184_v1  ;;  %v2635_v4 = vadd.f32 %v4450_v27, %v2599_v38 }
 0x220   : > { %v2030_v21 = vpop.f32.mrf.mxu2 }
 0x221   : > { %2667 = vst [vmem:[%s4462_s9 + $0x38] sm:$0xff] %v2635_v4  ;;  %v2110_v14 = vadd.f32 %v2030_v21, %v1865_v6  ;;  %v2275_v63 = vpop.f32.mrf.mxu3  ;;  %v1788_v61 = vpop.f32.mrf.mxu1 }
 0x222   : > { %v1866_v43 = vadd.f32 %v1788_v61, %v4822_v29  ;;  %v4826_v61 = vld [vmem:[#allocation46_spill] sm:$0xff] }
 0x223   : > { %v2355_v31 = vadd.f32 %v2275_v63, %v2110_v14  ;;  %v2989_v63 = vld [vmem:[%s3543_s19 + $0x182] sm:$0xff] }
 0x224   : > { %v2523_v45 = vpop.f32.mrf.mxu0  ;;  %3184 = vmatmul.msk.f32.gmra.mxu1 %vm483_vm1, %v4167_v59  ;;  %v2955_v59 = vld [vmem:[%s3543_s19 + $0x169] sm:$0xff] }
 0x225   : > { %v2600_v7 = vadd.f32 %v2520_v22, %v2355_v31  ;;  %3217 = vmatmul.msk.f32.gmra.mxu2 %vm483_vm1, %v4170_v11 }
 0x226   : > { %3250 = vmatmul.msk.f32.gmra.mxu3 %vm483_vm1, %v2954_v12 }
 0x227   : > { %3283 = vmatmul.msk.f32.gmra.mxu0 %vm483_vm1, %v4821_v33  ;;  %v2636_v47 = vadd.f32 %v4450_v27, %v2600_v7 }
 0x228   : > { %v2033_v62 = vpop.f32.mrf.mxu2 }
 0x229   : > { %2668 = vst [vmem:[%s4462_s9 + $0x40] sm:$0xff] %v2636_v47  ;;  %v2111_v35 = vadd.f32 %v2033_v62, %v1866_v43  ;;  %v2278_v16 = vpop.f32.mrf.mxu3  ;;  %v1791_v60 = vpop.f32.mrf.mxu1 }
 0x22a   : > { %v1867_v34 = vadd.f32 %v1791_v60, %v4824_v25  ;;  %v2991_v25 = vld [vmem:[%s3543_s19 + $0x19a] sm:$0xff] }
 0x22b   : > { %v2356_v18 = vadd.f32 %v2278_v16, %v2111_v35 }
 0x22c   : > { %v2526_v13 = vpop.f32.mrf.mxu0  ;;  %3185 = vmatmul.msk.f32.gmra.mxu1 %vm483_vm1, %v4184_v1  ;;  %v2956_v1 = vld [vmem:[%s3543_s19 + $0x171] sm:$0xff] }
 0x22d   : > { %v2601_v11 = vadd.f32 %v2523_v45, %v2356_v18  ;;  %3218 = vmatmul.msk.f32.gmra.mxu2 %vm483_vm1, %v4187_v15 }
 0x22e   : > { %3251 = vmatmul.msk.f32.gmra.mxu3 %vm483_vm1, %v2955_v59 }
 0x22f   : > { %3284 = vmatmul.msk.f32.gmra.mxu0 %vm483_vm1, %v4823_v0  ;;  %v2637_v2 = vadd.f32 %v4450_v27, %v2601_v11  ;;  %v2927_v11 = vld [vmem:[%s3543_s19 + $0x198] sm:$0xff] }
 0x230   : > { %v2036_v58 = vpop.f32.mrf.mxu2 }
 0x231   : > { %2669 = vst [vmem:[%s4462_s9 + $0x48] sm:$0xff] %v2637_v2  ;;  %v2112_v51 = vadd.f32 %v2036_v58, %v1867_v34  ;;  %v2281_v52 = vpop.f32.mrf.mxu3  ;;  %v1794_v17 = vpop.f32.mrf.mxu1 }
 0x232   : > { %v1868_v26 = vadd.f32 %v1794_v17, %v4825_v41  ;;  %v2992_v41 = vld [vmem:[%s3543_s19 + $0x1a2] sm:$0xff] }
 0x233   : > { %v2357_v39 = vadd.f32 %v2281_v52, %v2112_v51 }
 0x234   : > { %v2529_v32 = vpop.f32.mrf.mxu0  ;;  %3186 = vmatmul.msk.f32.gmra.mxu1 %vm483_vm1, %v4821_v33 }
 0x235   : > { %v2602_v15 = vadd.f32 %v2526_v13, %v2357_v39  ;;  %3219 = vmatmul.msk.f32.gmra.mxu2 %vm483_vm1, %v4204_v19  ;;  %v2928_v39 = vld [vmem:[%s3543_s19 + $0x1a0] sm:$0xff] }
 0x236   : > { %3252 = vmatmul.msk.f32.gmra.mxu3 %vm483_vm1, %v2956_v1 }
 0x237   : > { %3285 = vmatmul.msk.f32.gmra.mxu0 %vm483_vm1, %v4238_v37  ;;  %v2638_v22 = vadd.f32 %v4450_v27, %v2602_v15 }
 0x238   : > { %v2039_v38 = vpop.f32.mrf.mxu2 }
 0x239   : > { %2670 = vst [vmem:[%s4462_s9 + $0x50] sm:$0xff] %v2638_v22  ;;  %v2113_v56 = vadd.f32 %v2039_v38, %v1868_v26  ;;  %v2284_v6 = vpop.f32.mrf.mxu3  ;;  %v1797_v4 = vpop.f32.mrf.mxu1 }
 0x23a   : > { %v1869_v31 = vadd.f32 %v1797_v4, %v4826_v61 }
 0x23b   : > { %v2358_v21 = vadd.f32 %v2284_v6, %v2113_v56 }
 0x23c   : > { %v2532_v14 = vpop.f32.mrf.mxu0  ;;  %3187 = vmatmul.msk.f32.gmra.mxu1 %vm483_vm1, %v4823_v0  ;;  %v2959_v0 = vld [vmem:[%s3543_s19 + $0x199] sm:$0xff] }
 0x23d   : > { %v2603_v19 = vadd.f32 %v2529_v32, %v2358_v21  ;;  %3220 = vmatmul.msk.f32.gmra.mxu2 %vm483_vm1, %v4221_v23  ;;  %v2990_v23 = vld [vmem:[%s3543_s19 + $0x18a] sm:$0xff]  ;;  %v2960_v32 = vld [vmem:[%s3543_s19 + $0x1a1] sm:$0xff]  ;;  %s2707_s19 = scalar_lea.hbm %s4709_s3, %s3295_s10 }
 0x23e   : > { %3253 = vmatmul.msk.f32.gmra.mxu3 %vm483_vm1, %v4224_v28  ;;  %v4827_v28 = vld [vmem:[#allocation48_spill] sm:$0xff]  ;;  %s2710_s23 = sshll.u32 %s2707_s19, 4  ;;  %s2711_s23 = int_to_ptr.hbm [resolvable:$true] %s2710_s23 }
 0x23f   : > { %3286 = vmatmul.msk.f32.gmra.mxu0 %vm483_vm1, %v2989_v63  ;;  %v2639_v12 = vadd.f32 %v4450_v27, %v2603_v19  ;;  %s3372_s26 = sshra.s32 %s2711_s23, 4  ;;  %s3373_s26 = int_to_ptr.hbm [resolvable:$true] %s3372_s26 }
 0x240   : > { %v2042_v45 = vpop.f32.mrf.mxu2  ;;  %s3374_s27 = scalar_lea.hbm %s3373_s26, 256  ;;  %p3379_p1 = scmp.lt.s32.totalorder %s3373_s26, %s4709_s3 }
 0x241   : > { %2671 = vst [vmem:[%s4462_s9 + $0x58] sm:$0xff] %v2639_v12  ;;  %v2114_v7 = vadd.f32 %v2042_v45, %v1869_v31  ;;  %v2287_v33 = vpop.f32.mrf.mxu3  ;;  %v1800_v29 = vpop.f32.mrf.mxu1  ;;  %p3375_p12 = scmp.ne.s32.totalorder %s3373_s26, %s3374_s27  ;;  %p3380_p2 = scmp.lt.s32.totalorder %s3378_s30, %s3374_s27 }
 0x242   : > { %v1870_v35 = vadd.f32 %v1800_v29, %v4827_v28 }
 0x243   : > { %v2359_v43 = vadd.f32 %v2287_v33, %v2114_v7  ;;  %p3376_p13 = pnand %p3375_p12, %p3500_p4  ;;  %p3381_p3 = por %p3380_p2, %p3379_p1 }
 0x244   : > { %v2535_v47 = vpop.f32.mrf.mxu0  ;;  %3188 = vmatmul.msk.f32.gmra.mxu1 %vm483_vm1, %v4238_v37 }
 0x245   : > { %v2604_v62 = vadd.f32 %v2532_v14, %v2359_v43  ;;  %3221 = vmatmul.msk.f32.gmra.mxu2 %vm483_vm1, %v4241_v30  ;;  %p3377_p0 = pneg %p3376_p13 }
 0x246   : > { %3254 = vmatmul.msk.f32.gmra.mxu3 %vm483_vm1, %v4244_v9 }
 0x247   : > { %3287 = vmatmul.msk.f32.gmra.mxu0 %vm483_vm1, %v2990_v23  ;;  %v2640_v16 = vadd.f32 %v4450_v27, %v2604_v62  ;;  %p3382_p5 = pnand %p3381_p3, %p3377_p0 }
 0x248   : > { %v2045_v60 = vpop.f32.mrf.mxu2 }
 0x249   : > { %2672 = vst [vmem:[%s4462_s9 + $0x60] sm:$0xff] %v2640_v16  ;;  %v2115_v18 = vadd.f32 %v2045_v60, %v1870_v35  ;;  %v2290_v59 = vpop.f32.mrf.mxu3  ;;  %v1803_v13 = vpop.f32.mrf.mxu1 }
 0x24a   : > { %v1871_v34 = vadd.f32 %v1803_v13, %v4246_v8 }
 0x24b   : > { %v2360_v37 = vadd.f32 %v2290_v59, %v2115_v18 }
 0x24c   : > { %v2538_v30 = vpop.f32.mrf.mxu0  ;;  %3189 = vmatmul.msk.f32.gmra.mxu1 %vm483_vm1, %v2989_v63 }
 0x24d   : > { %v2605_v9 = vadd.f32 %v2535_v47, %v2360_v37  ;;  %3222 = vmatmul.msk.f32.gmra.mxu2 %vm483_vm1, %v2927_v11 }
 0x24e   : > { %3255 = vmatmul.msk.f32.gmra.mxu3 %vm483_vm1, %v2959_v0 }
 0x24f   : > { %3288 = vmatmul.msk.f32.gmra.mxu0 %vm483_vm1, %v2991_v25  ;;  %v2641_v2 = vadd.f32 %v4450_v27, %v2605_v9 }
 0x250   : > { %v2048_v58 = vpop.f32.mrf.mxu2 }
 0x251   : > { %2673 = vst [vmem:[%s4462_s9 + $0x68] sm:$0xff] %v2641_v2  ;;  %v2116_v51 = vadd.f32 %v2048_v58, %v1871_v34  ;;  %v2293_v52 = vpop.f32.mrf.mxu3  ;;  %v1806_v17 = vpop.f32.mrf.mxu1 }
 0x252   : > { %v1872_v8 = vadd.f32 %v1806_v17, %v4257_v3 }
 0x253   : > { %v2361_v1 = vadd.f32 %v2293_v52, %v2116_v51 }
 0x254   : > { %v2541_v15 = vpop.f32.mrf.mxu0  ;;  %3190 = vmatmul.msk.f32.gmra.mxu1 %vm483_vm1, %v2990_v23 }
 0x255   : > { %v2606_v26 = vadd.f32 %v2538_v30, %v2361_v1  ;;  %3223 = vmatmul.msk.f32.gmra.mxu2 %vm483_vm1, %v2928_v39 }
 0x256   : > { %3256 = vmatmul.msk.f32.gmra.mxu3 %vm483_vm1, %v2960_v32 }
 0x257   : > { %3289 = vmatmul.msk.f32.gmra.mxu0 %vm483_vm1, %v2992_v41  ;;  %v2642_v22 = vadd.f32 %v4450_v27, %v2606_v26 }
 0x258   : > { %v2051_v38 = vpop.f32.mrf.mxu2 }
 0x259   : > { %2674 = vst [vmem:[%s4462_s9 + $0x70] sm:$0xff] %v2642_v22  ;;  %v2117_v56 = vadd.f32 %v2051_v38, %v1872_v8  ;;  %v2296_v6 = vpop.f32.mrf.mxu3  ;;  %v1809_v4 = vpop.f32.mrf.mxu1 }
 0x25a   : > { %v1873_v19 = vadd.f32 %v1809_v4, %v4268_v10 }
 0x25b   : > { %v2362_v21 = vadd.f32 %v2296_v6, %v2117_v56 }
 0x25c   : > { %v2544_v14 = vpop.f32.mrf.mxu0 }
 0x25d   : > { %v2607_v63 = vadd.f32 %v2541_v15, %v2362_v21 }
 0x25f   : > { %v2643_v61 = vadd.f32 %v4450_v27, %v2607_v63 }
 0x260   : > { %v2054_v31 = vpop.f32.mrf.mxu2 }
 0x261   : > { %2675 = vst [vmem:[%s4462_s9 + $0x78] sm:$0xff] %v2643_v61  ;;  %v2118_v12 = vadd.f32 %v2054_v31, %v1873_v19  ;;  %v2299_v45 = vpop.f32.mrf.mxu3  ;;  %v1812_v3 = vpop.f32.mrf.mxu1 }
 0x262   : > { %v1874_v43 = vadd.f32 %v1812_v3, %v4279_v42 }
 0x263   : > { %v2363_v7 = vadd.f32 %v2299_v45, %v2118_v12 }
 0x264   : > { %v2547_v33 = vpop.f32.mrf.mxu0 }
 0x265   : > { %v2608_v29 = vadd.f32 %v2544_v14, %v2363_v7 }
 0x267   : > { %v2644_v47 = vadd.f32 %v4450_v27, %v2608_v29 }
 0x268   : > { %v2057_v23 = vpop.f32.mrf.mxu2 }
 0x269   : > { %2676 = vst [vmem:[%s4462_s9 + $0x80] sm:$0xff] %v2644_v47  ;;  %v2119_v62 = vadd.f32 %v2057_v23, %v1874_v43  ;;  %v2302_v28 = vpop.f32.mrf.mxu3  ;;  %v1815_v10 = vpop.f32.mrf.mxu1 }
 0x26a   : > { %v1875_v18 = vadd.f32 %v1815_v10, %v4290_v46 }
 0x26b   : > { %v2364_v35 = vadd.f32 %v2302_v28, %v2119_v62 }
 0x26c   : > { %v2550_v16 = vpop.f32.mrf.mxu0 }
 0x26d   : > { %v2609_v60 = vadd.f32 %v2547_v33, %v2364_v35 }
 0x26f   : > { %v2645_v59 = vadd.f32 %v4450_v27, %v2609_v60 }
 0x270   : > { %v2060_v13 = vpop.f32.mrf.mxu2 }
 0x271   : > { %2677 = vst [vmem:[%s4462_s9 + $0x88] sm:$0xff] %v2645_v59  ;;  %v2120_v11 = vadd.f32 %v2060_v13, %v1875_v18  ;;  %v2305_v37 = vpop.f32.mrf.mxu3  ;;  %v1818_v42 = vpop.f32.mrf.mxu1 }
 0x272   : > { %v1876_v9 = vadd.f32 %v1818_v42, %v4302_v53 }
 0x273   : > { %v2365_v0 = vadd.f32 %v2305_v37, %v2120_v11 }
 0x274   : > { %v2553_v30 = vpop.f32.mrf.mxu0 }
 0x275   : > { %v2610_v25 = vadd.f32 %v2550_v16, %v2365_v0 }
 0x277   : > { %v2646_v34 = vadd.f32 %v4450_v27, %v2610_v25 }
 0x278   : > { %v2063_v2 = vpop.f32.mrf.mxu2 }
 0x279   : > { %2678 = vst [vmem:[%s4462_s9 + $0x90] sm:$0xff] %v2646_v34  ;;  %v2121_v58 = vadd.f32 %v2063_v2, %v1876_v9  ;;  %v2308_v51 = vpop.f32.mrf.mxu3  ;;  %v1821_v46 = vpop.f32.mrf.mxu1 }
 0x27a   : > { %v1877_v1 = vadd.f32 %v1821_v46, %v4313_v50 }
 0x27b   : > { %v2366_v52 = vadd.f32 %v2308_v51, %v2121_v58 }
 0x27c   : > { %v2556_v17 = vpop.f32.mrf.mxu0 }
 0x27d   : > { %v2611_v39 = vadd.f32 %v2553_v30, %v2366_v52 }
 0x27f   : > { %v2647_v32 = vadd.f32 %v4450_v27, %v2611_v39 }
 0x280   : > { %v2066_v15 = vpop.f32.mrf.mxu2 }
 0x281   : > { %2679 = vst [vmem:[%s4462_s9 + $0x98] sm:$0xff] %v2647_v32  ;;  %v2122_v41 = vadd.f32 %v2066_v15, %v1877_v1  ;;  %v2311_v26 = vpop.f32.mrf.mxu3  ;;  %v1824_v53 = vpop.f32.mrf.mxu1 }
 0x282   : > { %v1878_v56 = vadd.f32 %v1824_v53, %v4324_v24 }
 0x283   : > { %v2367_v8 = vadd.f32 %v2311_v26, %v2122_v41 }
 0x284   : > { %v2559_v22 = vpop.f32.mrf.mxu0 }
 0x285   : > { %v2612_v38 = vadd.f32 %v2556_v17, %v2367_v8 }
 0x287   : > { %v2648_v6 = vadd.f32 %v4450_v27, %v2612_v38 }
 0x288   : > { %v2069_v4 = vpop.f32.mrf.mxu2 }
 0x289   : > { %2680 = vst [vmem:[%s4462_s9 + $0xa0] sm:$0xff] %v2648_v6  ;;  %v2123_v21 = vadd.f32 %v2069_v4, %v1878_v56  ;;  %v2314_v14 = vpop.f32.mrf.mxu3  ;;  %v1827_v50 = vpop.f32.mrf.mxu1 }
 0x28a   : > { %v1879_v31 = vadd.f32 %v1827_v50, %v4335_v49 }
 0x28b   : > { %v2368_v63 = vadd.f32 %v2314_v14, %v2123_v21 }
 0x28c   : > { %v2562_v19 = vpop.f32.mrf.mxu0 }
 0x28d   : > { %v2613_v61 = vadd.f32 %v2559_v22, %v2368_v63 }
 0x28f   : > { %v2649_v12 = vadd.f32 %v4450_v27, %v2613_v61 }
 0x290   : > { %v2072_v45 = vpop.f32.mrf.mxu2 }
 0x291   : > { %2681 = vst [vmem:[%s4462_s9 + $0xa8] sm:$0xff] %v2649_v12  ;;  %v2124_v3 = vadd.f32 %v2072_v45, %v1879_v31  ;;  %v2317_v7 = vpop.f32.mrf.mxu3  ;;  %v1830_v24 = vpop.f32.mrf.mxu1 }
 0x292   : > { %v1880_v47 = vadd.f32 %v1830_v24, %v4346_v57 }
 0x293   : > { %v2369_v33 = vadd.f32 %v2317_v7, %v2124_v3 }
 0x294   : > { %v2565_v29 = vpop.f32.mrf.mxu0 }
 0x295   : > { %v2614_v43 = vadd.f32 %v2562_v19, %v2369_v33 }
 0x297   : > { %v2650_v23 = vadd.f32 %v4450_v27, %v2614_v43 }
 0x298   : > { %v2075_v62 = vpop.f32.mrf.mxu2 }
 0x299   : > { %2682 = vst [vmem:[%s4462_s9 + $0xb0] sm:$0xff] %v2650_v23  ;;  %v2125_v28 = vadd.f32 %v2075_v62, %v1880_v47  ;;  %v2320_v10 = vpop.f32.mrf.mxu3  ;;  %v1833_v49 = vpop.f32.mrf.mxu1 }
 0x29a   : > { %v1881_v18 = vadd.f32 %v1833_v49, %v4357_v5 }
 0x29b   : > { %v2370_v35 = vadd.f32 %v2320_v10, %v2125_v28 }
 0x29c   : > { %v2568_v16 = vpop.f32.mrf.mxu0 }
 0x29d   : > { %v2615_v60 = vadd.f32 %v2565_v29, %v2370_v35 }
 0x29f   : > { %v2651_v59 = vadd.f32 %v4450_v27, %v2615_v60 }
 0x2a0   : > { %v2078_v13 = vpop.f32.mrf.mxu2 }
 0x2a1   : > { %2683 = vst [vmem:[%s4462_s9 + $0xb8] sm:$0xff] %v2651_v59  ;;  %v2126_v11 = vadd.f32 %v2078_v13, %v1881_v18  ;;  %v2323_v37 = vpop.f32.mrf.mxu3  ;;  %v1836_v57 = vpop.f32.mrf.mxu1 }
 0x2a2   : > { %v1882_v25 = vadd.f32 %v1836_v57, %v4368_v54 }
 0x2a3   : > { %v2371_v42 = vadd.f32 %v2323_v37, %v2126_v11 }
 0x2a4   : > { %v2571_v0 = vpop.f32.mrf.mxu0 }
 0x2a5   : > { %v2616_v30 = vadd.f32 %v2568_v16, %v2371_v42 }
 0x2a7   : > { %v2652_v9 = vadd.f32 %v4450_v27, %v2616_v30 }
 0x2a8   : > { %v2081_v34 = vpop.f32.mrf.mxu2 }
 0x2a9   : > { %2684 = vst [vmem:[%s4462_s9 + $0xc0] sm:$0xff] %v2652_v9  ;;  %v2127_v2 = vadd.f32 %v2081_v34, %v1882_v25  ;;  %v2326_v58 = vpop.f32.mrf.mxu3  ;;  %v1839_v5 = vpop.f32.mrf.mxu1 }
 0x2aa   : > { %v1883_v17 = vadd.f32 %v1839_v5, %v4379_v36 }
 0x2ab   : > { %v2372_v51 = vadd.f32 %v2326_v58, %v2127_v2 }
 0x2ac   : > { %v2574_v46 = vpop.f32.mrf.mxu0 }
 0x2ad   : > { %v2617_v52 = vadd.f32 %v2571_v0, %v2372_v51 }
 0x2af   : > { %v2653_v39 = vadd.f32 %v4450_v27, %v2617_v52 }
 0x2b0   : > { %v2084_v1 = vpop.f32.mrf.mxu2 }
 0x2b1   : > { %2685 = vst [vmem:[%s4462_s9 + $0xc8] sm:$0xff] %v2653_v39  ;;  %v2128_v32 = vadd.f32 %v2084_v1, %v1883_v17  ;;  %v2329_v15 = vpop.f32.mrf.mxu3  ;;  %v1842_v54 = vpop.f32.mrf.mxu1 }
 0x2b2   : > { %v1884_v8 = vadd.f32 %v1842_v54, %v4390_v20 }
 0x2b3   : > { %v2373_v41 = vadd.f32 %v2329_v15, %v2128_v32 }
 0x2b4   : > { %v2577_v26 = vpop.f32.mrf.mxu0 }
 0x2b5   : > { %v2618_v53 = vadd.f32 %v2574_v46, %v2373_v41 }
 0x2b7   : > { %v2654_v22 = vadd.f32 %v4450_v27, %v2618_v53 }
 0x2b8   : > { %v2087_v38 = vpop.f32.mrf.mxu2 }
 0x2b9   : > { %2686 = vst [vmem:[%s4462_s9 + $0xd0] sm:$0xff] %v2654_v22  ;;  %v2129_v56 = vadd.f32 %v2087_v38, %v1884_v8  ;;  %v2332_v6 = vpop.f32.mrf.mxu3  ;;  %v1845_v36 = vpop.f32.mrf.mxu1 }
 0x2ba   : > { %v1885_v50 = vadd.f32 %v1845_v36, %v4401_v55 }
 0x2bb   : > { %v2374_v4 = vadd.f32 %v2332_v6, %v2129_v56 }
 0x2bc   : > { %v2580_v21 = vpop.f32.mrf.mxu0 }
 0x2bd   : > { %v2619_v14 = vadd.f32 %v2577_v26, %v2374_v4 }
 0x2bf   : > { %v2655_v63 = vadd.f32 %v4450_v27, %v2619_v14 }
 0x2c0   : > { %v2090_v19 = vpop.f32.mrf.mxu2 }
 0x2c1   : > { %2687 = vst [vmem:[%s4462_s9 + $0xd8] sm:$0xff] %v2655_v63  ;;  %v2130_v61 = vadd.f32 %v2090_v19, %v1885_v50  ;;  %v2335_v31 = vpop.f32.mrf.mxu3  ;;  %v1848_v20 = vpop.f32.mrf.mxu1 }
 0x2c2   : > { %v1886_v7 = vadd.f32 %v1848_v20, %v4412_v48 }
 0x2c3   : > { %v2375_v12 = vadd.f32 %v2335_v31, %v2130_v61 }
 0x2c4   : > { %v2583_v3 = vpop.f32.mrf.mxu0 }
 0x2c5   : > { %v2620_v45 = vadd.f32 %v2580_v21, %v2375_v12 }
 0x2c7   : > { %v2656_v24 = vadd.f32 %v4450_v27, %v2620_v45 }
 0x2c8   : > { %v2093_v33 = vpop.f32.mrf.mxu2 }
 0x2c9   : > { %2688 = vst [vmem:[%s4462_s9 + $0xe0] sm:$0xff] %v2656_v24  ;;  %v2131_v29 = vadd.f32 %v2093_v33, %v1886_v7  ;;  %v2338_v55 = vpop.f32.mrf.mxu3  ;;  %v1851_v43 = vpop.f32.mrf.mxu1 }
 0x2ca   : > { %v1887_v62 = vadd.f32 %v1851_v43, %v4423_v40 }
 0x2cb   : > { %v2376_v47 = vadd.f32 %v2338_v55, %v2131_v29 }
 0x2cc   : > { %v2586_v49 = vpop.f32.mrf.mxu0 }
 0x2cd   : > { %v2621_v23 = vadd.f32 %v2583_v3, %v2376_v47 }
 0x2cf   : > { %v2657_v28 = vadd.f32 %v4450_v27, %v2621_v23 }
 0x2d0   : > { %v2096_v10 = vpop.f32.mrf.mxu2 }
 0x2d1   : > { %2689 = vst [vmem:[%s4462_s9 + $0xe8] sm:$0xff] %v2657_v28  ;;  %v2132_v48 = vadd.f32 %v2096_v10, %v1887_v62  ;;  %v2341_v35 = vpop.f32.mrf.mxu3  ;;  %v1854_v60 = vpop.f32.mrf.mxu1 }
 0x2d2   : > { %v1888_v59 = vadd.f32 %v1854_v60, %v4434_v44 }
 0x2d3   : > { %v2377_v16 = vadd.f32 %v2341_v35, %v2132_v48 }
 0x2d4   : > { %v2589_v57 = vpop.f32.mrf.mxu0 }
 0x2d5   : > { %v2622_v18 = vadd.f32 %v2586_v49, %v2377_v16 }
 0x2d7   : > { %v2658_v13 = vadd.f32 %v4450_v27, %v2622_v18 }
 0x2d8   : > { %v2099_v11 = vpop.f32.mrf.mxu2 }
 0x2d9   : > { %2690 = vst [vmem:[%s4462_s9 + $0xf0] sm:$0xff] %v2658_v13  ;;  %v2133_v40 = vadd.f32 %v2099_v11, %v1888_v59  ;;  %v2344_v37 = vpop.f32.mrf.mxu3 }
 0x2db   : > { %v2378_v42 = vadd.f32 %v2344_v37, %v2133_v40 }
 0x2dd   : > { %v2623_v0 = vadd.f32 %v2589_v57, %v2378_v42 }
 0x2df   : > { %v2659_v44 = vadd.f32 %v4450_v27, %v2623_v0 }
 0x2e1   : > { %2691 = vst [vmem:[%s4462_s9 + $0xf8] sm:$0xff] %v2659_v44 }
 0x2e2   : > { %3385 = shalt.err (!%p3382_p5)
}
 0x2e3   : > { %s3438_s5 = smov 128   ;;  %s3439_s7 = smov 8  }
 0x2e4   : > { %3300 = dma.vmem_to_hbm [thread:$0]  (%p3500_p4), %s2709_s21, 4096, %s2711_s23, %s2693_s15, %s3438_s5, %s3438_s5, %s3439_s7  }
 0x2e5 PF: > { %p3306_p6 = scmp.ge.s32.totalorder %s3436_s17, 2  ;;  %s2725_s8 = sand.u32 1, %s3416_s12  }
 0x2e6   : > { %s2726_s9 = scalar_lea.sflag [#allocation3], %s2725_s8 }
 0x2e7   : > { %p3303_p7 = pnand %p3306_p6, %p3507_p8 }
 0x2e9   : > { %p3304_p9 = pneg %p3303_p7 }
 0x2eb   : > { %3411 = dma.done.wait (%p3304_p9), %s2726_s9, 4096  }
 0x2ec   : > { %3413 = vsyncadd (%p3304_p9), %s2726_s9, 4294963200  ;;  %s16_s17 = sadd.s32 1, %s3436_s17   ;;  %s4828_s12 = smov %s3420_s13 }
 0x2ed   : > { %p13_p10 = scmp.ge.s32.totalorder %s16_s17, 4   ;;  %s4829_s13 = smov %s3424_s14 }
 0x2ee   : > { %s4830_s14 = smov %s3513_s25  ;;  %s4831_s15 = smov %s3432_s16 }
 0x2ef   : > { %s4832_s16 = smov %s4834_s20  ;;  %15 = sbr.rel (!%p13_p10) target bundleno = 4 (0x4), region = 70 }
 0x2f4   :  { %2732 = vsyncpa [#allocation3], 1 }
 0x2f5   :  { %2734 = vsyncpa [#allocation3 + $0x1], 1 }

</bundles_post_ra>
